<compile_context>
chip_gen: v7x
topology: tpu7x:2x2x1
jax: 0.10.0
libtpu: 0.0.40
codegen_flags: <defaults>
</compile_context>

<pallas_src>
from math import gcd, sqrt

import jax
import jax.numpy as jnp
from jax import lax
from jax.experimental import pallas as pl
from jax.experimental.pallas import tpu as pltpu


# ---------------------------------------------------------------------------
# Kernel
# ---------------------------------------------------------------------------
def _make_local_guidance_kernel(wt: int, n: int, c: int, e: int):
    rows = wt * n
    c2, e2, e3 = 2 * c, 2 * e, 3 * e

    def kernel(xy_ref, w1_ref, w2_ref, wqkv_ref, w1e_ref, w2e_ref, bias_ref,
               o_ref):
        xy = xy_ref[...].astype(jnp.float32)                       # (rows, 2C)

        # Bias slab rows: [b1x|b1y], [b2x|b2y], b1e, b2e (zero-padded to maxw).
        b1 = bias_ref[0:1, 0:c2]
        b2 = bias_ref[1:2, 0:e2]
        b1e = bias_ref[2:3, 0:e]
        b2e = bias_ref[3:4, 0:c]

        # Fused proj_x / proj_y (block-diagonal weights) -> [xe | ye].
        # Dropout inside Mlp is identity at inference.
        h = jnp.dot(xy, w1_ref[...], preferred_element_type=jnp.float32) + b1
        h = jnp.maximum(h, 0.0)
        xeye = jnp.dot(h, w2_ref[...],
                       preferred_element_type=jnp.float32) + b2    # (rows, 2E)

        # Fused q/k/v: [[wq*1/sqrt(dk), 0, 0], [0, wk, wv]]  -> (rows, 3E).
        qkv = jnp.dot(xeye, wqkv_ref[...], preferred_element_type=jnp.float32)
        q = qkv[:, 0:e].reshape(wt, n, e)
        k = qkv[:, e:e2].reshape(wt, n, e)
        v = qkv[:, e2:e3].reshape(wt, n, e)

        # Batched q k^T without materializing a transpose (contract last dims).
        scores = lax.dot_general(q, k, (((2,), (2,)), ((0,), (0,))),
                                 preferred_element_type=jnp.float32)  # (WT,n,n)
        s_max = jnp.max(scores, axis=-1, keepdims=True)
        p = jnp.exp(scores - s_max)
        l = jnp.sum(p, axis=-1, keepdims=True)
        ctx = lax.dot_general(p, v, (((2,), (1,)), ((0,), (0,))),
                              preferred_element_type=jnp.float32)     # (WT,n,E)

        # Deferred softmax normalization + residual (CrossAttention: xe + attn).
        xe = xeye[:, 0:e].reshape(wt, n, e)
        attn = (xe + ctx / l).reshape(rows, e)

        # expand Mlp back to in_chans.
        h2 = jnp.dot(attn, w1e_ref[...], preferred_element_type=jnp.float32) + b1e
        h2 = jnp.maximum(h2, 0.0)
        out = jnp.dot(h2, w2e_ref[...], preferred_element_type=jnp.float32) + b2e
        o_ref[...] = out.astype(o_ref.dtype)                       # (rows, C)

    return kernel


# ---------------------------------------------------------------------------
# Tiling / VMEM planning
# ---------------------------------------------------------------------------
def _plan_tiling(num_windows: int, n_seq: int, target_rows: int = 2048):
    """Returns (WT, padded_num_windows).

    * ~target_rows tokens per grid step to amortize the ~0.35us/step pipeline
      overhead (activations stay tiny vs. VMEM on every generation).
    * pads the window count instead of degrading to WT=1 on awkward counts.
    * keeps the grid length even (>=2) when more than one step is needed so
      the two v7x TensorCores get balanced work under "parallel".
    """
    # Sublane rule: non-final blocks need (WT * n_seq) % 8 == 0.
    unit = 1 if n_seq % 8 == 0 else 8 // gcd(n_seq, 8)
    wt_cap = max(1, target_rows // max(n_seq, 1))
    wt_cap = max(unit, (wt_cap // unit) * unit)

    if num_windows <= wt_cap:
        return num_windows, num_windows          # single step, block == array

    steps = -(-num_windows // wt_cap)            # ceil div
    if steps % 2:
        steps += 1                               # even grid for 2-TC balance
    wt = -(-num_windows // steps)
    wt = max(unit, ((wt + unit - 1) // unit) * unit)
    return wt, steps * wt


def _vmem_limit_bytes() -> int:
    """Generation-appropriate VMEM limit: 3/4 of physical, capped at 100 MiB
    (-> ~96 MiB on v5e/v6e, ~48 MiB on v7x)."""
    try:
        cap = pltpu.get_tpu_info().vmem_capacity_bytes
    except Exception:
        cap = 64 * 1024 * 1024
    return int(min(cap * 3 // 4, 100 * 1024 * 1024))


# ---------------------------------------------------------------------------
# Weight packing (constant folding done once in the wrapper)
# ---------------------------------------------------------------------------
def _pack_weights(params, c: int, e: int):
    f32 = jnp.float32
    z_cc = jnp.zeros((c, c), f32)
    z_ce = jnp.zeros((c, e), f32)
    z_ee = jnp.zeros((e, e), f32)

    w1 = jnp.block([[params["w1x"], z_cc], [z_cc, params["w1y"]]])       # (2C,2C)
    w2 = jnp.block([[params["w2x"], z_ce], [z_ce, params["w2y"]]])       # (2C,2E)
    norm = 1.0 / sqrt(e)
    wqkv = jnp.block([[params["wq"] * norm, z_ee, z_ee],
                      [z_ee, params["wk"], params["wv"]]])               # (2E,3E)

    b1 = jnp.concatenate([params["b1x"], params["b1y"]], axis=1)         # (1,2C)
    b2 = jnp.concatenate([params["b2x"], params["b2y"]], axis=1)         # (1,2E)
    maxw = max(2 * c, 2 * e)
    rows = [b1, b2, params["b1e"], params["b2e"]]
    bias = jnp.concatenate(
        [jnp.pad(r, ((0, 0), (0, maxw - r.shape[1]))) for r in rows], axis=0)

    return w1, w2, wqkv, params["w1e"], params["w2e"], bias


# ---------------------------------------------------------------------------
# Wrapper
# ---------------------------------------------------------------------------
def local_guidance(x, y, params, patch_size: int):
    """x, y: (B, C, H, W). Returns (B, C, H, W)."""
    assert x.shape == y.shape, "x and y should have same shape"
    B, C, H, W = x.shape
    ws = patch_size
    assert H % ws == 0 and W % ws == 0

    n = ws * ws                              # tokens per window
    nw = B * (H // ws) * (W // ws)           # total number of windows
    E = params["wq"].shape[0]                # embed_dim

    # Window partition (layout plumbing kept in the wrapper); x and y are
    # channel-concatenated so the kernel gets ONE token-major slab (rows, 2C).
    # TODO(synk): an NHWC-native caller layout would make this a cheap reshape
    # instead of a materialized HBM transpose.
    xy = jnp.concatenate([x, y], axis=1)                     # (B, 2C, H, W)
    t = xy.reshape(B, 2 * C, H // ws, ws, W // ws, ws)
    t = jnp.transpose(t, (0, 2, 4, 3, 5, 1))                 # (B,Hn,Wn,ws,ws,2C)
    xy_tok = t.reshape(nw * n, 2 * C)

    WT, nw_pad = _plan_tiling(nw, n)
    if nw_pad != nw:
        xy_tok = jnp.pad(xy_tok, ((0, (nw_pad - nw) * n), (0, 0)))
    rows_blk = WT * n
    grid = (nw_pad // WT,)

    w1, w2, wqkv, w1e, w2e, bias = _pack_weights(params, C, E)
    weight_args = (w1, w2, wqkv, w1e, w2e, bias)
    full2d = lambda a: pl.BlockSpec(a.shape, lambda i: (0, 0))

    kernel = _make_local_guidance_kernel(WT, n, C, E)

    # NOTE: with C << 128 the (rows, C) in/out blocks are lane-sparse; a
    # (nw, n*C) packed layout would be lane-dense but costs an in-kernel XLU
    # relayout -- left as a profile-guided follow-up.  Likewise bf16 MXU
    # operands (v6e/v7x) are a follow-up that requires relaxing tolerances.
    out_tok = pl.pallas_call(
        kernel,
        out_shape=jax.ShapeDtypeStruct((nw_pad * n, C), x.dtype),
        grid_spec=pltpu.PrefetchScalarGridSpec(
            num_scalar_prefetch=0,
            grid=grid,
            in_specs=[pl.BlockSpec((rows_blk, 2 * C), lambda i: (i, 0))]
                     + [full2d(a) for a in weight_args],
            out_specs=pl.BlockSpec((rows_blk, C), lambda i: (i, 0)),
        ),
        compiler_params=pltpu.CompilerParams(
            dimension_semantics=("parallel",),
            vmem_limit_bytes=_vmem_limit_bytes(),
        ),
    )(xy_tok, *weight_args)

    # Drop padded windows and un-window back to (B, C, H, W).
    out_tok = out_tok[: nw * n]
    out = out_tok.reshape(B, H // ws, W // ws, ws, ws, C)
    out = jnp.transpose(out, (0, 5, 1, 3, 2, 4))
    return out.reshape(B, C, H, W)


# ---------------------------------------------------------------------------
# Pure-JAX reference (mirrors the PyTorch forward, dropout in eval mode)
# ---------------------------------------------------------------------------
def local_guidance_ref(x, y, params, patch_size: int):
    B, C, H, W = x.shape
    ws = patch_size
    n = ws * ws
    E = params["wq"].shape[0]

    def window(t):
        t = t.reshape(B, C, H // ws, ws, W // ws, ws)
        t = jnp.transpose(t, (0, 2, 4, 3, 5, 1))
        return t.reshape(-1, n, C)

    def mlp(h, w1, b1, w2, b2):
        h = jnp.maximum(h @ w1 + b1, 0.0)
        return h @ w2 + b2

    xp = window(x)
    yp = window(y)
    xe = mlp(xp, params["w1x"], params["b1x"], params["w2x"], params["b2x"])
    ye = mlp(yp, params["w1y"], params["b1y"], params["w2y"], params["b2y"])

    q = xe @ params["wq"]
    k = ye @ params["wk"]
    v = ye @ params["wv"]
    dist = jnp.einsum("bnk,bmk->bnm", q, k) / sqrt(E)
    dist = jax.nn.softmax(dist, axis=-1)
    attn = xe + jnp.einsum("bnm,bmv->bnv", dist, v)

    out = mlp(attn, params["w1e"], params["b1e"], params["w2e"], params["b2e"])
    out = out.reshape(B, H // ws, W // ws, ws, ws, C)
    out = jnp.transpose(out, (0, 5, 1, 3, 2, 4))
    return out.reshape(B, C, H, W)


# ---------------------------------------------------------------------------
# Params (deterministic, PyTorch-style uniform init, weights pre-transposed)
# ---------------------------------------------------------------------------
def init_params(key, in_chans: int, embed_dim: int):
    def lin(k, fan_in, fan_out):
        bound = 1.0 / sqrt(fan_in)
        kw, kb = jax.random.split(k)
        w = jax.random.uniform(kw, (fan_in, fan_out), jnp.float32, -bound, bound)
        b = jax.random.uniform(kb, (1, fan_out), jnp.float32, -bound, bound)
        return w, b

    keys = jax.random.split(key, 9)
    p = {}
    # proj_x: Mlp(in_chans, hidden=in_chans, out=embed_dim)
    p["w1x"], p["b1x"] = lin(keys[0], in_chans, in_chans)
    p["w2x"], p["b2x"] = lin(keys[1], in_chans, embed_dim)
    # proj_y
    p["w1y"], p["b1y"] = lin(keys[2], in_chans, in_chans)
    p["w2y"], p["b2y"] = lin(keys[3], in_chans, embed_dim)
    # CrossAttention (no bias)
    bound = 1.0 / sqrt(embed_dim)
    p["wq"] = jax.random.uniform(keys[4], (embed_dim, embed_dim), jnp.float32, -bound, bound)
    p["wk"] = jax.random.uniform(keys[5], (embed_dim, embed_dim), jnp.float32, -bound, bound)
    p["wv"] = jax.random.uniform(keys[6], (embed_dim, embed_dim), jnp.float32, -bound, bound)
    # expand: Mlp(embed_dim, hidden=embed_dim, out=in_chans)
    p["w1e"], p["b1e"] = lin(keys[7], embed_dim, embed_dim)
    p["w2e"], p["b2e"] = lin(keys[8], embed_dim, in_chans)
    return p


if __name__ == "__main__":
    # Small deterministic example consistent with LocalGuidance's forward.
    B, C, H, W = 2, 4, 16, 16
    patch_size = 8
    embed_dim = 32

    key = jax.random.PRNGKey(0)
    kx, ky, kp = jax.random.split(key, 3)
    x = jax.random.normal(kx, (B, C, H, W), dtype=jnp.float32)
    y = jax.random.normal(ky, (B, C, H, W), dtype=jnp.float32)
    params = init_params(kp, C, embed_dim)

    # TODO(synk): nn.Dropout(0.2) inside Mlp is treated as identity (inference
    # mode); the stochastic training-time mask is not implemented in-kernel.

    out = local_guidance(x, y, params, patch_size)
    jax.block_until_ready(out)

    ref = local_guidance_ref(x, y, params, patch_size)
    assert out.shape == (B, C, H, W)
    assert jnp.allclose(out, ref, atol=5e-5, rtol=5e-5), "mismatch vs reference"

    print("KERNEL_OK")
</pallas_src>

<mosaic_0001>
module attributes {stable_mosaic.version = 11 : i64} {
  func.func @kernel(%arg0: i32, %arg1: memref<512x8xf32, #tpu.memory_space<vmem>>, %arg2: memref<8x8xf32, #tpu.memory_space<vmem>>, %arg3: memref<8x64xf32, #tpu.memory_space<vmem>>, %arg4: memref<64x96xf32, #tpu.memory_space<vmem>>, %arg5: memref<32x32xf32, #tpu.memory_space<vmem>>, %arg6: memref<32x4xf32, #tpu.memory_space<vmem>>, %arg7: memref<4x64xf32, #tpu.memory_space<vmem>>, %arg8: memref<512x4xf32, #tpu.memory_space<vmem>>) attributes {dimension_semantics = [#tpu.dimension_semantics<parallel>], iteration_bounds = array<i64: 1>, scalar_prefetch = 0 : i64, scratch_operands = 0 : i64, tpu.core_type = #tpu.core_type<tc>, window_params = [{transform_indices = @transform_0, window_bounds = array<i64: 512, 8>}, {pipeline_mode = #tpu.pipeline_mode<synchronous>, transform_indices = @transform_1, window_bounds = array<i64: 8, 8>}, {pipeline_mode = #tpu.pipeline_mode<synchronous>, transform_indices = @transform_2, window_bounds = array<i64: 8, 64>}, {pipeline_mode = #tpu.pipeline_mode<synchronous>, transform_indices = @transform_3, window_bounds = array<i64: 64, 96>}, {pipeline_mode = #tpu.pipeline_mode<synchronous>, transform_indices = @transform_4, window_bounds = array<i64: 32, 32>}, {pipeline_mode = #tpu.pipeline_mode<synchronous>, transform_indices = @transform_5, window_bounds = array<i64: 32, 4>}, {pipeline_mode = #tpu.pipeline_mode<synchronous>, transform_indices = @transform_6, window_bounds = array<i64: 4, 64>}, {transform_indices = @transform_7, window_bounds = array<i64: 512, 4>}]} {
    %c0 = arith.constant 0 : index
    %c0_0 = arith.constant 0 : index
    %0 = vector.load %arg1[%c0, %c0_0] : memref<512x8xf32, #tpu.memory_space<vmem>>, vector<512x8xf32>
    %c0_1 = arith.constant 0 : index
    %c0_2 = arith.constant 0 : index
    %1 = vector.load %arg7[%c0_1, %c0_2] : memref<4x64xf32, #tpu.memory_space<vmem>>, vector<1x8xf32>
    %c1 = arith.constant 1 : index
    %c0_3 = arith.constant 0 : index
    %2 = vector.load %arg7[%c1, %c0_3] : memref<4x64xf32, #tpu.memory_space<vmem>>, vector<1x64xf32>
    %c2 = arith.constant 2 : index
    %c0_4 = arith.constant 0 : index
    %3 = vector.load %arg7[%c2, %c0_4] : memref<4x64xf32, #tpu.memory_space<vmem>>, vector<1x32xf32>
    %c3 = arith.constant 3 : index
    %c0_5 = arith.constant 0 : index
    %4 = vector.load %arg7[%c3, %c0_5] : memref<4x64xf32, #tpu.memory_space<vmem>>, vector<1x4xf32>
    %c0_6 = arith.constant 0 : index
    %c0_7 = arith.constant 0 : index
    %5 = vector.load %arg2[%c0_6, %c0_7] : memref<8x8xf32, #tpu.memory_space<vmem>>, vector<8x8xf32>
    %cst = arith.constant dense<0.000000e+00> : vector<512x8xf32>
    %6 = tpu.matmul %0, %5, %cst {dimension_numbers = #tpu.dot_dimension_numbers<[1], [0], [0], [1], [0, 0, 1, 1], [], []>} : vector<512x8xf32>, vector<8x8xf32>, vector<512x8xf32> -> vector<512x8xf32>
    %7 = vector.broadcast %1 : vector<1x8xf32> to vector<512x8xf32>
    %8 = arith.addf %6, %7 : vector<512x8xf32>
    %cst_8 = arith.constant 0.000000e+00 : f32
    %9 = vector.broadcast %cst_8 : f32 to vector<512x8xf32>
    %10 = arith.maximumf %8, %9 : vector<512x8xf32>
    %c0_9 = arith.constant 0 : index
    %c0_10 = arith.constant 0 : index
    %11 = vector.load %arg3[%c0_9, %c0_10] : memref<8x64xf32, #tpu.memory_space<vmem>>, vector<8x64xf32>
    %cst_11 = arith.constant dense<0.000000e+00> : vector<512x64xf32>
    %12 = tpu.matmul %10, %11, %cst_11 {dimension_numbers = #tpu.dot_dimension_numbers<[1], [0], [0], [1], [0, 0, 1, 1], [], []>} : vector<512x8xf32>, vector<8x64xf32>, vector<512x64xf32> -> vector<512x64xf32>
    %13 = vector.broadcast %2 : vector<1x64xf32> to vector<512x64xf32>
    %14 = arith.addf %12, %13 : vector<512x64xf32>
    %c0_12 = arith.constant 0 : index
    %c0_13 = arith.constant 0 : index
    %15 = vector.load %arg4[%c0_12, %c0_13] : memref<64x96xf32, #tpu.memory_space<vmem>>, vector<64x96xf32>
    %cst_14 = arith.constant dense<0.000000e+00> : vector<512x96xf32>
    %16 = tpu.matmul %14, %15, %cst_14 {dimension_numbers = #tpu.dot_dimension_numbers<[1], [0], [0], [1], [0, 0, 1, 1], [], []>} : vector<512x64xf32>, vector<64x96xf32>, vector<512x96xf32> -> vector<512x96xf32>
    %17 = vector.extract_strided_slice %16 {offsets = [0, 0], sizes = [512, 32], strides = [1, 1]} : vector<512x96xf32> to vector<512x32xf32>
    %18 = vector.shape_cast %17 : vector<512x32xf32> to vector<8x64x32xf32>
    %19 = vector.extract_strided_slice %16 {offsets = [0, 32], sizes = [512, 32], strides = [1, 1]} : vector<512x96xf32> to vector<512x32xf32>
    %20 = vector.shape_cast %19 : vector<512x32xf32> to vector<8x64x32xf32>
    %21 = vector.extract_strided_slice %16 {offsets = [0, 64], sizes = [512, 32], strides = [1, 1]} : vector<512x96xf32> to vector<512x32xf32>
    %22 = vector.shape_cast %21 : vector<512x32xf32> to vector<8x64x32xf32>
    %cst_15 = arith.constant dense<0.000000e+00> : vector<8x64x64xf32>
    %23 = tpu.matmul %18, %20, %cst_15 {dimension_numbers = #tpu.dot_dimension_numbers<[2], [2], [1], [1], [0, 0, 0, 1, 1, 1], [0], [0]>} : vector<8x64x32xf32>, vector<8x64x32xf32>, vector<8x64x64xf32> -> vector<8x64x64xf32>
    %cst_16 = arith.constant dense<0xFF800000> : vector<8x64xf32>
    %24 = vector.multi_reduction <maximumf>, %23, %cst_16 [2] : vector<8x64x64xf32> to vector<8x64xf32>
    %25 = vector.shape_cast %24 : vector<8x64xf32> to vector<8x64x1xf32>
    %26 = vector.broadcast %25 : vector<8x64x1xf32> to vector<8x64x64xf32>
    %27 = arith.subf %23, %26 : vector<8x64x64xf32>
    %28 = math.exp %27 : vector<8x64x64xf32>
    %cst_17 = arith.constant dense<0.000000e+00> : vector<8x64xf32>
    %29 = vector.multi_reduction <add>, %28, %cst_17 [2] : vector<8x64x64xf32> to vector<8x64xf32>
    %30 = vector.shape_cast %29 : vector<8x64xf32> to vector<8x64x1xf32>
    %cst_18 = arith.constant dense<0.000000e+00> : vector<8x64x32xf32>
    %31 = tpu.matmul %28, %22, %cst_18 {dimension_numbers = #tpu.dot_dimension_numbers<[2], [1], [1], [2], [0, 0, 0, 1, 1, 2], [0], [0]>} : vector<8x64x64xf32>, vector<8x64x32xf32>, vector<8x64x32xf32> -> vector<8x64x32xf32>
    %32 = vector.extract_strided_slice %14 {offsets = [0, 0], sizes = [512, 32], strides = [1, 1]} : vector<512x64xf32> to vector<512x32xf32>
    %33 = vector.shape_cast %32 : vector<512x32xf32> to vector<8x64x32xf32>
    %34 = vector.broadcast %30 : vector<8x64x1xf32> to vector<8x64x32xf32>
    %35 = arith.divf %31, %34 : vector<8x64x32xf32>
    %36 = arith.addf %33, %35 : vector<8x64x32xf32>
    %37 = vector.shape_cast %36 : vector<8x64x32xf32> to vector<512x32xf32>
    %c0_19 = arith.constant 0 : index
    %c0_20 = arith.constant 0 : index
    %38 = vector.load %arg5[%c0_19, %c0_20] : memref<32x32xf32, #tpu.memory_space<vmem>>, vector<32x32xf32>
    %cst_21 = arith.constant dense<0.000000e+00> : vector<512x32xf32>
    %39 = tpu.matmul %37, %38, %cst_21 {dimension_numbers = #tpu.dot_dimension_numbers<[1], [0], [0], [1], [0, 0, 1, 1], [], []>} : vector<512x32xf32>, vector<32x32xf32>, vector<512x32xf32> -> vector<512x32xf32>
    %40 = vector.broadcast %3 : vector<1x32xf32> to vector<512x32xf32>
    %41 = arith.addf %39, %40 : vector<512x32xf32>
    %cst_22 = arith.constant 0.000000e+00 : f32
    %42 = vector.broadcast %cst_22 : f32 to vector<512x32xf32>
    %43 = arith.maximumf %41, %42 : vector<512x32xf32>
    %c0_23 = arith.constant 0 : index
    %c0_24 = arith.constant 0 : index
    %44 = vector.load %arg6[%c0_23, %c0_24] : memref<32x4xf32, #tpu.memory_space<vmem>>, vector<32x4xf32>
    %cst_25 = arith.constant dense<0.000000e+00> : vector<512x4xf32>
    %45 = tpu.matmul %43, %44, %cst_25 {dimension_numbers = #tpu.dot_dimension_numbers<[1], [0], [0], [1], [0, 0, 1, 1], [], []>} : vector<512x32xf32>, vector<32x4xf32>, vector<512x4xf32> -> vector<512x4xf32>
    %46 = vector.broadcast %4 : vector<1x4xf32> to vector<512x4xf32>
    %47 = arith.addf %45, %46 : vector<512x4xf32>
    %c0_26 = arith.constant 0 : index
    %c0_27 = arith.constant 0 : index
    %48 = vector.load %arg8[%c0_26, %c0_27] : memref<512x4xf32, #tpu.memory_space<vmem>>, vector<512x4xf32>
    tpu.vector_store %arg8[%c0_26, %c0_27], %47 {strides = array<i32>} : memref<512x4xf32, #tpu.memory_space<vmem>>, vector<512x4xf32>,
    return
  }
  func.func @transform_0(%arg0: i32) -> (i32, i32) {
    %c0_i32 = arith.constant 0 : i32
    %c0_i32_0 = arith.constant 0 : i32
    return %arg0, %c0_i32 : i32, i32
  }
  func.func @transform_1(%arg0: i32) -> (i32, i32) {
    %c0_i32 = arith.constant 0 : i32
    %c0_i32_0 = arith.constant 0 : i32
    %c0_i32_1 = arith.constant 0 : i32
    return %c0_i32, %c0_i32_0 : i32, i32
  }
  func.func @transform_2(%arg0: i32) -> (i32, i32) {
    %c0_i32 = arith.constant 0 : i32
    %c0_i32_0 = arith.constant 0 : i32
    %c0_i32_1 = arith.constant 0 : i32
    return %c0_i32, %c0_i32_0 : i32, i32
  }
  func.func @transform_3(%arg0: i32) -> (i32, i32) {
    %c0_i32 = arith.constant 0 : i32
    %c0_i32_0 = arith.constant 0 : i32
    %c0_i32_1 = arith.constant 0 : i32
    return %c0_i32, %c0_i32_0 : i32, i32
  }
  func.func @transform_4(%arg0: i32) -> (i32, i32) {
    %c0_i32 = arith.constant 0 : i32
    %c0_i32_0 = arith.constant 0 : i32
    %c0_i32_1 = arith.constant 0 : i32
    return %c0_i32, %c0_i32_0 : i32, i32
  }
  func.func @transform_5(%arg0: i32) -> (i32, i32) {
    %c0_i32 = arith.constant 0 : i32
    %c0_i32_0 = arith.constant 0 : i32
    %c0_i32_1 = arith.constant 0 : i32
    return %c0_i32, %c0_i32_0 : i32, i32
  }
  func.func @transform_6(%arg0: i32) -> (i32, i32) {
    %c0_i32 = arith.constant 0 : i32
    %c0_i32_0 = arith.constant 0 : i32
    %c0_i32_1 = arith.constant 0 : i32
    return %c0_i32, %c0_i32_0 : i32, i32
  }
  func.func @transform_7(%arg0: i32) -> (i32, i32) {
    %c0_i32 = arith.constant 0 : i32
    %c0_i32_0 = arith.constant 0 : i32
    return %arg0, %c0_i32 : i32, i32
  }
}

</mosaic_0001>

<bundles_post_ra>
// kernel: tpu_custom_call.1
= control target key start
LH: loop header
LB: loop body
LE: loop exit
PB: predicated region body
PF: predicated region fallthrough
CT: control target
= control target key end

     0   :  { %vm99_vm0 = vcmask 64512   ;;  %vm1331_vm1 = vcmask 523264   ;;  %vm1933_vm2 = vcmask 261120   ;;  %s9497_s28 = smov 96   ;;  %s9498_s29 = smov 64   ;;  %vm6424_vm4 = vcmask 31744   ;;  %s12411_s1 = inlined_call_operand.vmem [shape: f32[8,8], index: 1, kind: input, shape index: {}]   ;;  %s12412_s0 = inlined_call_operand.vmem [shape: f32[512,8], index: 0, kind: input, shape index: {}]   ;;  %s12413_s2 = inlined_call_operand.vmem [shape: f32[8,64], index: 2, kind: input, shape index: {}]   ;;  %s12414_s6 = inlined_call_operand.vmem [shape: f32[4,64], index: 6, kind: input, shape index: {}]   ;;  %s12415_s3 = inlined_call_operand.vmem [shape: f32[64,96], index: 3, kind: input, shape index: {}]   ;;  %s12416_s4 = inlined_call_operand.vmem [shape: f32[32,32], index: 4, kind: input, shape index: {}]   ;;  %s12417_s5 = inlined_call_operand.vmem [shape: f32[32,4], index: 5, kind: input, shape index: {}]   ;;  %s12418_s7 = inlined_call_operand.vmem [shape: f32[512,4], index: 7, kind: output, shape index: {}]  }
   0x1   :  { %v94_v0 = vld [vmem:[%s12411_s1] sm:$0xff]  ;;  %v27_v2 = vld [vmem:[%s12412_s0 + $0x8] sm:$0xff]  ;;  %v28_v3 = vld [vmem:[%s12412_s0 + $0x10] sm:$0xff] }
   0x2   :  { %v26_v1 = vld [vmem:[%s12412_s0] sm:$0xff]  ;;  %7603 = vmatprep.subr.mxu0 %v94_v0  ;;  %v29_v4 = vld [vmem:[%s12412_s0 + $0x18] sm:$0xff]  ;;  %v31_v6 = vld [vmem:[%s12412_s0 + $0x28] sm:$0xff] }
   0x3   :  { %7605 = vmatprep.mubr.msk.f32.mxu0 %vm99_vm0, %v26_v1  ;;  %7604 = vmatpush3.msra.mxu0 %v94_v0  ;;  %v30_v5 = vld [vmem:[%s12412_s0 + $0x20] sm:$0xff]  ;;  %v32_v7 = vld [vmem:[%s12412_s0 + $0x30] sm:$0xff]  ;;  %v33_v8 = vld [vmem:[%s12412_s0 + $0x38] sm:$0xff] }
   0x4   :  { %7606 = vmatmul.mubr.msk.f32.vlgmr.msra.gmra.mrb[0].mxu0 %vm99_vm0, %v27_v2  ;;  %v34_v9 = vld [vmem:[%s12412_s0 + $0x40] sm:$0xff]  ;;  %v35_v10 = vld [vmem:[%s12412_s0 + $0x48] sm:$0xff]  ;;  %v36_v11 = vld [vmem:[%s12412_s0 + $0x50] sm:$0xff] }
   0x5   :  { %7608 = vmatprep.mubr.msk.f32.mxu0 %vm99_vm0, %v28_v3  ;;  %v37_v12 = vld [vmem:[%s12412_s0 + $0x58] sm:$0xff]  ;;  %v38_v13 = vld [vmem:[%s12412_s0 + $0x60] sm:$0xff]  ;;  %v39_v14 = vld [vmem:[%s12412_s0 + $0x68] sm:$0xff] }
   0x6   :  { %v40_v15 = vld [vmem:[%s12412_s0 + $0x70] sm:$0xff]  ;;  %v41_v16 = vld [vmem:[%s12412_s0 + $0x78] sm:$0xff]  ;;  %v42_v17 = vld [vmem:[%s12412_s0 + $0x80] sm:$0xff] }
   0x7   :  { %v43_v18 = vld [vmem:[%s12412_s0 + $0x88] sm:$0xff]  ;;  %v44_v19 = vld [vmem:[%s12412_s0 + $0x90] sm:$0xff]  ;;  %v45_v20 = vld [vmem:[%s12412_s0 + $0x98] sm:$0xff] }
   0x8   :  { %7609 = vmatmul.mubr.msk.f32.gmra.mrb[2].mxu0 %vm99_vm0, %v29_v4  ;;  %v46_v21 = vld [vmem:[%s12412_s0 + $0xa0] sm:$0xff]  ;;  %v47_v22 = vld [vmem:[%s12412_s0 + $0xa8] sm:$0xff]  ;;  %v48_v23 = vld [vmem:[%s12412_s0 + $0xb0] sm:$0xff] }
   0x9   :  { %7611 = vmatprep.mubr.msk.f32.mxu0 %vm99_vm0, %v30_v5  ;;  %v49_v24 = vld [vmem:[%s12412_s0 + $0xb8] sm:$0xff]  ;;  %v50_v25 = vld [vmem:[%s12412_s0 + $0xc0] sm:$0xff]  ;;  %v51_v26 = vld [vmem:[%s12412_s0 + $0xc8] sm:$0xff] }
   0xa   :  { %v52_v27 = vld [vmem:[%s12412_s0 + $0xd0] sm:$0xff]  ;;  %v53_v28 = vld [vmem:[%s12412_s0 + $0xd8] sm:$0xff]  ;;  %v54_v29 = vld [vmem:[%s12412_s0 + $0xe0] sm:$0xff] }
   0xb   :  { %v55_v30 = vld [vmem:[%s12412_s0 + $0xe8] sm:$0xff]  ;;  %v56_v31 = vld [vmem:[%s12412_s0 + $0xf0] sm:$0xff]  ;;  %v57_v32 = vld [vmem:[%s12412_s0 + $0xf8] sm:$0xff] }
   0xc   :  { %7612 = vmatmul.mubr.msk.f32.gmra.mrb[4].mxu0 %vm99_vm0, %v31_v6  ;;  %v58_v33 = vld [vmem:[%s12412_s0 + $0x100] sm:$0xff]  ;;  %v59_v34 = vld [vmem:[%s12412_s0 + $0x108] sm:$0xff]  ;;  %v60_v35 = vld [vmem:[%s12412_s0 + $0x110] sm:$0xff] }
   0xd   :  { %7614 = vmatprep.mubr.msk.f32.mxu0 %vm99_vm0, %v32_v7  ;;  %v61_v36 = vld [vmem:[%s12412_s0 + $0x118] sm:$0xff]  ;;  %v62_v37 = vld [vmem:[%s12412_s0 + $0x120] sm:$0xff]  ;;  %v63_v38 = vld [vmem:[%s12412_s0 + $0x128] sm:$0xff] }
   0xe   :  { %v64_v39 = vld [vmem:[%s12412_s0 + $0x130] sm:$0xff]  ;;  %v65_v40 = vld [vmem:[%s12412_s0 + $0x138] sm:$0xff]  ;;  %v66_v41 = vld [vmem:[%s12412_s0 + $0x140] sm:$0xff] }
   0xf   :  { %v67_v42 = vld [vmem:[%s12412_s0 + $0x148] sm:$0xff]  ;;  %v68_v43 = vld [vmem:[%s12412_s0 + $0x150] sm:$0xff]  ;;  %v69_v44 = vld [vmem:[%s12412_s0 + $0x158] sm:$0xff] }
  0x10   :  { %7615 = vmatmul.mubr.msk.f32.gmra.mrb[6].mxu0 %vm99_vm0, %v33_v8  ;;  %v70_v45 = vld [vmem:[%s12412_s0 + $0x160] sm:$0xff]  ;;  %v71_v46 = vld [vmem:[%s12412_s0 + $0x168] sm:$0xff]  ;;  %v72_v47 = vld [vmem:[%s12412_s0 + $0x170] sm:$0xff] }
  0x11   :  { %7617 = vmatprep.mubr.msk.f32.mxu0 %vm99_vm0, %v34_v9  ;;  %v741_v48 = vld [vmem:[%s12413_s2] sm:$0xff]  ;;  %v73_v49 = vld [vmem:[%s12412_s0 + $0x178] sm:$0xff]  ;;  %v75_v51 = vld [vmem:[%s12412_s0 + $0x188] sm:$0xff] }
  0x12   :  { %7701 = vmatprep.subr.mxu1 %v741_v48  ;;  %v74_v50 = vld [vmem:[%s12412_s0 + $0x180] sm:$0xff]  ;;  %v76_v52 = vld [vmem:[%s12412_s0 + $0x190] sm:$0xff]  ;;  %v77_v53 = vld [vmem:[%s12412_s0 + $0x198] sm:$0xff] }
  0x13   :  { %7702 = vmatpush3.msra.mxu1 %v741_v48  ;;  %v78_v54 = vld [vmem:[%s12412_s0 + $0x1a0] sm:$0xff]  ;;  %v79_v55 = vld [vmem:[%s12412_s0 + $0x1a8] sm:$0xff]  ;;  %v80_v56 = vld [vmem:[%s12412_s0 + $0x1b0] sm:$0xff] }
  0x14   :  { %7618 = vmatmul.mubr.msk.f32.gmra.mrb[8].mxu0 %vm99_vm0, %v35_v10  ;;  %v81_v57 = vld [vmem:[%s12412_s0 + $0x1b8] sm:$0xff]  ;;  %v82_v58 = vld [vmem:[%s12412_s0 + $0x1c0] sm:$0xff]  ;;  %v83_v59 = vld [vmem:[%s12412_s0 + $0x1c8] sm:$0xff] }
  0x15   :  { %7620 = vmatprep.mubr.msk.f32.mxu0 %vm99_vm0, %v36_v11  ;;  %v84_v60 = vld [vmem:[%s12412_s0 + $0x1d0] sm:$0xff]  ;;  %v85_v61 = vld [vmem:[%s12412_s0 + $0x1d8] sm:$0xff]  ;;  %v86_v62 = vld [vmem:[%s12412_s0 + $0x1e0] sm:$0xff] }
  0x16   :  { %v87_v63 = vld [vmem:[%s12412_s0 + $0x1e8] sm:$0xff]  ;;  %v88_v0 = vld [vmem:[%s12412_s0 + $0x1f0] sm:$0xff]  ;;  %v89_v1 = vld [vmem:[%s12412_s0 + $0x1f8] sm:$0xff] }
  0x17   :  { %v9804_v2 = vld [vmem:[%s12414_s6] ss:$0 sm:$0xff]  ;;  %v1324_v10 = vld [vmem:[%s12415_s3 + $0x8] sm:$0xff]  ;;  %v1325_v11 = vld [vmem:[%s12415_s3 + $0x10] sm:$0xff] }
  0x18   :  { %7621 = vmatmul.mubr.msk.f32.gmra.mrb[10].mxu0 %vm99_vm0, %v37_v12  ;;  %v1323_v9 = vld [vmem:[%s12415_s3] sm:$0xff]  ;;  %vm10581_vm3 = vmpackc.low %vm1933_vm2, %vm1933_vm2 }
  0x19   :  { %7623 = vmatprep.mubr.msk.f32.mxu0 %vm99_vm0, %v38_v13 }
  0x1c   :  { %7624 = vmatmul.mubr.msk.f32.gmra.mrb[12].mxu0 %vm99_vm0, %v39_v14 }
  0x1d   :  { %7626 = vmatprep.mubr.msk.f32.mxu0 %vm99_vm0, %v40_v15  ;;  %v8567_v15 = vpack.c.bf16 %v1324_v10, %v1323_v9 }
  0x1f   :  { %8568 = vmatprep.subr.bf16.mxu0 %v8567_v15 }
  0x20   :  { %7627 = vmatmul.mubr.msk.f32.gmra.mrb[14].mxu0 %vm99_vm0, %v41_v16  ;;  %v1326_v16 = vld [vmem:[%s12415_s3 + $0x18] sm:$0xff] }
  0x21   :  { %7629 = vmatprep.mubr.msk.f32.mxu0 %vm99_vm0, %v42_v17  ;;  %8570 = vmatpush3.bf16.msra.mxu0 %v8567_v15 }
  0x24   :  { %7630 = vmatmul.mubr.msk.f32.gmra.mrb[16].mxu0 %vm99_vm0, %v43_v18  ;;  %v8571_v18 = vpack.c.bf16 %v1326_v16, %v1325_v11 }
  0x25   :  { %7632 = vmatprep.mubr.msk.f32.mxu0 %vm99_vm0, %v44_v19  ;;  %v1327_v19 = vld [vmem:[%s12415_s3 + $0x20] sm:$0xff] }
  0x26   :  { %8572 = vmatprep.subr.bf16.mxu0 %v8571_v18 }
  0x27   :  { %8574 = vmatpush3.bf16.msra.mxu0 %v8571_v18 }
  0x28   :  { %7633 = vmatmul.mubr.msk.f32.gmra.mrb[18].mxu0 %vm99_vm0, %v45_v20  ;;  %v1328_v20 = vld [vmem:[%s12415_s3 + $0x28] sm:$0xff] }
  0x29   :  { %7635 = vmatprep.mubr.msk.f32.mxu0 %vm99_vm0, %v46_v21 }
  0x2c   :  { %7636 = vmatmul.mubr.msk.f32.gmra.mrb[20].mxu0 %vm99_vm0, %v47_v22 }
  0x2d   :  { %7638 = vmatprep.mubr.msk.f32.mxu0 %vm99_vm0, %v48_v23 }
  0x30   :  { %7639 = vmatmul.mubr.msk.f32.gmra.mrb[22].mxu0 %vm99_vm0, %v49_v24 }
  0x31   :  { %7641 = vmatprep.mubr.msk.f32.mxu0 %vm99_vm0, %v50_v25 }
  0x34   :  { %7642 = vmatmul.mubr.msk.f32.gmra.mrb[24].mxu0 %vm99_vm0, %v51_v26  ;;  %v8575_v26 = vpack.c.bf16 %v1328_v20, %v1327_v19 }
  0x35   :  { %7644 = vmatprep.mubr.msk.f32.mxu0 %vm99_vm0, %v52_v27 }
  0x36   :  { %8576 = vmatprep.subr.bf16.mxu0 %v8575_v26 }
  0x37   :  { %8578 = vmatpush3.bf16.msra.mxu0 %v8575_v26 }
  0x38   :  { %7645 = vmatmul.mubr.msk.f32.gmra.mrb[26].mxu0 %vm99_vm0, %v53_v28 }
  0x39   :  { %7647 = vmatprep.mubr.msk.f32.mxu0 %vm99_vm0, %v54_v29 }
  0x3c   :  { %7648 = vmatmul.mubr.msk.f32.gmra.mrb[28].mxu0 %vm99_vm0, %v55_v30 }
  0x3d   :  { %7650 = vmatprep.mubr.msk.f32.mxu0 %vm99_vm0, %v56_v31 }
  0x40   :  { %7651 = vmatmul.mubr.msk.f32.gmra.mrb[30].mxu0 %vm99_vm0, %v57_v32 }
  0x41   :  { %7653 = vmatprep.mubr.msk.f32.mxu0 %vm99_vm0, %v58_v33 }
  0x44   :  { %7654 = vmatmul.mubr.msk.f32.gmra.mrb[32].mxu0 %vm99_vm0, %v59_v34 }
  0x45   :  { %7656 = vmatprep.mubr.msk.f32.mxu0 %vm99_vm0, %v60_v35 }
  0x48   :  { %7657 = vmatmul.mubr.msk.f32.gmra.mrb[34].mxu0 %vm99_vm0, %v61_v36 }
  0x49   :  { %7659 = vmatprep.mubr.msk.f32.mxu0 %vm99_vm0, %v62_v37 }
  0x4c   :  { %7660 = vmatmul.mubr.msk.f32.gmra.mrb[36].mxu0 %vm99_vm0, %v63_v38 }
  0x4d   :  { %7662 = vmatprep.mubr.msk.f32.mxu0 %vm99_vm0, %v64_v39 }
  0x50   :  { %7663 = vmatmul.mubr.msk.f32.gmra.mrb[38].mxu0 %vm99_vm0, %v65_v40 }
  0x51   :  { %7665 = vmatprep.mubr.msk.f32.mxu0 %vm99_vm0, %v66_v41 }
  0x54   :  { %7666 = vmatmul.mubr.msk.f32.gmra.mrb[40].mxu0 %vm99_vm0, %v67_v42 }
  0x55   :  { %7668 = vmatprep.mubr.msk.f32.mxu0 %vm99_vm0, %v68_v43 }
  0x58   :  { %7669 = vmatmul.mubr.msk.f32.gmra.mrb[42].mxu0 %vm99_vm0, %v69_v44 }
  0x59   :  { %7671 = vmatprep.mubr.msk.f32.mxu0 %vm99_vm0, %v70_v45 }
  0x5c   :  { %7672 = vmatmul.mubr.msk.f32.gmra.mrb[44].mxu0 %vm99_vm0, %v71_v46 }
  0x5d   :  { %7674 = vmatprep.mubr.msk.f32.mxu0 %vm99_vm0, %v72_v47 }
  0x60   :  { %7675 = vmatmul.mubr.msk.f32.gmra.mrb[46].mxu0 %vm99_vm0, %v73_v49 }
  0x61   :  { %7677 = vmatprep.mubr.msk.f32.mxu0 %vm99_vm0, %v74_v50 }
  0x64   :  { %7678 = vmatmul.mubr.msk.f32.gmra.mrb[48].mxu0 %vm99_vm0, %v75_v51 }
  0x65   :  { %7680 = vmatprep.mubr.msk.f32.mxu0 %vm99_vm0, %v76_v52 }
  0x68   :  { %7681 = vmatmul.mubr.msk.f32.gmra.mrb[50].mxu0 %vm99_vm0, %v77_v53 }
  0x69   :  { %7683 = vmatprep.mubr.msk.f32.mxu0 %vm99_vm0, %v78_v54 }
  0x6c   :  { %7684 = vmatmul.mubr.msk.f32.gmra.mrb[52].mxu0 %vm99_vm0, %v79_v55 }
  0x6d   :  { %7686 = vmatprep.mubr.msk.f32.mxu0 %vm99_vm0, %v80_v56 }
  0x70   :  { %7687 = vmatmul.mubr.msk.f32.gmra.mrb[54].mxu0 %vm99_vm0, %v81_v57 }
  0x71   :  { %7689 = vmatprep.mubr.msk.f32.mxu0 %vm99_vm0, %v82_v58 }
  0x74   :  { %7690 = vmatmul.mubr.msk.f32.gmra.mrb[56].mxu0 %vm99_vm0, %v83_v59 }
  0x75   :  { %7692 = vmatprep.mubr.msk.f32.mxu0 %vm99_vm0, %v84_v60 }
  0x78   :  { %7693 = vmatmul.mubr.msk.f32.gmra.mrb[58].mxu0 %vm99_vm0, %v85_v61 }
  0x79   :  { %7695 = vmatprep.mubr.msk.f32.mxu0 %vm99_vm0, %v86_v62 }
  0x7c   :  { %7696 = vmatmul.mubr.msk.f32.gmra.mrb[60].mxu0 %vm99_vm0, %v87_v63 }
  0x7d   :  { %7698 = vmatprep.mubr.msk.f32.mxu0 %vm99_vm0, %v88_v0 }
  0x80   :  { %7699 = vmatmul.mubr.msk.f32.gmra.mrb[62].mxu0 %vm99_vm0, %v89_v1 }
  0xd7   :  { %v7607_v3 = vpop.f32.mrb[0].mxu0 }
  0xd8   :  { %v364_v4 = vadd.f32 %v7607_v3, %v9804_v2  ;;  %v358_v5 = vpop.f32.mrb[1].mxu0 }
  0xd9   :  { %v359_v6 = vadd.f32 %v9804_v2, %v358_v5 }
  0xda   :  { %v678_v12 = vmax.f32 %v364_v4, 0.0 }
  0xdb   :  { %v677_v7 = vmax.f32 %v359_v6, 0.0  ;;  %v7610_v8 = vpop.f32.mrb[2].mxu0 }
  0xdc   :  { %v374_v13 = vadd.f32 %v7610_v8, %v9804_v2  ;;  %v368_v14 = vpop.f32.mrb[3].mxu0 }
  0xdd   :  { %v369_v17 = vadd.f32 %v9804_v2, %v368_v14  ;;  %7703 = vmatprep.mubr.msk.f32.mxu1 %vm99_vm0, %v677_v7 }
  0xde   :  { %v680_v21 = vmax.f32 %v374_v13, 0.0  ;;  %7704 = vmatmul.mubr.msk.f32.vlgmr.msra.gmra.mrb[0].mxu1 %vm99_vm0, %v678_v12 }
  0xdf   :  { %v679_v22 = vmax.f32 %v369_v17, 0.0  ;;  %v7613_v23 = vpop.f32.mrb[4].mxu0 }
  0xe0   :  { %v384_v24 = vadd.f32 %v7613_v23, %v9804_v2  ;;  %v378_v25 = vpop.f32.mrb[5].mxu0 }
  0xe1   :  { %v379_v27 = vadd.f32 %v9804_v2, %v378_v25  ;;  %7706 = vmatprep.mubr.msk.f32.mxu1 %vm99_vm0, %v679_v22 }
  0xe2   :  { %v682_v28 = vmax.f32 %v384_v24, 0.0  ;;  %7707 = vmatmul.mubr.msk.f32.gmra.mrb[2].mxu1 %vm99_vm0, %v680_v21 }
  0xe3   :  { %v681_v29 = vmax.f32 %v379_v27, 0.0  ;;  %v7616_v30 = vpop.f32.mrb[6].mxu0 }
  0xe4   :  { %v394_v31 = vadd.f32 %v7616_v30, %v9804_v2  ;;  %v388_v32 = vpop.f32.mrb[7].mxu0 }
  0xe5   :  { %v389_v33 = vadd.f32 %v9804_v2, %v388_v32  ;;  %7709 = vmatprep.mubr.msk.f32.mxu1 %vm99_vm0, %v681_v29 }
  0xe6   :  { %v684_v34 = vmax.f32 %v394_v31, 0.0  ;;  %7710 = vmatmul.mubr.msk.f32.gmra.mrb[4].mxu1 %vm99_vm0, %v682_v28 }
  0xe7   :  { %v683_v35 = vmax.f32 %v389_v33, 0.0  ;;  %v7619_v36 = vpop.f32.mrb[8].mxu0 }
  0xe8   :  { %v404_v37 = vadd.f32 %v7619_v36, %v9804_v2  ;;  %v398_v38 = vpop.f32.mrb[9].mxu0 }
  0xe9   :  { %v399_v39 = vadd.f32 %v9804_v2, %v398_v38  ;;  %7712 = vmatprep.mubr.msk.f32.mxu1 %vm99_vm0, %v683_v35 }
  0xea   :  { %v686_v40 = vmax.f32 %v404_v37, 0.0  ;;  %7713 = vmatmul.mubr.msk.f32.gmra.mrb[6].mxu1 %vm99_vm0, %v684_v34 }
  0xeb   :  { %v685_v41 = vmax.f32 %v399_v39, 0.0  ;;  %v7622_v42 = vpop.f32.mrb[10].mxu0 }
  0xec   :  { %v414_v43 = vadd.f32 %v7622_v42, %v9804_v2  ;;  %v408_v44 = vpop.f32.mrb[11].mxu0 }
  0xed   :  { %v409_v45 = vadd.f32 %v9804_v2, %v408_v44  ;;  %7715 = vmatprep.mubr.msk.f32.mxu1 %vm99_vm0, %v685_v41 }
  0xee   :  { %v688_v46 = vmax.f32 %v414_v43, 0.0  ;;  %7716 = vmatmul.mubr.msk.f32.gmra.mrb[8].mxu1 %vm99_vm0, %v686_v40 }
  0xef   :  { %v687_v47 = vmax.f32 %v409_v45, 0.0  ;;  %v7625_v48 = vpop.f32.mrb[12].mxu0 }
  0xf0   :  { %v424_v49 = vadd.f32 %v7625_v48, %v9804_v2  ;;  %v418_v50 = vpop.f32.mrb[13].mxu0 }
  0xf1   :  { %v419_v51 = vadd.f32 %v9804_v2, %v418_v50  ;;  %7718 = vmatprep.mubr.msk.f32.mxu1 %vm99_vm0, %v687_v47 }
  0xf2   :  { %v690_v52 = vmax.f32 %v424_v49, 0.0  ;;  %7719 = vmatmul.mubr.msk.f32.gmra.mrb[10].mxu1 %vm99_vm0, %v688_v46 }
  0xf3   :  { %v689_v53 = vmax.f32 %v419_v51, 0.0  ;;  %v7628_v54 = vpop.f32.mrb[14].mxu0 }
  0xf4   :  { %v434_v55 = vadd.f32 %v7628_v54, %v9804_v2  ;;  %v428_v56 = vpop.f32.mrb[15].mxu0 }
  0xf5   :  { %v429_v57 = vadd.f32 %v9804_v2, %v428_v56  ;;  %7721 = vmatprep.mubr.msk.f32.mxu1 %vm99_vm0, %v689_v53 }
  0xf6   :  { %v692_v58 = vmax.f32 %v434_v55, 0.0  ;;  %7722 = vmatmul.mubr.msk.f32.gmra.mrb[12].mxu1 %vm99_vm0, %v690_v52 }
  0xf7   :  { %v691_v59 = vmax.f32 %v429_v57, 0.0  ;;  %v7631_v60 = vpop.f32.mrb[16].mxu0 }
  0xf8   :  { %v444_v61 = vadd.f32 %v7631_v60, %v9804_v2  ;;  %v438_v62 = vpop.f32.mrb[17].mxu0 }
  0xf9   :  { %v439_v63 = vadd.f32 %v9804_v2, %v438_v62  ;;  %7724 = vmatprep.mubr.msk.f32.mxu1 %vm99_vm0, %v691_v59 }
  0xfa   :  { %v694_v0 = vmax.f32 %v444_v61, 0.0  ;;  %7725 = vmatmul.mubr.msk.f32.gmra.mrb[14].mxu1 %vm99_vm0, %v692_v58 }
  0xfb   :  { %v693_v1 = vmax.f32 %v439_v63, 0.0  ;;  %v7634_v3 = vpop.f32.mrb[18].mxu0 }
  0xfc   :  { %v454_v4 = vadd.f32 %v7634_v3, %v9804_v2  ;;  %v448_v5 = vpop.f32.mrb[19].mxu0 }
  0xfd   :  { %v449_v6 = vadd.f32 %v9804_v2, %v448_v5  ;;  %7727 = vmatprep.mubr.msk.f32.mxu1 %vm99_vm0, %v693_v1 }
  0xfe   :  { %v696_v7 = vmax.f32 %v454_v4, 0.0  ;;  %7728 = vmatmul.mubr.msk.f32.gmra.mrb[16].mxu1 %vm99_vm0, %v694_v0 }
  0xff   :  { %v695_v8 = vmax.f32 %v449_v6, 0.0  ;;  %v7637_v9 = vpop.f32.mrb[20].mxu0 }
 0x100   :  { %v464_v10 = vadd.f32 %v7637_v9, %v9804_v2  ;;  %v458_v11 = vpop.f32.mrb[21].mxu0 }
 0x101   :  { %v459_v12 = vadd.f32 %v9804_v2, %v458_v11  ;;  %7730 = vmatprep.mubr.msk.f32.mxu1 %vm99_vm0, %v695_v8 }
 0x102   :  { %v698_v13 = vmax.f32 %v464_v10, 0.0  ;;  %7731 = vmatmul.mubr.msk.f32.gmra.mrb[18].mxu1 %vm99_vm0, %v696_v7 }
 0x103   :  { %v697_v14 = vmax.f32 %v459_v12, 0.0  ;;  %v7640_v15 = vpop.f32.mrb[22].mxu0 }
 0x104   :  { %v474_v16 = vadd.f32 %v7640_v15, %v9804_v2  ;;  %v468_v17 = vpop.f32.mrb[23].mxu0 }
 0x105   :  { %v469_v18 = vadd.f32 %v9804_v2, %v468_v17  ;;  %7733 = vmatprep.mubr.msk.f32.mxu1 %vm99_vm0, %v697_v14 }
 0x106   :  { %v700_v19 = vmax.f32 %v474_v16, 0.0  ;;  %7734 = vmatmul.mubr.msk.f32.gmra.mrb[20].mxu1 %vm99_vm0, %v698_v13 }
 0x107   :  { %v699_v20 = vmax.f32 %v469_v18, 0.0  ;;  %v7643_v21 = vpop.f32.mrb[24].mxu0 }
 0x108   :  { %v484_v22 = vadd.f32 %v7643_v21, %v9804_v2  ;;  %v478_v23 = vpop.f32.mrb[25].mxu0 }
 0x109   :  { %v479_v24 = vadd.f32 %v9804_v2, %v478_v23  ;;  %7736 = vmatprep.mubr.msk.f32.mxu1 %vm99_vm0, %v699_v20  ;;  %v1330_v20 = vld [vmem:[%s12415_s3 + $0x38] sm:$0xff] }
 0x10a   :  { %v702_v25 = vmax.f32 %v484_v22, 0.0  ;;  %7737 = vmatmul.mubr.msk.f32.gmra.mrb[22].mxu1 %vm99_vm0, %v700_v19  ;;  %v1329_v19 = vld [vmem:[%s12415_s3 + $0x30] sm:$0xff] }
 0x10b   :  { %v701_v26 = vmax.f32 %v479_v24, 0.0  ;;  %v7646_v27 = vpop.f32.mrb[26].mxu0  ;;  %v8579_v23 = vpack.c.bf16 %v1330_v20, %v1329_v19 }
 0x10c   :  { %v494_v28 = vadd.f32 %v7646_v27, %v9804_v2  ;;  %v488_v29 = vpop.f32.mrb[27].mxu0 }
 0x10d   :  { %v489_v30 = vadd.f32 %v9804_v2, %v488_v29  ;;  %7739 = vmatprep.mubr.msk.f32.mxu1 %vm99_vm0, %v701_v26  ;;  %8580 = vmatprep.subr.bf16.mxu0 %v8579_v23 }
 0x10e   :  { %v704_v31 = vmax.f32 %v494_v28, 0.0  ;;  %7740 = vmatmul.mubr.msk.f32.gmra.mrb[24].mxu1 %vm99_vm0, %v702_v25  ;;  %8582 = vmatpush3.bf16.msra.mxu0 %v8579_v23 }
 0x10f   :  { %v703_v32 = vmax.f32 %v489_v30, 0.0  ;;  %v7649_v33 = vpop.f32.mrb[28].mxu0 }
 0x110   :  { %v504_v34 = vadd.f32 %v7649_v33, %v9804_v2  ;;  %v498_v35 = vpop.f32.mrb[29].mxu0 }
 0x111   :  { %v499_v36 = vadd.f32 %v9804_v2, %v498_v35  ;;  %7742 = vmatprep.mubr.msk.f32.mxu1 %vm99_vm0, %v703_v32 }
 0x112   :  { %v706_v37 = vmax.f32 %v504_v34, 0.0  ;;  %7743 = vmatmul.mubr.msk.f32.gmra.mrb[26].mxu1 %vm99_vm0, %v704_v31 }
 0x113   :  { %v705_v38 = vmax.f32 %v499_v36, 0.0  ;;  %v7652_v39 = vpop.f32.mrb[30].mxu0 }
 0x114   :  { %v514_v40 = vadd.f32 %v7652_v39, %v9804_v2  ;;  %v508_v41 = vpop.f32.mrb[31].mxu0 }
 0x115   :  { %v509_v42 = vadd.f32 %v9804_v2, %v508_v41  ;;  %7745 = vmatprep.mubr.msk.f32.mxu1 %vm99_vm0, %v705_v38 }
 0x116   :  { %v708_v43 = vmax.f32 %v514_v40, 0.0  ;;  %7746 = vmatmul.mubr.msk.f32.gmra.mrb[28].mxu1 %vm99_vm0, %v706_v37 }
 0x117   :  { %v707_v44 = vmax.f32 %v509_v42, 0.0  ;;  %v7655_v45 = vpop.f32.mrb[32].mxu0 }
 0x118   :  { %v524_v46 = vadd.f32 %v7655_v45, %v9804_v2  ;;  %v518_v47 = vpop.f32.mrb[33].mxu0 }
 0x119   :  { %v519_v48 = vadd.f32 %v9804_v2, %v518_v47  ;;  %7748 = vmatprep.mubr.msk.f32.mxu1 %vm99_vm0, %v707_v44 }
 0x11a   :  { %v710_v49 = vmax.f32 %v524_v46, 0.0  ;;  %7749 = vmatmul.mubr.msk.f32.gmra.mrb[30].mxu1 %vm99_vm0, %v708_v43 }
 0x11b   :  { %v709_v50 = vmax.f32 %v519_v48, 0.0  ;;  %v7658_v51 = vpop.f32.mrb[34].mxu0 }
 0x11c   :  { %v534_v52 = vadd.f32 %v7658_v51, %v9804_v2  ;;  %v528_v53 = vpop.f32.mrb[35].mxu0 }
 0x11d   :  { %v529_v54 = vadd.f32 %v9804_v2, %v528_v53  ;;  %7751 = vmatprep.mubr.msk.f32.mxu1 %vm99_vm0, %v709_v50 }
 0x11e   :  { %v712_v55 = vmax.f32 %v534_v52, 0.0  ;;  %7752 = vmatmul.mubr.msk.f32.gmra.mrb[32].mxu1 %vm99_vm0, %v710_v49 }
 0x11f   :  { %v711_v56 = vmax.f32 %v529_v54, 0.0  ;;  %v7661_v57 = vpop.f32.mrb[36].mxu0 }
 0x120   :  { %v544_v58 = vadd.f32 %v7661_v57, %v9804_v2  ;;  %v538_v59 = vpop.f32.mrb[37].mxu0 }
 0x121   :  { %v539_v60 = vadd.f32 %v9804_v2, %v538_v59  ;;  %7754 = vmatprep.mubr.msk.f32.mxu1 %vm99_vm0, %v711_v56 }
 0x122   :  { %v714_v61 = vmax.f32 %v544_v58, 0.0  ;;  %7755 = vmatmul.mubr.msk.f32.gmra.mrb[34].mxu1 %vm99_vm0, %v712_v55 }
 0x123   :  { %v713_v62 = vmax.f32 %v539_v60, 0.0  ;;  %v7664_v63 = vpop.f32.mrb[38].mxu0 }
 0x124   :  { %v554_v0 = vadd.f32 %v7664_v63, %v9804_v2  ;;  %v548_v1 = vpop.f32.mrb[39].mxu0 }
 0x125   :  { %v549_v3 = vadd.f32 %v9804_v2, %v548_v1  ;;  %7757 = vmatprep.mubr.msk.f32.mxu1 %vm99_vm0, %v713_v62 }
 0x126   :  { %v716_v4 = vmax.f32 %v554_v0, 0.0  ;;  %7758 = vmatmul.mubr.msk.f32.gmra.mrb[36].mxu1 %vm99_vm0, %v714_v61 }
 0x127   :  { %v715_v5 = vmax.f32 %v549_v3, 0.0  ;;  %v7667_v6 = vpop.f32.mrb[40].mxu0 }
 0x128   :  { %v564_v7 = vadd.f32 %v7667_v6, %v9804_v2  ;;  %v558_v8 = vpop.f32.mrb[41].mxu0 }
 0x129   :  { %v559_v9 = vadd.f32 %v9804_v2, %v558_v8  ;;  %7760 = vmatprep.mubr.msk.f32.mxu1 %vm99_vm0, %v715_v5 }
 0x12a   :  { %v718_v10 = vmax.f32 %v564_v7, 0.0  ;;  %7761 = vmatmul.mubr.msk.f32.gmra.mrb[38].mxu1 %vm99_vm0, %v716_v4 }
 0x12b   :  { %v717_v11 = vmax.f32 %v559_v9, 0.0  ;;  %v7670_v12 = vpop.f32.mrb[42].mxu0 }
 0x12c   :  { %v574_v13 = vadd.f32 %v7670_v12, %v9804_v2  ;;  %v568_v14 = vpop.f32.mrb[43].mxu0 }
 0x12d   :  { %v569_v15 = vadd.f32 %v9804_v2, %v568_v14  ;;  %7763 = vmatprep.mubr.msk.f32.mxu1 %vm99_vm0, %v717_v11 }
 0x12e   :  { %v720_v16 = vmax.f32 %v574_v13, 0.0  ;;  %7764 = vmatmul.mubr.msk.f32.gmra.mrb[40].mxu1 %vm99_vm0, %v718_v10 }
 0x12f   :  { %v719_v17 = vmax.f32 %v569_v15, 0.0  ;;  %v7673_v18 = vpop.f32.mrb[44].mxu0 }
 0x130   :  { %v584_v21 = vadd.f32 %v7673_v18, %v9804_v2  ;;  %v578_v22 = vpop.f32.mrb[45].mxu0  ;;  %v9961_v18 = vld [vmem:[%s12414_s6 + $0x1] ss:$0 sm:$0xff] }
 0x131   :  { %v579_v24 = vadd.f32 %v9804_v2, %v578_v22  ;;  %7766 = vmatprep.mubr.msk.f32.mxu1 %vm99_vm0, %v719_v17 }
 0x132   :  { %v722_v25 = vmax.f32 %v584_v21, 0.0  ;;  %7767 = vmatmul.mubr.msk.f32.gmra.mrb[42].mxu1 %vm99_vm0, %v720_v16 }
 0x133   :  { %v721_v26 = vmax.f32 %v579_v24, 0.0  ;;  %v7676_v27 = vpop.f32.mrb[46].mxu0 }
 0x134   :  { %v594_v28 = vadd.f32 %v7676_v27, %v9804_v2  ;;  %v588_v29 = vpop.f32.mrb[47].mxu0 }
 0x135   :  { %v589_v30 = vadd.f32 %v9804_v2, %v588_v29  ;;  %7769 = vmatprep.mubr.msk.f32.mxu1 %vm99_vm0, %v721_v26 }
 0x136   :  { %v724_v31 = vmax.f32 %v594_v28, 0.0  ;;  %7770 = vmatmul.mubr.msk.f32.gmra.mrb[44].mxu1 %vm99_vm0, %v722_v25 }
 0x137   :  { %v723_v32 = vmax.f32 %v589_v30, 0.0  ;;  %v7679_v33 = vpop.f32.mrb[48].mxu0 }
 0x138   :  { %v604_v34 = vadd.f32 %v7679_v33, %v9804_v2  ;;  %v598_v35 = vpop.f32.mrb[49].mxu0 }
 0x139   :  { %v599_v36 = vadd.f32 %v9804_v2, %v598_v35  ;;  %7772 = vmatprep.mubr.msk.f32.mxu1 %vm99_vm0, %v723_v32 }
 0x13a   :  { %v726_v37 = vmax.f32 %v604_v34, 0.0  ;;  %7773 = vmatmul.mubr.msk.f32.gmra.mrb[46].mxu1 %vm99_vm0, %v724_v31 }
 0x13b   :  { %v725_v38 = vmax.f32 %v599_v36, 0.0  ;;  %v7682_v39 = vpop.f32.mrb[50].mxu0 }
 0x13c   :  { %v614_v40 = vadd.f32 %v7682_v39, %v9804_v2  ;;  %v608_v41 = vpop.f32.mrb[51].mxu0 }
 0x13d   :  { %v609_v42 = vadd.f32 %v9804_v2, %v608_v41  ;;  %7775 = vmatprep.mubr.msk.f32.mxu1 %vm99_vm0, %v725_v38 }
 0x13e   :  { %v728_v43 = vmax.f32 %v614_v40, 0.0  ;;  %7776 = vmatmul.mubr.msk.f32.gmra.mrb[48].mxu1 %vm99_vm0, %v726_v37 }
 0x13f   :  { %v727_v44 = vmax.f32 %v609_v42, 0.0  ;;  %v7685_v45 = vpop.f32.mrb[52].mxu0 }
 0x140   :  { %v624_v46 = vadd.f32 %v7685_v45, %v9804_v2  ;;  %v618_v47 = vpop.f32.mrb[53].mxu0 }
 0x141   :  { %v619_v48 = vadd.f32 %v9804_v2, %v618_v47  ;;  %7778 = vmatprep.mubr.msk.f32.mxu1 %vm99_vm0, %v727_v44 }
 0x142   :  { %v730_v49 = vmax.f32 %v624_v46, 0.0  ;;  %7779 = vmatmul.mubr.msk.f32.gmra.mrb[50].mxu1 %vm99_vm0, %v728_v43 }
 0x143   :  { %v729_v50 = vmax.f32 %v619_v48, 0.0  ;;  %v7688_v51 = vpop.f32.mrb[54].mxu0 }
 0x144   :  { %v634_v52 = vadd.f32 %v7688_v51, %v9804_v2  ;;  %v628_v53 = vpop.f32.mrb[55].mxu0 }
 0x145   :  { %v629_v54 = vadd.f32 %v9804_v2, %v628_v53  ;;  %7781 = vmatprep.mubr.msk.f32.mxu1 %vm99_vm0, %v729_v50 }
 0x146   :  { %v732_v55 = vmax.f32 %v634_v52, 0.0  ;;  %7782 = vmatmul.mubr.msk.f32.gmra.mrb[52].mxu1 %vm99_vm0, %v730_v49 }
 0x147   :  { %v731_v56 = vmax.f32 %v629_v54, 0.0  ;;  %v7691_v57 = vpop.f32.mrb[56].mxu0 }
 0x148   :  { %v644_v58 = vadd.f32 %v7691_v57, %v9804_v2  ;;  %v638_v59 = vpop.f32.mrb[57].mxu0 }
 0x149   :  { %v639_v60 = vadd.f32 %v9804_v2, %v638_v59  ;;  %7784 = vmatprep.mubr.msk.f32.mxu1 %vm99_vm0, %v731_v56 }
 0x14a   :  { %v734_v61 = vmax.f32 %v644_v58, 0.0  ;;  %7785 = vmatmul.mubr.msk.f32.gmra.mrb[54].mxu1 %vm99_vm0, %v732_v55 }
 0x14b   :  { %v733_v62 = vmax.f32 %v639_v60, 0.0  ;;  %v7694_v63 = vpop.f32.mrb[58].mxu0 }
 0x14c   :  { %v654_v0 = vadd.f32 %v7694_v63, %v9804_v2  ;;  %v648_v1 = vpop.f32.mrb[59].mxu0 }
 0x14d   :  { %v649_v3 = vadd.f32 %v9804_v2, %v648_v1  ;;  %7787 = vmatprep.mubr.msk.f32.mxu1 %vm99_vm0, %v733_v62 }
 0x14e   :  { %v736_v4 = vmax.f32 %v654_v0, 0.0  ;;  %7788 = vmatmul.mubr.msk.f32.gmra.mrb[56].mxu1 %vm99_vm0, %v734_v61 }
 0x14f   :  { %v735_v5 = vmax.f32 %v649_v3, 0.0  ;;  %v7697_v6 = vpop.f32.mrb[60].mxu0 }
 0x150   :  { %v664_v7 = vadd.f32 %v7697_v6, %v9804_v2  ;;  %v658_v8 = vpop.f32.mrb[61].mxu0 }
 0x151   :  { %v659_v9 = vadd.f32 %v9804_v2, %v658_v8  ;;  %7790 = vmatprep.mubr.msk.f32.mxu1 %vm99_vm0, %v735_v5 }
 0x152   :  { %v738_v10 = vmax.f32 %v664_v7, 0.0  ;;  %7791 = vmatmul.mubr.msk.f32.gmra.mrb[58].mxu1 %vm99_vm0, %v736_v4 }
 0x153   :  { %v737_v11 = vmax.f32 %v659_v9, 0.0  ;;  %v7700_v12 = vpop.f32.mrb[62].mxu0 }
 0x154   :  { %v674_v13 = vadd.f32 %v7700_v12, %v9804_v2  ;;  %v668_v14 = vpop.f32.mrb[63].mxu0 }
 0x155   :  { %v669_v15 = vadd.f32 %v9804_v2, %v668_v14  ;;  %7793 = vmatprep.mubr.msk.f32.mxu1 %vm99_vm0, %v737_v11 }
 0x156   :  { %v740_v16 = vmax.f32 %v674_v13, 0.0  ;;  %7794 = vmatmul.mubr.msk.f32.gmra.mrb[60].mxu1 %vm99_vm0, %v738_v10 }
 0x157   :  { %v739_v17 = vmax.f32 %v669_v15, 0.0 }
 0x159   :  { %7796 = vmatprep.mubr.msk.f32.mxu1 %vm99_vm0, %v739_v17 }
 0x15a   :  { %7797 = vmatmul.mubr.msk.f32.gmra.mrb[62].mxu1 %vm99_vm0, %v740_v16 }
 0x1b1   :  { %v7705_v19 = vpop.f32.mrb[0].mxu1 }
 0x1b2   :  { %v1004_v20 = vpop.f32.mrb[1].mxu1  ;;  %v9967_v21 = vadd.f32 %v7705_v19, %v9961_v18 }
 0x1b3   :  { %v9964_v2 = vadd.f32 %v9961_v18, %v1004_v20 }
 0x1b4   :  { %12558 = vst [vmem:[#allocation3_spill] sm:$0xff] %v9967_v21 }
 0x1b5   :  { %12557 = vst [vmem:[#allocation2_spill] sm:$0xff] %v9964_v2  ;;  %v7708_v22 = vpop.f32.mrb[2].mxu1  ;;  %7815 = vmatprep.mubr.msk.f32.mxu0 %vm1331_vm1, %v9964_v2 }
 0x1b6   :  { %v9972_v23 = vadd.f32 %v7708_v22, %v9961_v18  ;;  %v1014_v24 = vpop.f32.mrb[3].mxu1  ;;  %7816 = vmatmul.mubr.msk.f32.vlgmr.msra.gmra.mrb[64].mxu0 %vm1331_vm1, %v9967_v21 }
 0x1b7   :  { %v9977_v25 = vadd.f32 %v9961_v18, %v1014_v24 }
 0x1b8   :  { %12559 = vst [vmem:[#allocation4_spill] sm:$0xff] %v9972_v23 }
 0x1b9   :  { %12560 = vst [vmem:[#allocation5_spill] sm:$0xff] %v9977_v25  ;;  %v7711_v26 = vpop.f32.mrb[4].mxu1  ;;  %7818 = vmatprep.mubr.msk.f32.mxu0 %vm1331_vm1, %v9977_v25 }
 0x1ba   :  { %v9982_v27 = vadd.f32 %v7711_v26, %v9961_v18  ;;  %v1024_v28 = vpop.f32.mrb[5].mxu1  ;;  %7819 = vmatmul.mubr.msk.f32.gmra.mrb[66].mxu0 %vm1331_vm1, %v9972_v23 }
 0x1bb   :  { %v9987_v29 = vadd.f32 %v9961_v18, %v1024_v28 }
 0x1bc   :  { %12561 = vst [vmem:[#allocation6_spill] sm:$0xff] %v9982_v27 }
 0x1bd   :  { %12562 = vst [vmem:[#allocation7_spill] sm:$0xff] %v9987_v29  ;;  %v7714_v30 = vpop.f32.mrb[6].mxu1  ;;  %7821 = vmatprep.mubr.msk.f32.mxu0 %vm1331_vm1, %v9987_v29 }
 0x1be   :  { %v9992_v31 = vadd.f32 %v7714_v30, %v9961_v18  ;;  %v1034_v32 = vpop.f32.mrb[7].mxu1  ;;  %7822 = vmatmul.mubr.msk.f32.gmra.mrb[68].mxu0 %vm1331_vm1, %v9982_v27 }
 0x1bf   :  { %v9997_v33 = vadd.f32 %v9961_v18, %v1034_v32 }
 0x1c0   :  { %12563 = vst [vmem:[#allocation8_spill] sm:$0xff] %v9992_v31 }
 0x1c1   :  { %12564 = vst [vmem:[#allocation9_spill] sm:$0xff] %v9997_v33  ;;  %v7717_v34 = vpop.f32.mrb[8].mxu1  ;;  %7824 = vmatprep.mubr.msk.f32.mxu0 %vm1331_vm1, %v9997_v33 }
 0x1c2   :  { %v10002_v35 = vadd.f32 %v7717_v34, %v9961_v18  ;;  %v1044_v36 = vpop.f32.mrb[9].mxu1  ;;  %7825 = vmatmul.mubr.msk.f32.gmra.mrb[70].mxu0 %vm1331_vm1, %v9992_v31 }
 0x1c3   :  { %v10007_v37 = vadd.f32 %v9961_v18, %v1044_v36 }
 0x1c4   :  { %12565 = vst [vmem:[#allocation10_spill] sm:$0xff] %v10002_v35 }
 0x1c5   :  { %12566 = vst [vmem:[#allocation11_spill] sm:$0xff] %v10007_v37  ;;  %v7720_v38 = vpop.f32.mrb[10].mxu1  ;;  %7827 = vmatprep.mubr.msk.f32.mxu0 %vm1331_vm1, %v10007_v37 }
 0x1c6   :  { %v10012_v39 = vadd.f32 %v7720_v38, %v9961_v18  ;;  %v1054_v40 = vpop.f32.mrb[11].mxu1  ;;  %7828 = vmatmul.mubr.msk.f32.gmra.mrb[72].mxu0 %vm1331_vm1, %v10002_v35 }
 0x1c7   :  { %v10017_v41 = vadd.f32 %v9961_v18, %v1054_v40 }
 0x1c8   :  { %12567 = vst [vmem:[#allocation12_spill] sm:$0xff] %v10012_v39 }
 0x1c9   :  { %12568 = vst [vmem:[#allocation13_spill] sm:$0xff] %v10017_v41  ;;  %v7723_v42 = vpop.f32.mrb[12].mxu1  ;;  %7830 = vmatprep.mubr.msk.f32.mxu0 %vm1331_vm1, %v10017_v41 }
 0x1ca   :  { %v10022_v43 = vadd.f32 %v7723_v42, %v9961_v18  ;;  %v1064_v44 = vpop.f32.mrb[13].mxu1  ;;  %7831 = vmatmul.mubr.msk.f32.gmra.mrb[74].mxu0 %vm1331_vm1, %v10012_v39 }
 0x1cb   :  { %v10027_v45 = vadd.f32 %v9961_v18, %v1064_v44 }
 0x1cc   :  { %12569 = vst [vmem:[#allocation14_spill] sm:$0xff] %v10022_v43 }
 0x1cd   :  { %12570 = vst [vmem:[#allocation15_spill] sm:$0xff] %v10027_v45  ;;  %v7726_v46 = vpop.f32.mrb[14].mxu1  ;;  %7833 = vmatprep.mubr.msk.f32.mxu0 %vm1331_vm1, %v10027_v45 }
 0x1ce   :  { %v10032_v47 = vadd.f32 %v7726_v46, %v9961_v18  ;;  %v1074_v48 = vpop.f32.mrb[15].mxu1  ;;  %7834 = vmatmul.mubr.msk.f32.gmra.mrb[76].mxu0 %vm1331_vm1, %v10022_v43 }
 0x1cf   :  { %v10037_v49 = vadd.f32 %v9961_v18, %v1074_v48 }
 0x1d0   :  { %12571 = vst [vmem:[#allocation16_spill] sm:$0xff] %v10032_v47 }
 0x1d1   :  { %12572 = vst [vmem:[#allocation17_spill] sm:$0xff] %v10037_v49  ;;  %v7729_v50 = vpop.f32.mrb[16].mxu1  ;;  %7836 = vmatprep.mubr.msk.f32.mxu0 %vm1331_vm1, %v10037_v49 }
 0x1d2   :  { %v10042_v51 = vadd.f32 %v7729_v50, %v9961_v18  ;;  %v1084_v52 = vpop.f32.mrb[17].mxu1  ;;  %7837 = vmatmul.mubr.msk.f32.gmra.mrb[78].mxu0 %vm1331_vm1, %v10032_v47 }
 0x1d3   :  { %v10047_v53 = vadd.f32 %v9961_v18, %v1084_v52 }
 0x1d4   :  { %12573 = vst [vmem:[#allocation18_spill] sm:$0xff] %v10042_v51 }
 0x1d5   :  { %12574 = vst [vmem:[#allocation19_spill] sm:$0xff] %v10047_v53  ;;  %v7732_v54 = vpop.f32.mrb[18].mxu1  ;;  %7839 = vmatprep.mubr.msk.f32.mxu0 %vm1331_vm1, %v10047_v53 }
 0x1d6   :  { %v10052_v55 = vadd.f32 %v7732_v54, %v9961_v18  ;;  %v1094_v56 = vpop.f32.mrb[19].mxu1  ;;  %7840 = vmatmul.mubr.msk.f32.gmra.mrb[80].mxu0 %vm1331_vm1, %v10042_v51 }
 0x1d7   :  { %v10057_v57 = vadd.f32 %v9961_v18, %v1094_v56 }
 0x1d8   :  { %12575 = vst [vmem:[#allocation20_spill] sm:$0xff] %v10052_v55 }
 0x1d9   :  { %12576 = vst [vmem:[#allocation21_spill] sm:$0xff] %v10057_v57  ;;  %v7735_v58 = vpop.f32.mrb[20].mxu1  ;;  %7842 = vmatprep.mubr.msk.f32.mxu0 %vm1331_vm1, %v10057_v57 }
 0x1da   :  { %v10062_v59 = vadd.f32 %v7735_v58, %v9961_v18  ;;  %v1104_v60 = vpop.f32.mrb[21].mxu1  ;;  %7843 = vmatmul.mubr.msk.f32.gmra.mrb[82].mxu0 %vm1331_vm1, %v10052_v55 }
 0x1db   :  { %v10067_v61 = vadd.f32 %v9961_v18, %v1104_v60 }
 0x1dc   :  { %12577 = vst [vmem:[#allocation22_spill] sm:$0xff] %v10062_v59 }
 0x1dd   :  { %12578 = vst [vmem:[#allocation23_spill] sm:$0xff] %v10067_v61  ;;  %v7738_v62 = vpop.f32.mrb[22].mxu1  ;;  %7845 = vmatprep.mubr.msk.f32.mxu0 %vm1331_vm1, %v10067_v61 }
 0x1de   :  { %v10072_v63 = vadd.f32 %v7738_v62, %v9961_v18  ;;  %v1114_v0 = vpop.f32.mrb[23].mxu1  ;;  %7846 = vmatmul.mubr.msk.f32.gmra.mrb[84].mxu0 %vm1331_vm1, %v10062_v59 }
 0x1df   :  { %v10077_v1 = vadd.f32 %v9961_v18, %v1114_v0 }
 0x1e0   :  { %12579 = vst [vmem:[#allocation24_spill] sm:$0xff] %v10072_v63 }
 0x1e1   :  { %12580 = vst [vmem:[#allocation25_spill] sm:$0xff] %v10077_v1  ;;  %v7741_v3 = vpop.f32.mrb[24].mxu1  ;;  %7848 = vmatprep.mubr.msk.f32.mxu0 %vm1331_vm1, %v10077_v1 }
 0x1e2   :  { %v10082_v4 = vadd.f32 %v7741_v3, %v9961_v18  ;;  %v1124_v5 = vpop.f32.mrb[25].mxu1  ;;  %7849 = vmatmul.mubr.msk.f32.gmra.mrb[86].mxu0 %vm1331_vm1, %v10072_v63 }
 0x1e3   :  { %v10087_v6 = vadd.f32 %v9961_v18, %v1124_v5 }
 0x1e4   :  { %12581 = vst [vmem:[#allocation26_spill] sm:$0xff] %v10082_v4 }
 0x1e5   :  { %12582 = vst [vmem:[#allocation27_spill] sm:$0xff] %v10087_v6  ;;  %v7744_v7 = vpop.f32.mrb[26].mxu1  ;;  %7851 = vmatprep.mubr.msk.f32.mxu0 %vm1331_vm1, %v10087_v6 }
 0x1e6   :  { %v10092_v8 = vadd.f32 %v7744_v7, %v9961_v18  ;;  %v1134_v9 = vpop.f32.mrb[27].mxu1  ;;  %7852 = vmatmul.mubr.msk.f32.gmra.mrb[88].mxu0 %vm1331_vm1, %v10082_v4 }
 0x1e7   :  { %v10097_v10 = vadd.f32 %v9961_v18, %v1134_v9 }
 0x1e8   :  { %12583 = vst [vmem:[#allocation28_spill] sm:$0xff] %v10092_v8 }
 0x1e9   :  { %12584 = vst [vmem:[#allocation29_spill] sm:$0xff] %v10097_v10  ;;  %v7747_v11 = vpop.f32.mrb[28].mxu1  ;;  %7854 = vmatprep.mubr.msk.f32.mxu0 %vm1331_vm1, %v10097_v10 }
 0x1ea   :  { %v10102_v12 = vadd.f32 %v7747_v11, %v9961_v18  ;;  %v1144_v13 = vpop.f32.mrb[29].mxu1  ;;  %7855 = vmatmul.mubr.msk.f32.gmra.mrb[90].mxu0 %vm1331_vm1, %v10092_v8 }
 0x1eb   :  { %v10107_v14 = vadd.f32 %v9961_v18, %v1144_v13 }
 0x1ec   :  { %12585 = vst [vmem:[#allocation30_spill] sm:$0xff] %v10102_v12 }
 0x1ed   :  { %12586 = vst [vmem:[#allocation31_spill] sm:$0xff] %v10107_v14  ;;  %v7750_v15 = vpop.f32.mrb[30].mxu1  ;;  %7857 = vmatprep.mubr.msk.f32.mxu0 %vm1331_vm1, %v10107_v14 }
 0x1ee   :  { %v10112_v16 = vadd.f32 %v7750_v15, %v9961_v18  ;;  %v1154_v17 = vpop.f32.mrb[31].mxu1  ;;  %7858 = vmatmul.mubr.msk.f32.gmra.mrb[92].mxu0 %vm1331_vm1, %v10102_v12 }
 0x1ef   :  { %v10117_v19 = vadd.f32 %v9961_v18, %v1154_v17 }
 0x1f0   :  { %12587 = vst [vmem:[#allocation32_spill] sm:$0xff] %v10112_v16 }
 0x1f1   :  { %12588 = vst [vmem:[#allocation33_spill] sm:$0xff] %v10117_v19  ;;  %v7753_v20 = vpop.f32.mrb[32].mxu1  ;;  %7860 = vmatprep.mubr.msk.f32.mxu0 %vm1331_vm1, %v10117_v19 }
 0x1f2   :  { %v10122_v22 = vadd.f32 %v7753_v20, %v9961_v18  ;;  %v1164_v24 = vpop.f32.mrb[33].mxu1  ;;  %7861 = vmatmul.mubr.msk.f32.gmra.mrb[94].mxu0 %vm1331_vm1, %v10112_v16 }
 0x1f3   :  { %v10127_v26 = vadd.f32 %v9961_v18, %v1164_v24 }
 0x1f4   :  { %12589 = vst [vmem:[#allocation34_spill] sm:$0xff] %v10122_v22 }
 0x1f5   :  { %12590 = vst [vmem:[#allocation35_spill] sm:$0xff] %v10127_v26  ;;  %v7756_v28 = vpop.f32.mrb[34].mxu1  ;;  %7863 = vmatprep.mubr.msk.f32.mxu0 %vm1331_vm1, %v10127_v26 }
 0x1f6   :  { %v10132_v30 = vadd.f32 %v7756_v28, %v9961_v18  ;;  %v1174_v32 = vpop.f32.mrb[35].mxu1  ;;  %7864 = vmatmul.mubr.msk.f32.gmra.mrb[96].mxu0 %vm1331_vm1, %v10122_v22 }
 0x1f7   :  { %v10137_v34 = vadd.f32 %v9961_v18, %v1174_v32 }
 0x1f8   :  { %12591 = vst [vmem:[#allocation36_spill] sm:$0xff] %v10132_v30 }
 0x1f9   :  { %12592 = vst [vmem:[#allocation37_spill] sm:$0xff] %v10137_v34  ;;  %v7759_v36 = vpop.f32.mrb[36].mxu1  ;;  %7866 = vmatprep.mubr.msk.f32.mxu0 %vm1331_vm1, %v10137_v34 }
 0x1fa   :  { %v10142_v38 = vadd.f32 %v7759_v36, %v9961_v18  ;;  %v1184_v40 = vpop.f32.mrb[37].mxu1  ;;  %7867 = vmatmul.mubr.msk.f32.gmra.mrb[98].mxu0 %vm1331_vm1, %v10132_v30 }
 0x1fb   :  { %v10147_v42 = vadd.f32 %v9961_v18, %v1184_v40 }
 0x1fc   :  { %12593 = vst [vmem:[#allocation38_spill] sm:$0xff] %v10142_v38 }
 0x1fd   :  { %12594 = vst [vmem:[#allocation39_spill] sm:$0xff] %v10147_v42  ;;  %v7762_v44 = vpop.f32.mrb[38].mxu1  ;;  %7869 = vmatprep.mubr.msk.f32.mxu0 %vm1331_vm1, %v10147_v42 }
 0x1fe   :  { %v10152_v46 = vadd.f32 %v7762_v44, %v9961_v18  ;;  %v1194_v48 = vpop.f32.mrb[39].mxu1  ;;  %7870 = vmatmul.mubr.msk.f32.gmra.mrb[100].mxu0 %vm1331_vm1, %v10142_v38 }
 0x1ff   :  { %v10157_v50 = vadd.f32 %v9961_v18, %v1194_v48 }
 0x200   :  { %12595 = vst [vmem:[#allocation40_spill] sm:$0xff] %v10152_v46 }
 0x201   :  { %12596 = vst [vmem:[#allocation41_spill] sm:$0xff] %v10157_v50  ;;  %v7765_v52 = vpop.f32.mrb[40].mxu1  ;;  %7872 = vmatprep.mubr.msk.f32.mxu0 %vm1331_vm1, %v10157_v50 }
 0x202   :  { %v10162_v54 = vadd.f32 %v7765_v52, %v9961_v18  ;;  %v1204_v56 = vpop.f32.mrb[41].mxu1  ;;  %7873 = vmatmul.mubr.msk.f32.gmra.mrb[102].mxu0 %vm1331_vm1, %v10152_v46 }
 0x203   :  { %v10167_v58 = vadd.f32 %v9961_v18, %v1204_v56 }
 0x204   :  { %12597 = vst [vmem:[#allocation42_spill] sm:$0xff] %v10162_v54 }
 0x205   :  { %12598 = vst [vmem:[#allocation43_spill] sm:$0xff] %v10167_v58  ;;  %v7768_v60 = vpop.f32.mrb[42].mxu1  ;;  %7875 = vmatprep.mubr.msk.f32.mxu0 %vm1331_vm1, %v10167_v58 }
 0x206   :  { %v10172_v62 = vadd.f32 %v7768_v60, %v9961_v18  ;;  %v1214_v0 = vpop.f32.mrb[43].mxu1  ;;  %7876 = vmatmul.mubr.msk.f32.gmra.mrb[104].mxu0 %vm1331_vm1, %v10162_v54 }
 0x207   :  { %v10177_v3 = vadd.f32 %v9961_v18, %v1214_v0 }
 0x208   :  { %12599 = vst [vmem:[#allocation44_spill] sm:$0xff] %v10172_v62 }
 0x209   :  { %12600 = vst [vmem:[#allocation45_spill] sm:$0xff] %v10177_v3  ;;  %v7771_v5 = vpop.f32.mrb[44].mxu1  ;;  %7878 = vmatprep.mubr.msk.f32.mxu0 %vm1331_vm1, %v10177_v3 }
 0x20a   :  { %v10182_v7 = vadd.f32 %v7771_v5, %v9961_v18  ;;  %v1224_v9 = vpop.f32.mrb[45].mxu1  ;;  %7879 = vmatmul.mubr.msk.f32.gmra.mrb[106].mxu0 %vm1331_vm1, %v10172_v62 }
 0x20b   :  { %v10187_v11 = vadd.f32 %v9961_v18, %v1224_v9 }
 0x20c   :  { %12601 = vst [vmem:[#allocation46_spill] sm:$0xff] %v10182_v7 }
 0x20d   :  { %12602 = vst [vmem:[#allocation47_spill] sm:$0xff] %v10187_v11  ;;  %v7774_v13 = vpop.f32.mrb[46].mxu1  ;;  %7881 = vmatprep.mubr.msk.f32.mxu0 %vm1331_vm1, %v10187_v11 }
 0x20e   :  { %v10192_v15 = vadd.f32 %v7774_v13, %v9961_v18  ;;  %v1234_v17 = vpop.f32.mrb[47].mxu1  ;;  %7882 = vmatmul.mubr.msk.f32.gmra.mrb[108].mxu0 %vm1331_vm1, %v10182_v7 }
 0x20f   :  { %v10197_v20 = vadd.f32 %v9961_v18, %v1234_v17 }
 0x210   :  { %12603 = vst [vmem:[#allocation48_spill] sm:$0xff] %v10192_v15 }
 0x211   :  { %12604 = vst [vmem:[#allocation49_spill] sm:$0xff] %v10197_v20  ;;  %v7777_v24 = vpop.f32.mrb[48].mxu1  ;;  %7884 = vmatprep.mubr.msk.f32.mxu0 %vm1331_vm1, %v10197_v20 }
 0x212   :  { %v10202_v28 = vadd.f32 %v7777_v24, %v9961_v18  ;;  %v1244_v32 = vpop.f32.mrb[49].mxu1  ;;  %7885 = vmatmul.mubr.msk.f32.gmra.mrb[110].mxu0 %vm1331_vm1, %v10192_v15 }
 0x213   :  { %v10207_v36 = vadd.f32 %v9961_v18, %v1244_v32 }
 0x214   :  { %12605 = vst [vmem:[#allocation50_spill] sm:$0xff] %v10202_v28 }
 0x215   :  { %12606 = vst [vmem:[#allocation51_spill] sm:$0xff] %v10207_v36  ;;  %v7780_v40 = vpop.f32.mrb[50].mxu1  ;;  %7887 = vmatprep.mubr.msk.f32.mxu0 %vm1331_vm1, %v10207_v36 }
 0x216   :  { %v10212_v44 = vadd.f32 %v7780_v40, %v9961_v18  ;;  %v1254_v48 = vpop.f32.mrb[51].mxu1  ;;  %7888 = vmatmul.mubr.msk.f32.gmra.mrb[112].mxu0 %vm1331_vm1, %v10202_v28 }
 0x217   :  { %v10217_v52 = vadd.f32 %v9961_v18, %v1254_v48 }
 0x218   :  { %12607 = vst [vmem:[#allocation52_spill] sm:$0xff] %v10212_v44 }
 0x219   :  { %12608 = vst [vmem:[#allocation53_spill] sm:$0xff] %v10217_v52  ;;  %v7783_v56 = vpop.f32.mrb[52].mxu1  ;;  %7890 = vmatprep.mubr.msk.f32.mxu0 %vm1331_vm1, %v10217_v52 }
 0x21a   :  { %v10222_v60 = vadd.f32 %v7783_v56, %v9961_v18  ;;  %v1264_v0 = vpop.f32.mrb[53].mxu1  ;;  %7891 = vmatmul.mubr.msk.f32.gmra.mrb[114].mxu0 %vm1331_vm1, %v10212_v44 }
 0x21b   :  { %v10227_v5 = vadd.f32 %v9961_v18, %v1264_v0 }
 0x21c   :  { %12609 = vst [vmem:[#allocation54_spill] sm:$0xff] %v10222_v60 }
 0x21d   :  { %12610 = vst [vmem:[#allocation55_spill] sm:$0xff] %v10227_v5  ;;  %v7786_v9 = vpop.f32.mrb[54].mxu1  ;;  %7893 = vmatprep.mubr.msk.f32.mxu0 %vm1331_vm1, %v10227_v5 }
 0x21e   :  { %v10232_v13 = vadd.f32 %v7786_v9, %v9961_v18  ;;  %v1274_v17 = vpop.f32.mrb[55].mxu1  ;;  %7894 = vmatmul.mubr.msk.f32.gmra.mrb[116].mxu0 %vm1331_vm1, %v10222_v60 }
 0x21f   :  { %v10237_v24 = vadd.f32 %v9961_v18, %v1274_v17 }
 0x220   :  { %12611 = vst [vmem:[#allocation56_spill] sm:$0xff] %v10232_v13 }
 0x221   :  { %12612 = vst [vmem:[#allocation57_spill] sm:$0xff] %v10237_v24  ;;  %v7789_v32 = vpop.f32.mrb[56].mxu1  ;;  %7896 = vmatprep.mubr.msk.f32.mxu0 %vm1331_vm1, %v10237_v24 }
 0x222   :  { %v10242_v40 = vadd.f32 %v7789_v32, %v9961_v18  ;;  %v1284_v48 = vpop.f32.mrb[57].mxu1  ;;  %7897 = vmatmul.mubr.msk.f32.gmra.mrb[118].mxu0 %vm1331_vm1, %v10232_v13 }
 0x223   :  { %v10247_v56 = vadd.f32 %v9961_v18, %v1284_v48 }
 0x224   :  { %12613 = vst [vmem:[#allocation58_spill] sm:$0xff] %v10242_v40 }
 0x225   :  { %12614 = vst [vmem:[#allocation59_spill] sm:$0xff] %v10247_v56  ;;  %v7792_v0 = vpop.f32.mrb[58].mxu1  ;;  %7899 = vmatprep.mubr.msk.f32.mxu0 %vm1331_vm1, %v10247_v56 }
 0x226   :  { %v10252_v9 = vadd.f32 %v7792_v0, %v9961_v18  ;;  %v1294_v17 = vpop.f32.mrb[59].mxu1  ;;  %7900 = vmatmul.mubr.msk.f32.gmra.mrb[120].mxu0 %vm1331_vm1, %v10242_v40 }
 0x227   :  { %v10257_v32 = vadd.f32 %v9961_v18, %v1294_v17 }
 0x228   :  { %12615 = vst [vmem:[#allocation60_spill] sm:$0xff] %v10252_v9 }
 0x229   :  { %12616 = vst [vmem:[#allocation61_spill] sm:$0xff] %v10257_v32  ;;  %v7795_v24 = vpop.f32.mrb[60].mxu1  ;;  %7902 = vmatprep.mubr.msk.f32.mxu0 %vm1331_vm1, %v10257_v32 }
 0x22a   :  { %v10262_v48 = vadd.f32 %v7795_v24, %v9961_v18  ;;  %v1304_v13 = vpop.f32.mrb[61].mxu1  ;;  %7903 = vmatmul.mubr.msk.f32.gmra.mrb[122].mxu0 %vm1331_vm1, %v10252_v9 }
 0x22b   :  { %v10267_v0 = vadd.f32 %v9961_v18, %v1304_v13 }
 0x22c   :  { %12617 = vst [vmem:[#allocation62_spill] sm:$0xff] %v10262_v48 }
 0x22d   :  { %12618 = vst [vmem:[#allocation63_spill] sm:$0xff] %v10267_v0  ;;  %v7798_v56 = vpop.f32.mrb[62].mxu1  ;;  %7905 = vmatprep.mubr.msk.f32.mxu0 %vm1331_vm1, %v10267_v0 }
 0x22e   :  { %v10272_v17 = vadd.f32 %v7798_v56, %v9961_v18  ;;  %v1314_v40 = vpop.f32.mrb[63].mxu1  ;;  %7906 = vmatmul.mubr.msk.f32.gmra.mrb[124].mxu0 %vm1331_vm1, %v10262_v48 }
 0x22f   :  { %v10277_v24 = vadd.f32 %v9961_v18, %v1314_v40 }
 0x230   :  { %12619 = vst [vmem:[#allocation64_spill] sm:$0xff] %v10272_v17 }
 0x231   :  { %12620 = vst [vmem:[#allocation65_spill] sm:$0xff] %v10277_v24  ;;  %7908 = vmatprep.mubr.msk.f32.mxu0 %vm1331_vm1, %v10277_v24 }
 0x232   :  { %7909 = vmatmul.mubr.msk.f32.gmra.mrb[126].mxu0 %vm1331_vm1, %v10272_v17 }
 0x289   :  { %v10283_v13 = vpop.f32.mrb[64].mxu0 }
 0x28a   :  { %v1590_v0 = vpop.f32.mrb[65].mxu0 }
 0x28b   :  { %v10286_v56 = vpack.i.bf16 %v10283_v13, %v1590_v0  ;;  %7927 = vmatprep.mubr.msk.f32.mxu1 %vm1933_vm2, %v1590_v0 }
 0x28d   :  { %8922 = vrot.lane.b32.xlu0 %v10286_v56, %s9497_s28  ;;  %v10291_v18 = vpop.f32.mrb[66].mxu0 }
 0x28e   :  { %v10293_v40 = vpop.f32.mrb[67].mxu0 }
 0x28f   :  { %v10297_v17 = vpack.i.bf16 %v10291_v18, %v10293_v40 }
 0x291   :  { %8927 = vrot.lane.b32.xlu0 %v10297_v17, %s9497_s28  ;;  %v10301_v24 = vpop.f32.mrb[68].mxu0 }
 0x292   :  { %v10303_v48 = vpop.f32.mrb[69].mxu0 }
 0x293   :  { %v10307_v0 = vpack.i.bf16 %v10301_v24, %v10303_v48 }
 0x295   :  { %8932 = vrot.lane.b32.xlu1 %v10307_v0, %s9497_s28  ;;  %v10311_v9 = vpop.f32.mrb[70].mxu0 }
 0x296   :  { %v10313_v32 = vpop.f32.mrb[71].mxu0 }
 0x297   :  { %v10317_v60 = vpack.i.bf16 %v10311_v9, %v10313_v32 }
 0x299   :  { %8937 = vrot.lane.b32.xlu1 %v10317_v60, %s9497_s28  ;;  %v10321_v5 = vpop.f32.mrb[72].mxu0 }
 0x29a   :  { %v10323_v44 = vpop.f32.mrb[73].mxu0 }
 0x29b   :  { %v10327_v52 = vpack.i.bf16 %v10321_v5, %v10323_v44 }
 0x29d   :  { %8942 = vrot.lane.b32.xlu0 %v10327_v52, %s9497_s28  ;;  %v10331_v28 = vpop.f32.mrb[74].mxu0 }
 0x29e   :  { %v10333_v36 = vpop.f32.mrb[75].mxu0 }
 0x29f   :  { %v10337_v15 = vpack.i.bf16 %v10331_v28, %v10333_v36 }
 0x2a1   :  { %8947 = vrot.lane.b32.xlu1 %v10337_v15, %s9497_s28  ;;  %v10341_v20 = vpop.f32.mrb[76].mxu0 }
 0x2a2   :  { %v10343_v7 = vpop.f32.mrb[77].mxu0 }
 0x2a3   :  { %v10347_v11 = vpack.i.bf16 %v10341_v20, %v10343_v7 }
 0x2a5   :  { %8952 = vrot.lane.b32.xlu0 %v10347_v11, %s9497_s28  ;;  %v10351_v62 = vpop.f32.mrb[78].mxu0 }
 0x2a6   :  { %v10353_v3 = vpop.f32.mrb[79].mxu0 }
 0x2a7   :  { %v10357_v54 = vpack.i.bf16 %v10351_v62, %v10353_v3 }
 0x2a9   :  { %8957 = vrot.lane.b32.xlu1 %v10357_v54, %s9497_s28  ;;  %v10361_v58 = vpop.f32.mrb[80].mxu0 }
 0x2aa   :  { %v10363_v46 = vpop.f32.mrb[81].mxu0 }
 0x2ab   :  { %v10367_v50 = vpack.i.bf16 %v10361_v58, %v10363_v46 }
 0x2ad   :  { %8962 = vrot.lane.b32.xlu0 %v10367_v50, %s9497_s28  ;;  %v10371_v38 = vpop.f32.mrb[82].mxu0 }
 0x2ae   :  { %v10373_v42 = vpop.f32.mrb[83].mxu0 }
 0x2af   :  { %v10377_v30 = vpack.i.bf16 %v10371_v38, %v10373_v42 }
 0x2b1   :  { %8967 = vrot.lane.b32.xlu1 %v10377_v30, %s9497_s28  ;;  %v10381_v34 = vpop.f32.mrb[84].mxu0 }
 0x2b2   :  { %12621 = vst [vmem:[#allocation66_spill] sm:$0xff] %v10381_v34  ;;  %v10383_v22 = vpop.f32.mrb[85].mxu0 }
 0x2b3   :  { %v10387_v26 = vpack.i.bf16 %v10381_v34, %v10383_v22 }
 0x2b5   :  { %8972 = vrot.lane.b32.xlu0 %v10387_v26, %s9497_s28  ;;  %v10391_v16 = vpop.f32.mrb[86].mxu0 }
 0x2b6   :  { %12622 = vst [vmem:[#allocation67_spill] sm:$0xff] %v10391_v16  ;;  %v10393_v19 = vpop.f32.mrb[87].mxu0 }
 0x2b7   :  { %12623 = vst [vmem:[#allocation68_spill] sm:$0xff] %v10393_v19  ;;  %v10397_v12 = vpack.i.bf16 %v10391_v16, %v10393_v19 }
 0x2b9   :  { %8977 = vrot.lane.b32.xlu1 %v10397_v12, %s9497_s28  ;;  %v10401_v14 = vpop.f32.mrb[88].mxu0 }
 0x2ba   :  { %12624 = vst [vmem:[#allocation69_spill] sm:$0xff] %v10401_v14  ;;  %v10403_v8 = vpop.f32.mrb[89].mxu0 }
 0x2bb   :  { %12625 = vst [vmem:[#allocation70_spill] sm:$0xff] %v10403_v8  ;;  %v10407_v10 = vpack.i.bf16 %v10401_v14, %v10403_v8 }
 0x2bd   :  { %8982 = vrot.lane.b32.xlu0 %v10407_v10, %s9497_s28  ;;  %v10411_v4 = vpop.f32.mrb[90].mxu0 }
 0x2be   :  { %12626 = vst [vmem:[#allocation71_spill] sm:$0xff] %v10411_v4  ;;  %v10413_v63 = vpop.f32.mrb[91].mxu0 }
 0x2bf   :  { %12627 = vst [vmem:[#allocation72_spill] sm:$0xff] %v10413_v63  ;;  %v10417_v6 = vpack.i.bf16 %v10411_v4, %v10413_v63 }
 0x2c1   :  { %8987 = vrot.lane.b32.xlu1 %v10417_v6, %s9497_s28  ;;  %v10421_v1 = vpop.f32.mrb[92].mxu0 }
 0x2c2   :  { %12628 = vst [vmem:[#allocation73_spill] sm:$0xff] %v10421_v1  ;;  %v10423_v59 = vpop.f32.mrb[93].mxu0 }
 0x2c3   :  { %12629 = vst [vmem:[#allocation74_spill] sm:$0xff] %v10423_v59  ;;  %v10427_v61 = vpack.i.bf16 %v10421_v1, %v10423_v59 }
 0x2c5   :  { %8992 = vrot.lane.b32.xlu0 %v10427_v61, %s9497_s28  ;;  %v10431_v55 = vpop.f32.mrb[94].mxu0 }
 0x2c6   :  { %12630 = vst [vmem:[#allocation75_spill] sm:$0xff] %v10431_v55  ;;  %v10433_v57 = vpop.f32.mrb[95].mxu0 }
 0x2c7   :  { %12631 = vst [vmem:[#allocation76_spill] sm:$0xff] %v10433_v57  ;;  %v10437_v51 = vpack.i.bf16 %v10431_v55, %v10433_v57 }
 0x2c9   :  { %9002 = vrot.lane.b32.xlu0 %v10437_v51, %s9497_s28  ;;  %v10441_v53 = vpop.f32.mrb[96].mxu0 }
 0x2ca   :  { %v1750_v47 = vpop.f32.mrb[97].mxu0 }
 0x2cb   :  { %v10444_v49 = vpack.i.bf16 %v10441_v53, %v1750_v47  ;;  %8039 = vmatprep.mubr.msk.f32.mxu0 %vm1933_vm2, %v1750_v47 }
 0x2cd   :  { %8997 = vrot.lane.b32.xlu1 %v10444_v49, %s9497_s28  ;;  %v10449_v43 = vpop.f32.mrb[98].mxu0 }
 0x2ce   :  { %v10451_v45 = vpop.f32.mrb[99].mxu0 }
 0x2cf   :  { %v10455_v39 = vpack.i.bf16 %v10449_v43, %v10451_v45 }
 0x2d1   :  { %9007 = vrot.lane.b32.xlu1 %v10455_v39, %s9497_s28  ;;  %v10459_v41 = vpop.f32.mrb[100].mxu0 }
 0x2d2   :  { %12632 = vst [vmem:[#allocation77_spill] sm:$0xff] %v10459_v41  ;;  %v10461_v35 = vpop.f32.mrb[101].mxu0 }
 0x2d3   :  { %v10465_v47 = vpack.i.bf16 %v10459_v41, %v10461_v35 }
 0x2d5   :  { %9012 = vrot.lane.b32.xlu0 %v10465_v47, %s9497_s28  ;;  %v10469_v37 = vpop.f32.mrb[102].mxu0 }
 0x2d6   :  { %12633 = vst [vmem:[#allocation78_spill] sm:$0xff] %v10469_v37  ;;  %v10471_v31 = vpop.f32.mrb[103].mxu0 }
 0x2d7   :  { %12634 = vst [vmem:[#allocation79_spill] sm:$0xff] %v10471_v31  ;;  %v10475_v33 = vpack.i.bf16 %v10469_v37, %v10471_v31 }
 0x2d9   :  { %v10477_v27 = vpop.f32.mrb[104].mxu0  ;;  %9022 = vrot.lane.b32.xlu0 %v10475_v33, %s9497_s28 }
 0x2da   :  { %12635 = vst [vmem:[#allocation80_spill] sm:$0xff] %v10477_v27  ;;  %v10481_v29 = vpop.f32.mrb[105].mxu0 }
 0x2db   :  { %12636 = vst [vmem:[#allocation81_spill] sm:$0xff] %v10481_v29  ;;  %v10485_v23 = vpack.i.bf16 %v10477_v27, %v10481_v29 }
 0x2dd   :  { %v10487_v25 = vpop.f32.mrb[106].mxu0  ;;  %9017 = vrot.lane.b32.xlu1 %v10485_v23, %s9497_s28 }
 0x2de   :  { %12637 = vst [vmem:[#allocation82_spill] sm:$0xff] %v10487_v25  ;;  %v10491_v21 = vpop.f32.mrb[107].mxu0 }
 0x2df   :  { %12638 = vst [vmem:[#allocation83_spill] sm:$0xff] %v10491_v21  ;;  %v10495_v2 = vpack.i.bf16 %v10487_v25, %v10491_v21 }
 0x2e1   :  { %v10497_v55 = vpop.f32.mrb[108].mxu0  ;;  %9027 = vrot.lane.b32.xlu1 %v10495_v2, %s9497_s28 }
 0x2e2   :  { %12639 = vst [vmem:[#allocation84_spill] sm:$0xff] %v10497_v55  ;;  %v10501_v57 = vpop.f32.mrb[109].mxu0 }
 0x2e3   :  { %12640 = vst [vmem:[#allocation85_spill] sm:$0xff] %v10501_v57  ;;  %v10505_v27 = vpack.i.bf16 %v10497_v55, %v10501_v57 }
 0x2e5   :  { %v10507_v29 = vpop.f32.mrb[110].mxu0  ;;  %9032 = vrot.lane.b32.xlu0 %v10505_v27, %s9497_s28 }
 0x2e6   :  { %12641 = vst [vmem:[#allocation86_spill] sm:$0xff] %v10507_v29  ;;  %v10511_v1 = vpop.f32.mrb[111].mxu0 }
 0x2e7   :  { %12642 = vst [vmem:[#allocation87_spill] sm:$0xff] %v10511_v1  ;;  %v10515_v25 = vpack.i.bf16 %v10507_v29, %v10511_v1 }
 0x2e9   :  { %v10517_v21 = vpop.f32.mrb[112].mxu0  ;;  %9042 = vrot.lane.b32.xlu0 %v10515_v25, %s9497_s28 }
 0x2ea   :  { %12643 = vst [vmem:[#allocation88_spill] sm:$0xff] %v10517_v21  ;;  %v10521_v59 = vpop.f32.mrb[113].mxu0 }
 0x2eb   :  { %12644 = vst [vmem:[#allocation89_spill] sm:$0xff] %v10521_v59  ;;  %v10525_v55 = vpack.i.bf16 %v10517_v21, %v10521_v59 }
 0x2ed   :  { %9037 = vrot.lane.b32.xlu1 %v10525_v55, %s9497_s28  ;;  %v10529_v57 = vpop.f32.mrb[114].mxu0 }
 0x2ee   :  { %12645 = vst [vmem:[#allocation90_spill] sm:$0xff] %v10529_v57  ;;  %v10531_v4 = vpop.f32.mrb[115].mxu0 }
 0x2ef   :  { %12646 = vst [vmem:[#allocation91_spill] sm:$0xff] %v10531_v4  ;;  %v10535_v29 = vpack.i.bf16 %v10529_v57, %v10531_v4 }
 0x2f1   :  { %9047 = vrot.lane.b32.xlu1 %v10535_v29, %s9497_s28  ;;  %v10539_v1 = vpop.f32.mrb[116].mxu0 }
 0x2f2   :  { %12647 = vst [vmem:[#allocation92_spill] sm:$0xff] %v10539_v1  ;;  %v10541_v63 = vpop.f32.mrb[117].mxu0 }
 0x2f3   :  { %12648 = vst [vmem:[#allocation93_spill] sm:$0xff] %v10541_v63  ;;  %v10545_v21 = vpack.i.bf16 %v10539_v1, %v10541_v63 }
 0x2f5   :  { %v10547_v14 = vpop.f32.mrb[118].mxu0  ;;  %9052 = vrot.lane.b32.xlu0 %v10545_v21, %s9497_s28 }
 0x2f6   :  { %12649 = vst [vmem:[#allocation94_spill] sm:$0xff] %v10547_v14  ;;  %v10551_v59 = vpop.f32.mrb[119].mxu0 }
 0x2f7   :  { %12650 = vst [vmem:[#allocation95_spill] sm:$0xff] %v10551_v59  ;;  %v10555_v57 = vpack.i.bf16 %v10547_v14, %v10551_v59 }
 0x2f9   :  { %v10557_v4 = vpop.f32.mrb[120].mxu0  ;;  %9062 = vrot.lane.b32.xlu0 %v10555_v57, %s9497_s28 }
 0x2fa   :  { %12651 = vst [vmem:[#allocation96_spill] sm:$0xff] %v10557_v4  ;;  %v10561_v8 = vpop.f32.mrb[121].mxu0 }
 0x2fb   :  { %12652 = vst [vmem:[#allocation97_spill] sm:$0xff] %v10561_v8  ;;  %v10565_v1 = vpack.i.bf16 %v10557_v4, %v10561_v8 }
 0x2fd   :  { %12653 = vst [vmem:[#allocation98_spill] sm:$0xff] %v10565_v1  ;;  %v10567_v63 = vpop.f32.mrb[122].mxu0  ;;  %9057 = vrot.lane.b32.xlu1 %v10565_v1, %s9497_s28 }
 0x2fe   :  { %12654 = vst [vmem:[#allocation99_spill] sm:$0xff] %v10567_v63  ;;  %v10571_v37 = vpop.f32.mrb[123].mxu0 }
 0x2ff   :  { %12655 = vst [vmem:[#allocation100_spill] sm:$0xff] %v10571_v37  ;;  %v8923_v14 = vpop.permute.xlu0 %8922  ;;  %v10575_v59 = vpack.i.bf16 %v10567_v63, %v10571_v37 }
 0x300   :  { %v8925_v16 = vunpack.i.h.bf16 %v8923_v14  ;;  %v8924_v31 = vunpack.i.l.bf16 %v8923_v14 }
 0x301   :  { %12656 = vst [vmem:[#allocation101_spill] sm:$0xff] %v10575_v59  ;;  %v10577_v19 = vpop.f32.mrb[124].mxu0  ;;  %9067 = vrot.lane.b32.xlu1 %v10575_v59, %s9497_s28 }
 0x302   :  { %12657 = vst [vmem:[#allocation102_spill] sm:$0xff] %v10577_v19  ;;  %v8583_v1 = vpack.c.bf16 %v8925_v16, %v8924_v31  ;;  %v10587_v8 = vpop.f32.mrb[125].mxu0 }
 0x303   :  { %12660 = vst [vmem:[#allocation103_spill] sm:$0xff] %v10587_v8  ;;  %v10591_v63 = vpack.i.bf16 %v10577_v19, %v10587_v8  ;;  %v8928_v37 = vpop.permute.xlu0 %8927 }
 0x304   :  { %v8930_v14 = vunpack.i.h.bf16 %v8928_v37  ;;  %v8929_v41 = vunpack.i.l.bf16 %v8928_v37  ;;  %8585 = vmatprep.subr.msk.bf16.mxu1 %vm10581_vm3, %v8583_v1 }
 0x305   :  { %8588 = vmatpush3.bf16.xpose.msk.msra.mxu1 %vm10581_vm3, %v8583_v1  ;;  %9072 = vrot.lane.b32.xlu0 %v10591_v63, %s9497_s28  ;;  %v10599_v59 = vpop.f32.mrb[126].mxu0 }
 0x306   :  { %v8589_v31 = vpack.c.bf16 %v8930_v14, %v8929_v41  ;;  %v10601_v16 = vpop.f32.mrb[127].mxu0 }
 0x307   :  { %v10605_v19 = vpack.i.bf16 %v10599_v59, %v10601_v16  ;;  %v8933_v8 = vpop.permute.xlu1 %8932 }
 0x308   :  { %v8935_v37 = vunpack.i.h.bf16 %v8933_v8  ;;  %v8934_v34 = vunpack.i.l.bf16 %v8933_v8  ;;  %8591 = vmatprep.subr.msk.bf16.mxu1 %vm10581_vm3, %v8589_v31 }
 0x309   :  { %9082 = vrot.lane.b32.xlu0 %v10286_v56, %s9498_s29  ;;  %9077 = vrot.lane.b32.xlu1 %v10605_v19, %s9497_s28 }
 0x30a   :  { %v8595_v41 = vpack.c.bf16 %v8935_v37, %v8934_v34 }
 0x30b   :  { %v8938_v1 = vpop.permute.xlu1 %8937 }
 0x30c   :  { %v8940_v8 = vunpack.i.h.bf16 %v8938_v1  ;;  %v8939_v14 = vunpack.i.l.bf16 %v8938_v1 }
 0x30d   :  { %8594 = vmatpush3.bf16.xpose.msk.msra.mxu1 %vm10581_vm3, %v8589_v31  ;;  %9092 = vrot.lane.b32.xlu0 %v10307_v0, %s9498_s29 }
 0x30e   :  { %9087 = vrot.lane.b32.xlu1 %v10297_v17, %s9498_s29  ;;  %8597 = vmatprep.subr.msk.bf16.mxu1 %vm10581_vm3, %v8595_v41  ;;  %v8601_v34 = vpack.c.bf16 %v8940_v8, %v8939_v14 }
 0x30f   :  { %v8943_v56 = vpop.permute.xlu0 %8942 }
 0x310   :  { %v8945_v17 = vunpack.i.h.bf16 %v8943_v56  ;;  %v8944_v0 = vunpack.i.l.bf16 %v8943_v56 }
 0x311   :  { %9102 = vrot.lane.b32.xlu0 %v10327_v52, %s9498_s29 }
 0x312   :  { %9097 = vrot.lane.b32.xlu1 %v10317_v60, %s9498_s29  ;;  %v8607_v52 = vpack.c.bf16 %v8945_v17, %v8944_v0 }
 0x315   :  { %8600 = vmatpush3.bf16.xpose.msk.msra.mxu1 %vm10581_vm3, %v8595_v41  ;;  %9107 = vrot.lane.b32.xlu0 %v10337_v15, %s9498_s29  ;;  %v8948_v15 = vpop.permute.xlu1 %8947 }
 0x316   :  { %9112 = vrot.lane.b32.xlu1 %v10347_v11, %s9498_s29  ;;  %8603 = vmatprep.subr.msk.bf16.mxu1 %vm10581_vm3, %v8601_v34  ;;  %v8950_v11 = vunpack.i.h.bf16 %v8948_v15  ;;  %v8949_v60 = vunpack.i.l.bf16 %v8948_v15 }
 0x319   :  { %9117 = vrot.lane.b32.xlu0 %v10357_v54, %s9498_s29 }
 0x31a   :  { %9122 = vrot.lane.b32.xlu1 %v10367_v50, %s9498_s29  ;;  %v8613_v50 = vpack.c.bf16 %v8950_v11, %v8949_v60 }
 0x31d   :  { %8606 = vmatpush3.bf16.xpose.msk.msra.mxu1 %vm10581_vm3, %v8601_v34  ;;  %9127 = vrot.lane.b32.xlu0 %v10377_v30, %s9498_s29 }
 0x31e   :  { %9132 = vrot.lane.b32.xlu1 %v10387_v26, %s9498_s29  ;;  %8609 = vmatprep.subr.msk.bf16.mxu1 %vm10581_vm3, %v8607_v52  ;;  %v8953_v26 = vpop.permute.xlu0 %8952 }
 0x321   :  { %9137 = vrot.lane.b32.xlu0 %v10397_v12, %s9498_s29  ;;  %v8954_v12 = vunpack.i.l.bf16 %v8953_v26 }
 0x322   :  { %9142 = vrot.lane.b32.xlu1 %v10407_v10, %s9498_s29  ;;  %v8955_v10 = vunpack.i.h.bf16 %v8953_v26  ;;  %v8963_v30 = vpop.permute.xlu0 %8962 }
 0x324   :  { %7928 = vmatmul.mubr.msk.f32.vlgmr.msra.gmra.mrb[64].mxu1 %vm1933_vm2, %v10283_v13 }
 0x325   :  { %7930 = vmatprep.mubr.msk.f32.mxu1 %vm1933_vm2, %v10293_v40  ;;  %8612 = vmatpush3.bf16.xpose.msk.msra.mxu1 %vm10581_vm3, %v8607_v52 }
 0x326   :  { %9147 = vrot.lane.b32.xlu0 %v10417_v6, %s9498_s29  ;;  %9152 = vrot.lane.b32.xlu1 %v10427_v61, %s9498_s29  ;;  %v8619_v61 = vpack.c.bf16 %v8955_v10, %v8954_v12  ;;  %v8958_v6 = vpop.permute.xlu1 %8957 }
 0x327   :  { %8615 = vmatprep.subr.msk.bf16.mxu1 %vm10581_vm3, %v8613_v50 }
 0x328   :  { %7931 = vmatmul.mubr.msk.f32.gmra.mrb[66].mxu1 %vm1933_vm2, %v10291_v18 }
 0x329   :  { %7933 = vmatprep.mubr.msk.f32.mxu1 %vm1933_vm2, %v10303_v48 }
 0x32a   :  { %9157 = vrot.lane.b32.xlu0 %v10437_v51, %s9498_s29  ;;  %9162 = vrot.lane.b32.xlu1 %v10444_v49, %s9498_s29  ;;  %v8960_v49 = vunpack.i.h.bf16 %v8958_v6  ;;  %v8959_v51 = vunpack.i.l.bf16 %v8958_v6 }
 0x32c   :  { %7934 = vmatmul.mubr.msk.f32.gmra.mrb[68].mxu1 %vm1933_vm2, %v10301_v24  ;;  %v8625_v54 = vpack.c.bf16 %v8960_v49, %v8959_v51 }
 0x32d   :  { %7936 = vmatprep.mubr.msk.f32.mxu1 %vm1933_vm2, %v10313_v32  ;;  %8618 = vmatpush3.bf16.xpose.msk.msra.mxu1 %vm10581_vm3, %v8613_v50  ;;  %v8973_v32 = vpop.permute.xlu0 %8972 }
 0x32e   :  { %9167 = vrot.lane.b32.xlu0 %v10455_v39, %s9498_s29  ;;  %9172 = vrot.lane.b32.xlu1 %v10465_v47, %s9498_s29  ;;  %v8968_v39 = vpop.permute.xlu1 %8967  ;;  %v8974_v1 = vunpack.i.l.bf16 %v8973_v32 }
 0x32f   :  { %8621 = vmatprep.subr.msk.bf16.mxu1 %vm10581_vm3, %v8619_v61 }
 0x330   :  { %7937 = vmatmul.mubr.msk.f32.gmra.mrb[70].mxu1 %vm1933_vm2, %v10311_v9 }
 0x331   :  { %7955 = vmatprep.mubr.msk.f32.mxu1 %vm1933_vm2, %v10323_v44  ;;  %v8964_v44 = vunpack.i.l.bf16 %v8963_v30  ;;  %v10697_v48 = vpop.permute.xlu0 %8982 }
 0x332   :  { %9177 = vrot.lane.b32.xlu0 %v10475_v33, %s9498_s29  ;;  %9182 = vrot.lane.b32.xlu1 %v10485_v23, %s9498_s29  ;;  %v8978_v9 = vpop.permute.xlu1 %8977  ;;  %v8965_v33 = vunpack.i.h.bf16 %v8963_v30 }
 0x333   :  { %v8979_v56 = vunpack.i.l.bf16 %v8978_v9 }
 0x334   :  { %v8631_v24 = vpack.c.bf16 %v8965_v33, %v8964_v44  ;;  %v12661_v33 = vld [vmem:[#allocation66_spill] sm:$0xff] }
 0x335   :  { %8624 = vmatpush3.bf16.xpose.msk.msra.mxu1 %vm10581_vm3, %v8619_v61 }
 0x336   :  { %8627 = vmatprep.subr.msk.bf16.mxu1 %vm10581_vm3, %v8625_v54  ;;  %9187 = vrot.lane.b32.xlu0 %v10495_v2, %s9498_s29  ;;  %v10701_v23 = vpop.permute.xlu1 %8987 }
 0x337   :  { %9192 = vrot.lane.b32.xlu1 %v10505_v27, %s9498_s29  ;;  %v10705_v13 = vpop.permute.xlu0 %8992  ;;  %v8969_v27 = vunpack.i.l.bf16 %v8968_v39  ;;  %v8990_v12 = vunpack.i.h.bf16 %v10701_v23  ;;  %v8989_v61 = vunpack.i.l.bf16 %v10701_v23  ;;  %v12663_v23 = vld [vmem:[#allocation68_spill] sm:$0xff] }
 0x33a   :  { %9197 = vrot.lane.b32.xlu0 %v10515_v25, %s9498_s29  ;;  %v8970_v25 = vunpack.i.h.bf16 %v8968_v39 }
 0x33b   :  { %9202 = vrot.lane.b32.xlu1 %v10525_v55, %s9498_s29  ;;  %v10717_v47 = vpop.permute.xlu0 %9002 }
 0x33c   :  { %v8637_v37 = vpack.c.bf16 %v8970_v25, %v8969_v27  ;;  %v9005_v25 = vunpack.i.h.bf16 %v10717_v47  ;;  %v9004_v27 = vunpack.i.l.bf16 %v10717_v47 }
 0x33d   :  { %8630 = vmatpush3.bf16.xpose.msk.msra.mxu1 %vm10581_vm3, %v8625_v54  ;;  %v8661_v54 = vpack.c.bf16 %v8990_v12, %v8989_v61  ;;  %v12673_v12 = vld [vmem:[#allocation71_spill] sm:$0xff] }
 0x33e   :  { %8633 = vmatprep.subr.msk.bf16.mxu1 %vm10581_vm3, %v8631_v24  ;;  %9207 = vrot.lane.b32.xlu0 %v10535_v29, %s9498_s29 }
 0x33f   :  { %v8998_v2 = vpop.permute.xlu1 %8997  ;;  %9212 = vrot.lane.b32.xlu1 %v10545_v21, %s9498_s29 }
 0x340   :  { %v9000_v18 = vunpack.i.h.bf16 %v8998_v2  ;;  %v8999_v55 = vunpack.i.l.bf16 %v8998_v2 }
 0x342   :  { %v8679_v40 = vpack.c.bf16 %v9000_v18, %v8999_v55  ;;  %9217 = vrot.lane.b32.xlu0 %v10555_v57, %s9498_s29  ;;  %v12666_v18 = vld [vmem:[#allocation78_spill] sm:$0xff] }
 0x343   :  { %v9008_v31 = vpop.permute.xlu1 %9007  ;;  %v12667_v55 = vld [vmem:[#allocation70_spill] sm:$0xff] }
 0x344   :  { %7956 = vmatmul.mubr.msk.f32.vlgmr.msra.gmra.mrb[72].mxu1 %vm1933_vm2, %v10321_v5  ;;  %8681 = vmatprep.subr.msk.bf16.mxu0 %vm10581_vm3, %v8679_v40  ;;  %v9010_v29 = vunpack.i.h.bf16 %v9008_v31  ;;  %v9009_v21 = vunpack.i.l.bf16 %v9008_v31  ;;  %v8975_v5 = vunpack.i.h.bf16 %v8973_v32 }
 0x345   :  { %7958 = vmatprep.mubr.msk.f32.mxu1 %vm1933_vm2, %v10333_v36  ;;  %8636 = vmatpush3.bf16.xpose.msk.msra.mxu1 %vm10581_vm3, %v8631_v24  ;;  %v12665_v24 = vld [vmem:[#allocation67_spill] sm:$0xff] }
 0x346   :  { %8684 = vmatpush3.bf16.xpose.msk.msra.mxu0 %vm10581_vm3, %v8679_v40  ;;  %8639 = vmatprep.subr.msk.bf16.mxu1 %vm10581_vm3, %v8637_v37  ;;  %v8685_v57 = vpack.c.bf16 %v9010_v29, %v9009_v21  ;;  %v8643_v34 = vpack.c.bf16 %v8975_v5, %v8974_v1  ;;  %v12668_v40 = vld [vmem:[#allocation89_spill] sm:$0xff] }
 0x347   :  { %v9013_v41 = vpop.permute.xlu0 %9012 }
 0x348   :  { %7959 = vmatmul.mubr.msk.f32.gmra.mrb[74].mxu1 %vm1933_vm2, %v10331_v28  ;;  %8687 = vmatprep.subr.msk.bf16.mxu0 %vm10581_vm3, %v8685_v57  ;;  %v9015_v36 = vunpack.i.h.bf16 %v9013_v41  ;;  %v9014_v8 = vunpack.i.l.bf16 %v9013_v41 }
 0x349   :  { %7961 = vmatprep.mubr.msk.f32.mxu1 %vm1933_vm2, %v10343_v7  ;;  %v8980_v7 = vunpack.i.h.bf16 %v8978_v9  ;;  %v8995_v9 = vunpack.i.h.bf16 %v10705_v13 }
 0x34a   :  { %v8691_v14 = vpack.c.bf16 %v9015_v36, %v9014_v8 }
 0x34b   :  { %v9023_v28 = vpop.permute.xlu0 %9022  ;;  %v8649_v17 = vpack.c.bf16 %v8980_v7, %v8979_v56 }
 0x34c   :  { %7962 = vmatmul.mubr.msk.f32.gmra.mrb[76].mxu1 %vm1933_vm2, %v10341_v20  ;;  %v9024_v20 = vunpack.i.l.bf16 %v9023_v28 }
 0x34d   :  { %7964 = vmatprep.mubr.msk.f32.mxu1 %vm1933_vm2, %v10353_v3  ;;  %8642 = vmatpush3.bf16.xpose.msk.msra.mxu1 %vm10581_vm3, %v8637_v37  ;;  %v9025_v3 = vunpack.i.h.bf16 %v9023_v28  ;;  %v8673_v37 = vpack.c.bf16 %v9005_v25, %v9004_v27 }
 0x34e   :  { %8690 = vmatpush3.bf16.xpose.msk.msra.mxu0 %vm10581_vm3, %v8685_v57  ;;  %8645 = vmatprep.subr.msk.bf16.mxu1 %vm10581_vm3, %v8643_v34 }
 0x34f   :  { %8693 = vmatprep.subr.msk.bf16.mxu0 %vm10581_vm3, %v8691_v14  ;;  %v8697_v0 = vpack.c.bf16 %v9025_v3, %v9024_v20  ;;  %v10755_v52 = vpop.permute.xlu1 %9017 }
 0x350   :  { %7965 = vmatmul.mubr.msk.f32.gmra.mrb[78].mxu1 %vm1933_vm2, %v10351_v62  ;;  %v8984_v62 = vunpack.i.l.bf16 %v10697_v48  ;;  %v9020_v21 = vunpack.i.h.bf16 %v10755_v52  ;;  %v9019_v57 = vunpack.i.l.bf16 %v10755_v52 }
 0x351   :  { %7983 = vmatprep.mubr.msk.f32.mxu1 %vm1933_vm2, %v10363_v46  ;;  %v8985_v46 = vunpack.i.h.bf16 %v10697_v48  ;;  %v12662_v48 = vld [vmem:[#allocation77_spill] sm:$0xff] }
 0x352   :  { %v8703_v8 = vpack.c.bf16 %v9020_v21, %v9019_v57  ;;  %v12685_v21 = vld [vmem:[#allocation83_spill] sm:$0xff] }
 0x353   :  { %v10765_v15 = vpop.permute.xlu1 %9027  ;;  %v8655_v11 = vpack.c.bf16 %v8985_v46, %v8984_v62  ;;  %v12670_v46 = vld [vmem:[#allocation88_spill] sm:$0xff] }
 0x354   :  { %v9030_v28 = vunpack.i.h.bf16 %v10765_v15  ;;  %v9029_v7 = vunpack.i.l.bf16 %v10765_v15  ;;  %v12671_v62 = vld [vmem:[#allocation72_spill] sm:$0xff]  ;;  %v12672_v15 = vld [vmem:[#allocation91_spill] sm:$0xff] }
 0x355   :  { %8648 = vmatpush3.bf16.xpose.msk.msra.mxu1 %vm10581_vm3, %v8643_v34 }
 0x356   :  { %8696 = vmatpush3.bf16.xpose.msk.msra.mxu0 %vm10581_vm3, %v8691_v14  ;;  %8651 = vmatprep.subr.msk.bf16.mxu1 %vm10581_vm3, %v8649_v17  ;;  %v8709_v52 = vpack.c.bf16 %v9030_v28, %v9029_v7  ;;  %v12691_v28 = vld [vmem:[#allocation97_spill] sm:$0xff] }
 0x357   :  { %8699 = vmatprep.subr.msk.bf16.mxu0 %vm10581_vm3, %v8697_v0  ;;  %v10769_v60 = vpop.permute.xlu0 %9032 }
 0x358   :  { %v9035_v61 = vunpack.i.h.bf16 %v10769_v60 }
 0x35b   :  { %v10777_v51 = vpop.permute.xlu0 %9042 }
 0x35d   :  { %8654 = vmatpush3.bf16.xpose.msk.msra.mxu1 %vm10581_vm3, %v8649_v17 }
 0x35e   :  { %8702 = vmatpush3.bf16.xpose.msk.msra.mxu0 %vm10581_vm3, %v8697_v0  ;;  %8657 = vmatprep.subr.msk.bf16.mxu1 %vm10581_vm3, %v8655_v11  ;;  %v12669_v0 = vld [vmem:[#allocation69_spill] sm:$0xff] }
 0x35f   :  { %v9038_v50 = vpop.permute.xlu1 %9037 }
 0x360   :  { %v9040_v26 = vunpack.i.h.bf16 %v9038_v50  ;;  %v9039_v10 = vunpack.i.l.bf16 %v9038_v50 }
 0x362   :  { %v8727_v6 = vpack.c.bf16 %v9040_v26, %v9039_v10 }
 0x363   :  { %v9048_v49 = vpop.permute.xlu1 %9047 }
 0x364   :  { %7984 = vmatmul.mubr.msk.f32.vlgmr.msra.gmra.mrb[80].mxu1 %vm1933_vm2, %v10361_v58  ;;  %8729 = vmatprep.subr.msk.bf16.mxu0 %vm10581_vm3, %v8727_v6  ;;  %v9050_v30 = vunpack.i.h.bf16 %v9048_v49  ;;  %v9049_v39 = vunpack.i.l.bf16 %v9048_v49  ;;  %v12674_v49 = vld [vmem:[#allocation90_spill] sm:$0xff] }
 0x365   :  { %8040 = vmatmul.mubr.msk.f32.vlgmr.msra.gmra.mrb[128].mxu0 %vm1933_vm2, %v10441_v53  ;;  %7986 = vmatprep.mubr.msk.f32.mxu1 %vm1933_vm2, %v10373_v42 }
 0x366   :  { %8660 = vmatpush3.bf16.xpose.msk.msra.mxu1 %vm10581_vm3, %v8655_v11  ;;  %8042 = vmatprep.mubr.msk.f32.mxu0 %vm1933_vm2, %v10451_v45  ;;  %v8733_v32 = vpack.c.bf16 %v9050_v30, %v9049_v39  ;;  %v8994_v45 = vunpack.i.l.bf16 %v10705_v13  ;;  %v12675_v30 = vld [vmem:[#allocation74_spill] sm:$0xff] }
 0x367   :  { %8732 = vmatpush3.bf16.xpose.msk.msra.mxu0 %vm10581_vm3, %v8727_v6  ;;  %8663 = vmatprep.subr.msk.bf16.mxu1 %vm10581_vm3, %v8661_v54  ;;  %v9053_v58 = vpop.permute.xlu0 %9052  ;;  %v9034_v6 = vunpack.i.l.bf16 %v10769_v60  ;;  %v12678_v60 = vld [vmem:[#allocation92_spill] sm:$0xff] }
 0x368   :  { %7987 = vmatmul.mubr.msk.f32.gmra.mrb[82].mxu1 %vm1933_vm2, %v10371_v38  ;;  %8735 = vmatprep.subr.msk.bf16.mxu0 %vm10581_vm3, %v8733_v32  ;;  %v9055_v53 = vunpack.i.h.bf16 %v9053_v58  ;;  %v9054_v42 = vunpack.i.l.bf16 %v9053_v58  ;;  %v8667_v44 = vpack.c.bf16 %v8995_v9, %v8994_v45  ;;  %v12679_v45 = vld [vmem:[#allocation76_spill] sm:$0xff] }
 0x369   :  { %8043 = vmatmul.mubr.msk.f32.gmra.mrb[130].mxu0 %vm1933_vm2, %v10449_v43  ;;  %7989 = vmatprep.mubr.msk.f32.mxu1 %vm1933_vm2, %v10383_v22  ;;  %v12664_v43 = vld [vmem:[#allocation79_spill] sm:$0xff]  ;;  %v8715_v9 = vpack.c.bf16 %v9035_v61, %v9034_v6 }
 0x36a   :  { %8045 = vmatprep.mubr.msk.f32.mxu0 %vm1933_vm2, %v10461_v35  ;;  %v8739_v38 = vpack.c.bf16 %v9055_v53, %v9054_v42  ;;  %v12677_v42 = vld [vmem:[#allocation73_spill] sm:$0xff]  ;;  %v12694_v6 = vld [vmem:[#allocation99_spill] sm:$0xff] }
 0x36b   :  { %v9063_v35 = vpop.permute.xlu0 %9062 }
 0x36c   :  { %7990 = vmatmul.mubr.msk.f32.gmra.mrb[84].mxu1 %vm1933_vm2, %v12661_v33  ;;  %v9065_v13 = vunpack.i.h.bf16 %v9063_v35  ;;  %v9064_v2 = vunpack.i.l.bf16 %v9063_v35  ;;  %v9044_v35 = vunpack.i.l.bf16 %v10777_v51 }
 0x36d   :  { %8046 = vmatmul.mubr.msk.f32.gmra.mrb[132].mxu0 %vm1933_vm2, %v12662_v48  ;;  %7992 = vmatprep.mubr.msk.f32.mxu1 %vm1933_vm2, %v12663_v23  ;;  %v12681_v23 = vld [vmem:[#allocation75_spill] sm:$0xff] }
 0x36e   :  { %8666 = vmatpush3.bf16.xpose.msk.msra.mxu1 %vm10581_vm3, %v8661_v54  ;;  %8048 = vmatprep.mubr.msk.f32.mxu0 %vm1933_vm2, %v12664_v43  ;;  %v8745_v31 = vpack.c.bf16 %v9065_v13, %v9064_v2  ;;  %v9045_v43 = vunpack.i.h.bf16 %v10777_v51  ;;  %v12683_v13 = vld [vmem:[#allocation81_spill] sm:$0xff] }
 0x36f   :  { %8738 = vmatpush3.bf16.xpose.msk.msra.mxu0 %vm10581_vm3, %v8733_v32  ;;  %8669 = vmatprep.subr.msk.bf16.mxu1 %vm10581_vm3, %v8667_v44  ;;  %v10821_v22 = vpop.permute.xlu1 %9057  ;;  %v12676_v32 = vld [vmem:[#allocation93_spill] sm:$0xff] }
 0x370   :  { %7993 = vmatmul.mubr.msk.f32.gmra.mrb[86].mxu1 %vm1933_vm2, %v12665_v24  ;;  %8741 = vmatprep.subr.msk.bf16.mxu0 %vm10581_vm3, %v8739_v38  ;;  %v12682_v24 = vld [vmem:[#allocation94_spill] sm:$0xff]  ;;  %v8721_v25 = vpack.c.bf16 %v9045_v43, %v9044_v35  ;;  %v9060_v27 = vunpack.i.h.bf16 %v10821_v22 }
 0x371   :  { %8049 = vmatmul.mubr.msk.f32.gmra.mrb[134].mxu0 %vm1933_vm2, %v12666_v18  ;;  %8011 = vmatprep.mubr.msk.f32.mxu1 %vm1933_vm2, %v12667_v55  ;;  %v9059_v18 = vunpack.i.l.bf16 %v10821_v22 }
 0x372   :  { %8095 = vmatprep.mubr.msk.f32.mxu0 %vm1933_vm2, %v12668_v40 }
 0x373   :  { %v10835_v29 = vpop.permute.xlu1 %9067  ;;  %v8751_v51 = vpack.c.bf16 %v9060_v27, %v9059_v18 }
 0x374   :  { %v9070_v55 = vunpack.i.h.bf16 %v10835_v29  ;;  %v9069_v40 = vunpack.i.l.bf16 %v10835_v29  ;;  %v12686_v29 = vld [vmem:[#allocation82_spill] sm:$0xff] }
 0x376   :  { %8672 = vmatpush3.bf16.xpose.msk.msra.mxu1 %vm10581_vm3, %v8667_v44  ;;  %v12680_v44 = vld [vmem:[#allocation95_spill] sm:$0xff] }
 0x377   :  { %8744 = vmatpush3.bf16.xpose.msk.msra.mxu0 %vm10581_vm3, %v8739_v38  ;;  %8675 = vmatprep.subr.msk.bf16.mxu1 %vm10581_vm3, %v8673_v37  ;;  %v10843_v47 = vpop.permute.xlu0 %9072 }
 0x378   :  { %8747 = vmatprep.subr.msk.bf16.mxu0 %vm10581_vm3, %v8745_v31  ;;  %v9075_v22 = vunpack.i.h.bf16 %v10843_v47  ;;  %v9074_v57 = vunpack.i.l.bf16 %v10843_v47 }
 0x37b   :  { %v9083_v41 = vpop.permute.xlu0 %9082  ;;  %v10849_v5 = vpop.permute.xlu1 %9077 }
 0x37c   :  { %v9085_v1 = vunpack.i.h.bf16 %v9083_v41  ;;  %v9084_v36 = vunpack.i.l.bf16 %v9083_v41  ;;  %v12687_v41 = vld [vmem:[#allocation85_spill] sm:$0xff]  ;;  %v9080_v47 = vunpack.i.h.bf16 %v10849_v5 }
 0x37e   :  { %8678 = vmatpush3.bf16.xpose.msk.msra.mxu1 %vm10581_vm3, %v8673_v37  ;;  %v8775_v14 = vpack.c.bf16 %v9085_v1, %v9084_v36  ;;  %v12684_v37 = vld [vmem:[#allocation80_spill] sm:$0xff]  ;;  %v8763_v1 = vpack.c.bf16 %v9075_v22, %v9074_v57 }
 0x37f   :  { %8750 = vmatpush3.bf16.xpose.msk.msra.mxu0 %vm10581_vm3, %v8745_v31  ;;  %8705 = vmatprep.subr.msk.bf16.mxu1 %vm10581_vm3, %v8703_v8  ;;  %v9093_v20 = vpop.permute.xlu0 %9092  ;;  %v8757_v31 = vpack.c.bf16 %v9070_v55, %v9069_v40  ;;  %v12688_v36 = vld [vmem:[#allocation84_spill] sm:$0xff] }
 0x380   :  { %v9088_v34 = vpop.permute.xlu1 %9087  ;;  %8776 = vmatprep.subr.bf16.mxu0 %v8775_v14  ;;  %v9095_v11 = vunpack.i.h.bf16 %v9093_v20  ;;  %v9094_v50 = vunpack.i.l.bf16 %v9093_v20 }
 0x381   :  { %v9090_v56 = vunpack.i.h.bf16 %v9088_v34  ;;  %v9089_v3 = vunpack.i.l.bf16 %v9088_v34  ;;  %v12690_v34 = vld [vmem:[#allocation86_spill] sm:$0xff] }
 0x382   :  { %v8783_v58 = vpack.c.bf16 %v9095_v11, %v9094_v50  ;;  %v12692_v50 = vld [vmem:[#allocation96_spill] sm:$0xff] }
 0x383   :  { %v8779_v26 = vpack.c.bf16 %v9090_v56, %v9089_v3  ;;  %v9103_v56 = vpop.permute.xlu0 %9102 }
 0x384   :  { %v9098_v17 = vpop.permute.xlu1 %9097  ;;  %v9105_v3 = vunpack.i.h.bf16 %v9103_v56  ;;  %v9104_v20 = vunpack.i.l.bf16 %v9103_v56 }
 0x385   :  { %8012 = vmatmul.mubr.msk.f32.vlgmr.msra.gmra.mrb[88].mxu1 %vm1933_vm2, %v12669_v0  ;;  %v9100_v39 = vunpack.i.h.bf16 %v9098_v17  ;;  %v9099_v54 = vunpack.i.l.bf16 %v9098_v17 }
 0x386   :  { %8096 = vmatmul.mubr.msk.f32.vlgmr.msra.gmra.mrb[136].mxu0 %vm1933_vm2, %v12670_v46  ;;  %8014 = vmatprep.mubr.msk.f32.mxu1 %vm1933_vm2, %v12671_v62 }
 0x387   :  { %8708 = vmatpush3.bf16.xpose.msk.msra.mxu1 %vm10581_vm3, %v8703_v8  ;;  %8098 = vmatprep.mubr.msk.f32.mxu0 %vm1933_vm2, %v12672_v15  ;;  %v8787_v48 = vpack.c.bf16 %v9100_v39, %v9099_v54  ;;  %v12689_v8 = vld [vmem:[#allocation87_spill] sm:$0xff]  ;;  %v9108_v17 = vpop.permute.xlu0 %9107 }
 0x388   :  { %8778 = vmatpush3.bf16.msra.mxu0 %v8775_v14  ;;  %v10869_v10 = vpop.permute.xlu1 %9112  ;;  %8711 = vmatprep.subr.msk.bf16.mxu1 %vm10581_vm3, %v8709_v52  ;;  %v9079_v14 = vunpack.i.l.bf16 %v10849_v5  ;;  %v8791_v5 = vpack.c.bf16 %v9105_v3, %v9104_v20  ;;  %v9110_v0 = vunpack.i.h.bf16 %v9108_v17  ;;  %v12695_v39 = vld [vmem:[#allocation103_spill] sm:$0xff] }
 0x389   :  { %8780 = vmatprep.subr.bf16.mxu0 %v8779_v26  ;;  %8015 = vmatmul.mubr.msk.f32.gmra.mrb[90].mxu1 %vm1933_vm2, %v12673_v12  ;;  %v9115_v62 = vunpack.i.h.bf16 %v10869_v10  ;;  %v9114_v11 = vunpack.i.l.bf16 %v10869_v10  ;;  %v12693_v12 = vld [vmem:[#allocation100_spill] sm:$0xff] }
 0x38a   :  { %8099 = vmatmul.mubr.msk.f32.gmra.mrb[138].mxu0 %vm1933_vm2, %v12674_v49  ;;  %8017 = vmatprep.mubr.msk.f32.mxu1 %vm1933_vm2, %v12675_v30  ;;  %v8769_v7 = vpack.c.bf16 %v9080_v47, %v9079_v14 }
 0x38b   :  { %8101 = vmatprep.mubr.msk.f32.mxu0 %vm1933_vm2, %v12676_v32  ;;  %v8799_v49 = vpack.c.bf16 %v9115_v62, %v9114_v11  ;;  %v12696_v32 = vld [vmem:[#allocation102_spill] sm:$0xff] }
 0x38c   :  { %8782 = vmatpush3.bf16.msra.mxu0 %v8779_v26  ;;  %v9123_v53 = vpop.permute.xlu1 %9122  ;;  %v9118_v26 = vpop.permute.xlu0 %9117 }
 0x38d   :  { %8784 = vmatprep.subr.bf16.mxu0 %v8783_v58  ;;  %8018 = vmatmul.mubr.msk.f32.gmra.mrb[92].mxu1 %vm1933_vm2, %v12677_v42  ;;  %v9125_v33 = vunpack.i.h.bf16 %v9123_v53  ;;  %v9124_v38 = vunpack.i.l.bf16 %v9123_v53  ;;  %v9120_v4 = vunpack.i.h.bf16 %v9118_v26  ;;  %v9119_v61 = vunpack.i.l.bf16 %v9118_v26 }
 0x38e   :  { %8102 = vmatmul.mubr.msk.f32.gmra.mrb[140].mxu0 %vm1933_vm2, %v12678_v60  ;;  %8020 = vmatprep.mubr.msk.f32.mxu1 %vm1933_vm2, %v12679_v45 }
 0x38f   :  { %8714 = vmatpush3.bf16.xpose.msk.msra.mxu1 %vm10581_vm3, %v8709_v52  ;;  %8104 = vmatprep.mubr.msk.f32.mxu0 %vm1933_vm2, %v12680_v44  ;;  %v10903_v2 = vpack.c.bf16 %v9125_v33, %v9124_v38  ;;  %v9109_v52 = vunpack.i.l.bf16 %v9108_v17 }
 0x390   :  { %8786 = vmatpush3.bf16.msra.mxu0 %v8783_v58  ;;  %8717 = vmatprep.subr.msk.bf16.mxu1 %vm10581_vm3, %v8715_v9  ;;  %v10952_v46 = vpop.permute.xlu1 %9132  ;;  %v8803_v58 = vpack.c.bf16 %v9120_v4, %v9119_v61 }
 0x391   :  { %8788 = vmatprep.subr.bf16.mxu0 %v8787_v48  ;;  %8021 = vmatmul.mubr.msk.f32.gmra.mrb[94].mxu1 %vm1933_vm2, %v12681_v23  ;;  %v8795_v15 = vpack.c.bf16 %v9110_v0, %v9109_v52 }
 0x392   :  { %8105 = vmatmul.mubr.msk.f32.gmra.mrb[142].mxu0 %vm1933_vm2, %v12682_v24  ;;  %8067 = vmatprep.mubr.msk.f32.mxu1 %vm1933_vm2, %v12683_v13 }
 0x394   :  { %8790 = vmatpush3.bf16.msra.mxu0 %v8787_v48  ;;  %v9143_v30 = vpop.permute.xlu1 %9142 }
 0x395   :  { %8808 = vmatprep.subr.bf16.mxu0 %v10903_v2  ;;  %v9145_v10 = vunpack.i.h.bf16 %v9143_v30  ;;  %v9144_v54 = vunpack.i.l.bf16 %v9143_v30 }
 0x397   :  { %8720 = vmatpush3.bf16.xpose.msk.msra.mxu1 %vm10581_vm3, %v8715_v9  ;;  %v10970_v53 = vpack.c.bf16 %v9145_v10, %v9144_v54 }
 0x398   :  { %8723 = vmatprep.subr.msk.bf16.mxu1 %vm10581_vm3, %v8721_v25 }
 0x39f   :  { %8726 = vmatpush3.bf16.xpose.msk.msra.mxu1 %vm10581_vm3, %v8721_v25 }
 0x3a0   :  { %8753 = vmatprep.subr.msk.bf16.mxu1 %vm10581_vm3, %v8751_v51 }
 0x3a6   :  { %8068 = vmatmul.mubr.msk.f32.vlgmr.msra.gmra.mrb[96].mxu1 %vm1933_vm2, %v12684_v37 }
 0x3a7   :  { %8070 = vmatprep.mubr.msk.f32.mxu1 %vm1933_vm2, %v12685_v21  ;;  %8756 = vmatpush3.bf16.xpose.msk.msra.mxu1 %vm10581_vm3, %v8751_v51 }
 0x3a8   :  { %8759 = vmatprep.subr.msk.bf16.mxu1 %vm10581_vm3, %v8757_v31 }
 0x3aa   :  { %8071 = vmatmul.mubr.msk.f32.gmra.mrb[98].mxu1 %vm1933_vm2, %v12686_v29 }
 0x3ab   :  { %8073 = vmatprep.mubr.msk.f32.mxu1 %vm1933_vm2, %v12687_v41 }
 0x3ae   :  { %8074 = vmatmul.mubr.msk.f32.gmra.mrb[100].mxu1 %vm1933_vm2, %v12688_v36 }
 0x3af   :  { %8076 = vmatprep.mubr.msk.f32.mxu1 %vm1933_vm2, %v12689_v8  ;;  %8762 = vmatpush3.bf16.xpose.msk.msra.mxu1 %vm10581_vm3, %v8757_v31 }
 0x3b0   :  { %8765 = vmatprep.subr.msk.bf16.mxu1 %vm10581_vm3, %v8763_v1 }
 0x3b2   :  { %8077 = vmatmul.mubr.msk.f32.gmra.mrb[102].mxu1 %vm1933_vm2, %v12690_v34 }
 0x3b3   :  { %8123 = vmatprep.mubr.msk.f32.mxu1 %vm1933_vm2, %v12691_v28 }
 0x3b7   :  { %8768 = vmatpush3.bf16.xpose.msk.msra.mxu1 %vm10581_vm3, %v8763_v1 }
 0x3b8   :  { %8771 = vmatprep.subr.msk.bf16.mxu1 %vm10581_vm3, %v8769_v7 }
 0x3bf   :  { %8774 = vmatpush3.bf16.xpose.msk.msra.mxu1 %vm10581_vm3, %v8769_v7 }
 0x3c0   :  { %8792 = vmatprep.subr.bf16.mxu1 %v8791_v5 }
 0x3c6   :  { %8124 = vmatmul.mubr.msk.f32.vlgmr.msra.gmra.mrb[104].mxu1 %vm1933_vm2, %v12692_v50 }
 0x3c7   :  { %8126 = vmatprep.mubr.msk.f32.mxu1 %vm1933_vm2, %v12693_v12  ;;  %8794 = vmatpush3.bf16.msra.mxu1 %v8791_v5 }
 0x3c8   :  { %8796 = vmatprep.subr.bf16.mxu1 %v8795_v15 }
 0x3ca   :  { %8127 = vmatmul.mubr.msk.f32.gmra.mrb[106].mxu1 %vm1933_vm2, %v12694_v6 }
 0x3cb   :  { %8129 = vmatprep.mubr.msk.f32.mxu1 %vm1933_vm2, %v12695_v39  ;;  %8798 = vmatpush3.bf16.msra.mxu1 %v8795_v15 }
 0x3cc   :  { %8800 = vmatprep.subr.bf16.mxu1 %v8799_v49 }
 0x3ce   :  { %8130 = vmatmul.mubr.msk.f32.gmra.mrb[108].mxu1 %vm1933_vm2, %v12696_v32 }
 0x3cf   :  { %8132 = vmatprep.mubr.msk.f32.mxu1 %vm1933_vm2, %v10601_v16  ;;  %8802 = vmatpush3.bf16.msra.mxu1 %v8799_v49 }
 0x3d0   :  { %8804 = vmatprep.subr.bf16.mxu1 %v8803_v58 }
 0x3d2   :  { %8133 = vmatmul.mubr.msk.f32.gmra.mrb[110].mxu1 %vm1933_vm2, %v10599_v59 }
 0x3d3   :  { %8806 = vmatpush3.bf16.msra.mxu1 %v8803_v58  ;;  %v11089_v58 = vpop.permute.xlu0 %9127 }
 0x3d4   :  { %8824 = vmatprep.subr.bf16.mxu1 %v10970_v53 }
 0x3f7   :  { %v10973_v42 = vpop.f32.mrb[64].mxu1 }
 0x3f8   :  { %v10975_v9 = vpop.f32.mrb[65].mxu1  ;;  %v3201_v60 = vsel %vm1331_vm1, %v10973_v42, -inf }
 0x3f9   :  { %3202 = vmax.xlane.f32.xlu1 %v3201_v60  ;;  %v3198_v16 = vsel %vm1331_vm1, %v10975_v9, -inf }
 0x3fa   :  { %3199 = vmax.xlane.f32.xlu0 %v3198_v16 }
 0x3fb   :  { %v10981_v45 = vpop.f32.mrb[66].mxu1 }
 0x3fc   :  { %v10983_v59 = vpop.f32.mrb[67].mxu1  ;;  %v3207_v33 = vsel %vm1331_vm1, %v10981_v45, -inf }
 0x3fd   :  { %v3204_v48 = vsel %vm1331_vm1, %v10983_v59, -inf }
 0x3fe   :  { %3208 = vmax.xlane.f32.xlu0 %v3207_v33 }
 0x3ff   :  { %v10987_v38 = vpop.f32.mrb[68].mxu1 }
 0x400   :  { %v10989_v44 = vpop.f32.mrb[69].mxu1  ;;  %v3213_v13 = vsel %vm1331_vm1, %v10987_v38, -inf }
 0x401   :  { %v3210_v23 = vsel %vm1331_vm1, %v10989_v44, -inf }
 0x402   :  { %3205 = vmax.xlane.f32.xlu0 %v3204_v48  ;;  %3211 = vmax.xlane.f32.xlu1 %v3210_v23  ;;  %v11097_v48 = vpop.permute.xlu0 %9137 }
 0x403   :  { %v10995_v43 = vpop.f32.mrb[70].mxu1 }
 0x404   :  { %v10997_v35 = vpop.f32.mrb[71].mxu1  ;;  %v3219_v24 = vsel %vm1331_vm1, %v10995_v43, -inf }
 0x405   :  { %v3216_v25 = vsel %vm1331_vm1, %v10997_v35, -inf }
 0x406   :  { %3214 = vmax.xlane.f32.xlu0 %v3213_v13  ;;  %3220 = vmax.xlane.f32.xlu1 %v3219_v24  ;;  %v11103_v13 = vpop.permute.xlu0 %9147 }
 0x40a   :  { %3217 = vmax.xlane.f32.xlu1 %v3216_v25 }
 0x417   :  { %v11005_v27 = vpop.f32.mrb[72].mxu1 }
 0x418   :  { %v11007_v18 = vpop.f32.mrb[73].mxu1  ;;  %v3225_v51 = vsel %vm1331_vm1, %v11005_v27, -inf }
 0x419   :  { %3226 = vmax.xlane.f32.xlu0 %v3225_v51  ;;  %v3222_v55 = vsel %vm1331_vm1, %v11007_v18, -inf }
 0x41a   :  { %3223 = vmax.xlane.f32.xlu1 %v3222_v55 }
 0x41b   :  { %v11013_v40 = vpop.f32.mrb[74].mxu1 }
 0x41c   :  { %v11015_v31 = vpop.f32.mrb[75].mxu1  ;;  %v3231_v37 = vsel %vm1331_vm1, %v11013_v40, -inf }
 0x41d   :  { %v3228_v29 = vsel %vm1331_vm1, %v11015_v31, -inf }
 0x41e   :  { %3232 = vmax.xlane.f32.xlu1 %v3231_v37 }
 0x41f   :  { %v11019_v21 = vpop.f32.mrb[76].mxu1 }
 0x420   :  { %v11021_v22 = vpop.f32.mrb[77].mxu1  ;;  %v3237_v57 = vsel %vm1331_vm1, %v11019_v21, -inf }
 0x421   :  { %3238 = vmax.xlane.f32.xlu0 %v3237_v57  ;;  %v3234_v36 = vsel %vm1331_vm1, %v11021_v22, -inf }
 0x422   :  { %3229 = vmax.xlane.f32.xlu1 %v3228_v29 }
 0x423   :  { %v11027_v41 = vpop.f32.mrb[78].mxu1 }
 0x424   :  { %v11029_v1 = vpop.f32.mrb[79].mxu1  ;;  %v3243_v8 = vsel %vm1331_vm1, %v11027_v41, -inf }
 0x425   :  { %v3240_v47 = vsel %vm1331_vm1, %v11029_v1, -inf }
 0x426   :  { %3235 = vmax.xlane.f32.xlu1 %v3234_v36  ;;  %v11117_v36 = vpop.permute.xlu1 %9152 }
 0x42a   :  { %3244 = vmax.xlane.f32.xlu1 %v3243_v8 }
 0x42e   :  { %3241 = vmax.xlane.f32.xlu1 %v3240_v47 }
 0x437   :  { %v11037_v14 = vpop.f32.mrb[80].mxu1 }
 0x438   :  { %v11039_v34 = vpop.f32.mrb[128].mxu0  ;;  %v11041_v28 = vpop.f32.mrb[81].mxu1  ;;  %v3249_v7 = vsel %vm1331_vm1, %v11037_v14, -inf }
 0x439   :  { %v11045_v56 = vpop.f32.mrb[129].mxu0  ;;  %3250 = vmax.xlane.f32.xlu1 %v3249_v7  ;;  %v3297_v0 = vsel %vm1331_vm1, %v11039_v34, -inf  ;;  %v3246_v26 = vsel %vm1331_vm1, %v11041_v28, -inf }
 0x43a   :  { %v3294_v3 = vsel %vm1331_vm1, %v11045_v56, -inf }
 0x43b   :  { %3295 = vmax.xlane.f32.xlu0 %v3294_v3  ;;  %v11049_v20 = vpop.f32.mrb[82].mxu1 }
 0x43c   :  { %v11051_v5 = vpop.f32.mrb[130].mxu0  ;;  %v11053_v17 = vpop.f32.mrb[83].mxu1  ;;  %v3255_v30 = vsel %vm1331_vm1, %v11049_v20, -inf }
 0x43d   :  { %12697 = vst [vmem:[#allocation66_spill] sm:$0xff] %v11051_v5  ;;  %v11057_v52 = vpop.f32.mrb[131].mxu0  ;;  %3298 = vmax.xlane.f32.xlu1 %v3297_v0  ;;  %v3252_v62 = vsel %vm1331_vm1, %v11053_v17, -inf  ;;  %v3303_v54 = vsel %vm1331_vm1, %v11051_v5, -inf  ;;  %v11127_v0 = vpop.permute.xlu0 %9157 }
 0x43e   :  { %12698 = vst [vmem:[#allocation77_spill] sm:$0xff] %v11057_v52  ;;  %v3300_v4 = vsel %vm1331_vm1, %v11057_v52, -inf }
 0x43f   :  { %3253 = vmax.xlane.f32.xlu0 %v3252_v62  ;;  %v11061_v11 = vpop.f32.mrb[84].mxu1 }
 0x440   :  { %v11063_v50 = vpop.f32.mrb[132].mxu0  ;;  %v11065_v15 = vpop.f32.mrb[85].mxu1  ;;  %v3261_v60 = vsel %vm1331_vm1, %v11061_v11, -inf }
 0x441   :  { %12699 = vst [vmem:[#allocation68_spill] sm:$0xff] %v11063_v50  ;;  %v11069_v12 = vpop.f32.mrb[133].mxu0  ;;  %3247 = vmax.xlane.f32.xlu1 %v3246_v26  ;;  %v3258_v10 = vsel %vm1331_vm1, %v11065_v15, -inf  ;;  %v3309_v33 = vsel %vm1331_vm1, %v11063_v50, -inf }
 0x442   :  { %12700 = vst [vmem:[#allocation79_spill] sm:$0xff] %v11069_v12  ;;  %v3306_v32 = vsel %vm1331_vm1, %v11069_v12, -inf }
 0x443   :  { %3301 = vmax.xlane.f32.xlu0 %v3300_v4  ;;  %v11073_v61 = vpop.f32.mrb[86].mxu1 }
 0x444   :  { %12701 = vst [vmem:[#allocation67_spill] sm:$0xff] %v11073_v61  ;;  %v11075_v6 = vpop.f32.mrb[134].mxu0  ;;  %v11077_v49 = vpop.f32.mrb[87].mxu1  ;;  %v3267_v24 = vsel %vm1331_vm1, %v11073_v61, -inf }
 0x445   :  { %12702 = vst [vmem:[#allocation78_spill] sm:$0xff] %v11075_v6  ;;  %v11081_v39 = vpop.f32.mrb[135].mxu0  ;;  %3256 = vmax.xlane.f32.xlu1 %v3255_v30  ;;  %v3264_v16 = vsel %vm1331_vm1, %v11077_v49, -inf  ;;  %v3315_v51 = vsel %vm1331_vm1, %v11075_v6, -inf  ;;  %v12725_v6 = vld [vmem:[#allocation98_spill] sm:$0xff] }
 0x446   :  { %12703 = vst [vmem:[#allocation70_spill] sm:$0xff] %v11081_v39  ;;  %v3312_v23 = vsel %vm1331_vm1, %v11081_v39, -inf }
 0x447   :  { %3259 = vmax.xlane.f32.xlu0 %v3258_v10 }
 0x449   :  { %3304 = vmax.xlane.f32.xlu1 %v3303_v54 }
 0x44b   :  { %3307 = vmax.xlane.f32.xlu0 %v3306_v32 }
 0x44d   :  { %3262 = vmax.xlane.f32.xlu1 %v3261_v60 }
 0x44f   :  { %3265 = vmax.xlane.f32.xlu0 %v3264_v16  ;;  %v11145_v16 = vpop.permute.xlu1 %9162 }
 0x451   :  { %3310 = vmax.xlane.f32.xlu1 %v3309_v33  ;;  %v11147_v33 = vpop.permute.xlu0 %9167 }
 0x453   :  { %3313 = vmax.xlane.f32.xlu0 %v3312_v23 }
 0x455   :  { %3268 = vmax.xlane.f32.xlu1 %v3267_v24 }
 0x458   :  { %v11105_v25 = vpop.f32.mrb[88].mxu1 }
 0x459   :  { %12704 = vst [vmem:[#allocation89_spill] sm:$0xff] %v11105_v25  ;;  %v11109_v55 = vpop.f32.mrb[136].mxu0  ;;  %v11111_v37 = vpop.f32.mrb[89].mxu1  ;;  %3316 = vmax.xlane.f32.xlu1 %v3315_v51  ;;  %v3273_v47 = vsel %vm1331_vm1, %v11105_v25, -inf }
 0x45a   :  { %12705 = vst [vmem:[#allocation69_spill] sm:$0xff] %v11109_v55  ;;  %12706 = vst [vmem:[#allocation88_spill] sm:$0xff] %v11111_v37  ;;  %v11113_v57 = vpop.f32.mrb[137].mxu0  ;;  %v3270_v29 = vsel %vm1331_vm1, %v11111_v37, -inf  ;;  %v3345_v30 = vsel %vm1331_vm1, %v11109_v55, -inf }
 0x45b   :  { %12707 = vst [vmem:[#allocation72_spill] sm:$0xff] %v11113_v57  ;;  %3271 = vmax.xlane.f32.xlu0 %v3270_v29  ;;  %v3342_v26 = vsel %vm1331_vm1, %v11113_v57, -inf }
 0x45c   :  { %v11119_v8 = vpop.f32.mrb[90].mxu1 }
 0x45d   :  { %12708 = vst [vmem:[#allocation91_spill] sm:$0xff] %v11119_v8  ;;  %v11123_v7 = vpop.f32.mrb[138].mxu0  ;;  %v11125_v3 = vpop.f32.mrb[91].mxu1  ;;  %3274 = vmax.xlane.f32.xlu1 %v3273_v47  ;;  %v3279_v24 = vsel %vm1331_vm1, %v11119_v8, -inf }
 0x45e   :  { %12709 = vst [vmem:[#allocation71_spill] sm:$0xff] %v11123_v7  ;;  %12710 = vst [vmem:[#allocation90_spill] sm:$0xff] %v11125_v3  ;;  %v11129_v62 = vpop.f32.mrb[139].mxu0  ;;  %v3276_v60 = vsel %vm1331_vm1, %v11125_v3, -inf  ;;  %v11167_v8 = vpop.permute.xlu0 %9177 }
 0x45f   :  { %12711 = vst [vmem:[#allocation74_spill] sm:$0xff] %v11129_v62  ;;  %3343 = vmax.xlane.f32.xlu0 %v3342_v26  ;;  %v3348_v26 = vsel %vm1331_vm1, %v11129_v62, -inf }
 0x460   :  { %v11133_v4 = vpop.f32.mrb[92].mxu1 }
 0x461   :  { %12712 = vst [vmem:[#allocation93_spill] sm:$0xff] %v11133_v4  ;;  %v11137_v10 = vpop.f32.mrb[140].mxu0  ;;  %v11139_v54 = vpop.f32.mrb[93].mxu1  ;;  %3346 = vmax.xlane.f32.xlu1 %v3345_v30  ;;  %v3351_v30 = vsel %vm1331_vm1, %v11123_v7, -inf }
 0x462   :  { %12713 = vst [vmem:[#allocation73_spill] sm:$0xff] %v11137_v10  ;;  %12714 = vst [vmem:[#allocation92_spill] sm:$0xff] %v11139_v54  ;;  %v11141_v32 = vpop.f32.mrb[141].mxu0  ;;  %v3282_v55 = vsel %vm1331_vm1, %v11139_v54, -inf  ;;  %v11177_v7 = vpop.permute.xlu0 %9187 }
 0x463   :  { %12715 = vst [vmem:[#allocation76_spill] sm:$0xff] %v11141_v32  ;;  %3277 = vmax.xlane.f32.xlu0 %v3276_v60  ;;  %v11163_v60 = vpop.permute.xlu1 %9172  ;;  %v3354_v62 = vsel %vm1331_vm1, %v11141_v32, -inf  ;;  %12718 = vst [vmem:[#allocation94_spill] sm:$0xff] %v11177_v7 }
 0x464   :  { %v11149_v23 = vpop.f32.mrb[94].mxu1 }
 0x465   :  { %12716 = vst [vmem:[#allocation95_spill] sm:$0xff] %v11149_v23  ;;  %v11153_v51 = vpop.f32.mrb[142].mxu0  ;;  %v11155_v29 = vpop.f32.mrb[95].mxu1  ;;  %3280 = vmax.xlane.f32.xlu1 %v3279_v24  ;;  %v3285_v24 = vsel %vm1331_vm1, %v11133_v4, -inf }
 0x466   :  { %12717 = vst [vmem:[#allocation75_spill] sm:$0xff] %v11155_v29  ;;  %v11157_v47 = vpop.f32.mrb[143].mxu0  ;;  %v3288_v54 = vsel %vm1331_vm1, %v11155_v29, -inf  ;;  %v11185_v32 = vpop.permute.xlu0 %9197 }
 0x467   :  { %3349 = vmax.xlane.f32.xlu0 %v3348_v26  ;;  %v11173_v26 = vpop.permute.xlu1 %9182  ;;  %12720 = vst [vmem:[#allocation80_spill] sm:$0xff] %v11185_v32 }
 0x469   :  { %3352 = vmax.xlane.f32.xlu1 %v3351_v30  ;;  %v3357_v30 = vsel %vm1331_vm1, %v11137_v10, -inf }
 0x46a   :  { %v11193_v7 = vpop.permute.xlu0 %9207 }
 0x46b   :  { %3283 = vmax.xlane.f32.xlu0 %v3282_v55  ;;  %v3291_v55 = vsel %vm1331_vm1, %v11149_v23, -inf  ;;  %12722 = vst [vmem:[#allocation82_spill] sm:$0xff] %v11193_v7 }
 0x46d   :  { %3286 = vmax.xlane.f32.xlu1 %v3285_v24  ;;  %v11183_v24 = vpop.permute.xlu1 %9192 }
 0x46e   :  { %12719 = vst [vmem:[#allocation81_spill] sm:$0xff] %v11183_v24  ;;  %v11205_v24 = vpop.permute.xlu0 %9217 }
 0x46f   :  { %3355 = vmax.xlane.f32.xlu0 %v3354_v62  ;;  %12724 = vst [vmem:[#allocation84_spill] sm:$0xff] %v11205_v24 }
 0x471   :  { %3358 = vmax.xlane.f32.xlu1 %v3357_v30  ;;  %v11191_v10 = vpop.permute.xlu1 %9202 }
 0x472   :  { %12721 = vst [vmem:[#allocation83_spill] sm:$0xff] %v11191_v10 }
 0x473   :  { %3289 = vmax.xlane.f32.xlu0 %v3288_v54 }
 0x475   :  { %3292 = vmax.xlane.f32.xlu1 %v3291_v55  ;;  %v11201_v23 = vpop.permute.xlu1 %9212 }
 0x476   :  { %12723 = vst [vmem:[#allocation85_spill] sm:$0xff] %v11201_v23  ;;  %v12726_v23 = vld [vmem:[#allocation101_spill] sm:$0xff] }
 0x479   :  { %v11187_v62 = vpop.f32.mrb[96].mxu1 }
 0x47a   :  { %v11189_v4 = vpop.f32.mrb[97].mxu1 }
 0x47d   :  { %v11195_v30 = vpop.f32.mrb[98].mxu1 }
 0x47e   :  { %v11197_v29 = vpop.f32.mrb[99].mxu1 }
 0x481   :  { %v11199_v54 = vpop.f32.mrb[100].mxu1 }
 0x482   :  { %v11203_v55 = vpop.f32.mrb[101].mxu1 }
 0x485   :  { %v11207_v32 = vpop.f32.mrb[102].mxu1 }
 0x486   :  { %v11209_v57 = vpop.f32.mrb[103].mxu1  ;;  %v3203_v3 = vpop.xlane.xlu1 %3202  ;;  %9222 = vrot.lane.b32.xlu1 %v12725_v6, %s9498_s29 }
 0x487   :  { %v3391_v7 = vsub.f32 %v10973_v42, %v3203_v3  ;;  %v3200_v39 = vpop.xlane.xlu0 %3199 }
 0x488   :  { %v3390_v25 = vsub.f32 %v10975_v9, %v3200_v39 }
 0x489   :  { %v3456_v50 = vmul.f32 1.442695, %v3391_v7  ;;  %9227 = vrot.lane.b32.xlu0 %v12726_v23, %s9498_s29  ;;  %v9130_v7 = vunpack.i.h.bf16 %v11089_v58 }
 0x48a   :  { %v3454_v37 = vmul.f32 1.442695, %v3390_v25  ;;  %v9129_v25 = vunpack.i.l.bf16 %v11089_v58  ;;  %v9134_v58 = vunpack.i.l.bf16 %v10952_v46 }
 0x48b   :  { %v3209_v12 = vpop.xlane.xlu0 %3208 }
 0x48c   :  { %9241 = vpow2.f32 %v3454_v37  ;;  %v3393_v24 = vsub.f32 %v10981_v45, %v3209_v12 }
 0x48d   :  { %9243 = vpow2.f32 %v3456_v50 }
 0x48e   :  { %v3460_v42 = vmul.f32 1.442695, %v3393_v24  ;;  %v9140_v24 = vunpack.i.h.bf16 %v11097_v48 }
 0x48f   :  { %v3206_v5 = vpop.xlane.xlu0 %3205  ;;  %v3212_v10 = vpop.xlane.xlu1 %3211 }
 0x490   :  { %v3392_v52 = vsub.f32 %v10983_v59, %v3206_v5  ;;  %v3394_v6 = vsub.f32 %v10989_v44, %v3212_v10  ;;  %v9135_v5 = vunpack.i.h.bf16 %v10952_v46  ;;  %v9139_v46 = vunpack.i.l.bf16 %v11097_v48 }
 0x491   :  { %v9165_v48 = vunpack.i.h.bf16 %v11145_v16 }
 0x492   :  { %v3458_v3 = vmul.f32 1.442695, %v3392_v52  ;;  %v3462_v61 = vmul.f32 1.442695, %v3394_v6  ;;  %v8815_v6 = vpack.c.bf16 %v9135_v5, %v9134_v58 }
 0x493   :  { %v3215_v9 = vpop.xlane.xlu0 %3214  ;;  %v3221_v39 = vpop.xlane.xlu1 %3220 }
 0x494   :  { %9245 = vpow2.f32 %v3458_v3  ;;  %v3395_v50 = vsub.f32 %v10987_v38, %v3215_v9  ;;  %v3397_v45 = vsub.f32 %v10995_v43, %v3221_v39  ;;  %v8811_v43 = vpack.c.bf16 %v9130_v7, %v9129_v25 }
 0x495   :  { %9247 = vpow2.f32 %v3460_v42  ;;  %v9164_v39 = vunpack.i.l.bf16 %v11145_v16  ;;  %v8819_v7 = vpack.c.bf16 %v9140_v24, %v9139_v46 }
 0x496   :  { %v11224_v12 = vpop.eup %9241  ;;  %9249 = vpow2.f32 %v3462_v61  ;;  %v3464_v59 = vmul.f32 1.442695, %v3395_v50  ;;  %v3468_v37 = vmul.f32 1.442695, %v3397_v45 }
 0x497   :  { %v11226_v44 = vpop.eup %9243  ;;  %8151 = vmatprep.mubr.msk.f32.mxu0 %vm1331_vm1, %v11224_v12  ;;  %v3218_v52 = vpop.xlane.xlu1 %3217 }
 0x498   :  { %9251 = vpow2.f32 %v3464_v59  ;;  %v3396_v38 = vsub.f32 %v10997_v35, %v3218_v52  ;;  %8152 = vmatmul.mubr.msk.f32.vlgmr.msra.gmra.mrb[144].mxu0 %vm1331_vm1, %v11226_v44  ;;  %v11268_v59 = vpack.c.bf16 %v9165_v48, %v9164_v39  ;;  %v3318_v39 = vsel %vm1331_vm1, %v11189_v4, -inf }
 0x499   :  { %v11235_v61 = vpop.f32.mrb[104].mxu1  ;;  %8810 = vmatpush3.bf16.msra.mxu0 %v10903_v2 }
 0x49a   :  { %12727 = vst [vmem:[#allocation87_spill] sm:$0xff] %v11235_v61  ;;  %v3466_v10 = vmul.f32 1.442695, %v3396_v38  ;;  %v11238_v23 = vpop.f32.mrb[105].mxu1  ;;  %8812 = vmatprep.subr.bf16.mxu0 %v8811_v43 }
 0x49b   :  { %12728 = vst [vmem:[#allocation86_spill] sm:$0xff] %v11238_v23 }
 0x49c   :  { %9253 = vpow2.f32 %v3466_v10  ;;  %v3360_v10 = vsel %vm1331_vm1, %v11157_v47, -inf }
 0x49d   :  { %9255 = vpow2.f32 %v3468_v37  ;;  %v11242_v35 = vpop.f32.mrb[106].mxu1  ;;  %8814 = vmatpush3.bf16.msra.mxu0 %v8811_v43 }
 0x49e   :  { %12729 = vst [vmem:[#allocation97_spill] sm:$0xff] %v11242_v35  ;;  %v11244_v42 = vpop.eup %9245  ;;  %v11246_v3 = vpop.f32.mrb[107].mxu1  ;;  %8816 = vmatprep.subr.bf16.mxu0 %v8815_v6 }
 0x49f   :  { %12730 = vst [vmem:[#allocation96_spill] sm:$0xff] %v11246_v3  ;;  %v11248_v2 = vpop.eup %9247  ;;  %8154 = vmatprep.mubr.msk.f32.mxu0 %vm1331_vm1, %v11244_v42 }
 0x4a0   :  { %v11252_v9 = vpop.eup %9249  ;;  %8155 = vmatmul.mubr.msk.f32.gmra.mrb[146].mxu0 %vm1331_vm1, %v11248_v2 }
 0x4a1   :  { %v11258_v25 = vpop.f32.mrb[108].mxu1  ;;  %8818 = vmatpush3.bf16.msra.mxu0 %v8815_v6  ;;  %8157 = vmatprep.mubr.msk.f32.mxu0 %vm1331_vm1, %v11252_v9  ;;  %v3363_v6 = vsel %vm1331_vm1, %v11153_v51, -inf }
 0x4a2   :  { %12731 = vst [vmem:[#allocation100_spill] sm:$0xff] %v11258_v25  ;;  %v11262_v50 = vpop.eup %9251  ;;  %v11264_v45 = vpop.f32.mrb[109].mxu1  ;;  %8820 = vmatprep.subr.bf16.mxu0 %v8819_v7 }
 0x4a3   :  { %12732 = vst [vmem:[#allocation99_spill] sm:$0xff] %v11264_v45 }
 0x4a4   :  { %8158 = vmatmul.mubr.msk.f32.gmra.mrb[148].mxu0 %vm1331_vm1, %v11262_v50 }
 0x4a5   :  { %v11270_v16 = vpop.f32.mrb[110].mxu1  ;;  %8822 = vmatpush3.bf16.msra.mxu0 %v8819_v7 }
 0x4a6   :  { %12733 = vst [vmem:[#allocation103_spill] sm:$0xff] %v11270_v16  ;;  %v11272_v5 = vpop.eup %9253  ;;  %v11274_v52 = vpop.f32.mrb[111].mxu1  ;;  %8840 = vmatprep.subr.bf16.mxu0 %v11268_v59 }
 0x4a7   :  { %12734 = vst [vmem:[#allocation102_spill] sm:$0xff] %v11274_v52  ;;  %v3227_v58 = vpop.xlane.xlu0 %3226  ;;  %v11277_v38 = vpop.eup %9255  ;;  %8160 = vmatprep.mubr.msk.f32.mxu0 %vm1331_vm1, %v11272_v5 }
 0x4a8   :  { %v3399_v43 = vsub.f32 %v11005_v27, %v3227_v58  ;;  %v3224_v37 = vpop.xlane.xlu1 %3223  ;;  %3361 = vmax.xlane.f32.xlu0 %v3360_v10  ;;  %8161 = vmatmul.mubr.msk.f32.gmra.mrb[150].mxu0 %vm1331_vm1, %v11277_v38 }
 0x4a9   :  { %v3398_v24 = vsub.f32 %v11007_v18, %v3224_v37  ;;  %v3321_v18 = vsel %vm1331_vm1, %v11187_v62, -inf  ;;  %v3324_v37 = vsel %vm1331_vm1, %v11197_v29, -inf }
 0x4aa   :  { %v3472_v46 = vmul.f32 1.442695, %v3399_v43  ;;  %3364 = vmax.xlane.f32.xlu1 %v3363_v6 }
 0x4ab   :  { %v3470_v48 = vmul.f32 1.442695, %v3398_v24 }
 0x4ac   :  { %v3233_v27 = vpop.xlane.xlu1 %3232  ;;  %3319 = vmax.xlane.f32.xlu0 %v3318_v39  ;;  %v9150_v39 = vunpack.i.h.bf16 %v11103_v13 }
 0x4ad   :  { %9257 = vpow2.f32 %v3470_v48  ;;  %v3401_v7 = vsub.f32 %v11013_v40, %v3233_v27  ;;  %v3330_v27 = vsel %vm1331_vm1, %v11203_v55, -inf }
 0x4ae   :  { %9259 = vpow2.f32 %v3472_v46  ;;  %v3239_v58 = vpop.xlane.xlu0 %3238  ;;  %3322 = vmax.xlane.f32.xlu1 %v3321_v18  ;;  %v3327_v46 = vsel %vm1331_vm1, %v11195_v30, -inf  ;;  %v9149_v18 = vunpack.i.l.bf16 %v11103_v13  ;;  %v3336_v13 = vsel %vm1331_vm1, %v11209_v57, -inf }
 0x4af   :  { %v3476_v24 = vmul.f32 1.442695, %v3401_v7  ;;  %v3403_v6 = vsub.f32 %v11019_v21, %v3239_v58  ;;  %v3333_v21 = vsel %vm1331_vm1, %v11199_v54, -inf }
 0x4b0   :  { %v3230_v43 = vpop.xlane.xlu1 %3229  ;;  %3325 = vmax.xlane.f32.xlu0 %v3324_v37 }
 0x4b1   :  { %v3400_v10 = vsub.f32 %v11015_v31, %v3230_v43  ;;  %v3480_v7 = vmul.f32 1.442695, %v3403_v6  ;;  %v8827_v6 = vpack.c.bf16 %v9150_v39, %v9149_v18 }
 0x4b2   :  { %3328 = vmax.xlane.f32.xlu1 %v3327_v46 }
 0x4b3   :  { %v3474_v48 = vmul.f32 1.442695, %v3400_v10 }
 0x4b4   :  { %v3236_v40 = vpop.xlane.xlu1 %3235  ;;  %3331 = vmax.xlane.f32.xlu0 %v3330_v27  ;;  %v9160_v27 = vunpack.i.h.bf16 %v11127_v0 }
 0x4b5   :  { %9261 = vpow2.f32 %v3474_v48  ;;  %v3402_v31 = vsub.f32 %v11021_v22, %v3236_v40  ;;  %v9155_v22 = vunpack.i.h.bf16 %v11117_v36  ;;  %v3339_v48 = vsel %vm1331_vm1, %v11207_v32, -inf }
 0x4b6   :  { %9263 = vpow2.f32 %v3476_v24  ;;  %3334 = vmax.xlane.f32.xlu1 %v3333_v21  ;;  %v9154_v24 = vunpack.i.l.bf16 %v11117_v36  ;;  %v3366_v36 = vsel %vm1331_vm1, %v11238_v23, -inf }
 0x4b7   :  { %v11307_v58 = vpop.eup %9257  ;;  %v3478_v43 = vmul.f32 1.442695, %v3402_v31  ;;  %v9159_v31 = vunpack.i.l.bf16 %v11127_v0  ;;  %v9185_v0 = vunpack.i.h.bf16 %v11173_v26 }
 0x4b8   :  { %v11309_v37 = vpop.eup %9259  ;;  %v3245_v10 = vpop.xlane.xlu1 %3244  ;;  %8179 = vmatprep.mubr.msk.f32.mxu1 %vm1331_vm1, %v11307_v58  ;;  %3337 = vmax.xlane.f32.xlu0 %v3336_v13  ;;  %v8831_v18 = vpack.c.bf16 %v9155_v22, %v9154_v24  ;;  %v3375_v22 = vsel %vm1331_vm1, %v11242_v35, -inf }
 0x4b9   :  { %9265 = vpow2.f32 %v3478_v43  ;;  %8180 = vmatmul.mubr.msk.f32.vlgmr.msra.gmra.mrb[112].mxu1 %vm1331_vm1, %v11309_v37  ;;  %v3405_v46 = vsub.f32 %v11027_v41, %v3245_v10  ;;  %v9184_v10 = vunpack.i.l.bf16 %v11173_v26  ;;  %v8835_v13 = vpack.c.bf16 %v9160_v27, %v9159_v31 }
 0x4ba   :  { %9267 = vpow2.f32 %v3480_v7  ;;  %8826 = vmatpush3.bf16.msra.mxu1 %v10970_v53  ;;  %3340 = vmax.xlane.f32.xlu1 %v3339_v48  ;;  %v3369_v53 = vsel %vm1331_vm1, %v11235_v61, -inf  ;;  %v3378_v26 = vsel %vm1331_vm1, %v11264_v45, -inf  ;;  %v3381_v48 = vsel %vm1331_vm1, %v11258_v25, -inf  ;;  %v12752_v45 = vld [vmem:[#allocation74_spill] sm:$0xff] }
 0x4bb   :  { %8828 = vmatprep.subr.bf16.mxu1 %v8827_v6  ;;  %v3484_v41 = vmul.f32 1.442695, %v3405_v46  ;;  %v11354_v46 = vpack.c.bf16 %v9185_v0, %v9184_v10  ;;  %v3387_v31 = vsel %vm1331_vm1, %v11270_v16, -inf }
 0x4bc   :  { %v3242_v40 = vpop.xlane.xlu1 %3241  ;;  %3367 = vmax.xlane.f32.xlu0 %v3366_v36  ;;  %v3384_v36 = vsel %vm1331_vm1, %v11274_v52, -inf }
 0x4bd   :  { %v3404_v39 = vsub.f32 %v11029_v1, %v3242_v40  ;;  %v3372_v1 = vsel %vm1331_vm1, %v11246_v3, -inf  ;;  %v12756_v3 = vld [vmem:[#allocation84_spill] sm:$0xff] }
 0x4be   :  { %8830 = vmatpush3.bf16.msra.mxu1 %v8827_v6  ;;  %3370 = vmax.xlane.f32.xlu1 %v3369_v53  ;;  %v9220_v61 = vunpack.i.h.bf16 %v12756_v3  ;;  %v9219_v23 = vunpack.i.l.bf16 %v12756_v3 }
 0x4bf   :  { %v11330_v7 = vpop.eup %9261  ;;  %v3482_v21 = vmul.f32 1.442695, %v3404_v39  ;;  %8832 = vmatprep.subr.bf16.mxu1 %v8831_v18 }
 0x4c0   :  { %v11332_v43 = vpop.eup %9263  ;;  %8182 = vmatprep.mubr.msk.f32.mxu1 %vm1331_vm1, %v11330_v7  ;;  %3373 = vmax.xlane.f32.xlu0 %v3372_v1 }
 0x4c1   :  { %9269 = vpow2.f32 %v3482_v21  ;;  %8183 = vmatmul.mubr.msk.f32.gmra.mrb[114].mxu1 %vm1331_vm1, %v11332_v43 }
 0x4c2   :  { %9271 = vpow2.f32 %v3484_v41  ;;  %8834 = vmatpush3.bf16.msra.mxu1 %v8831_v18  ;;  %3376 = vmax.xlane.f32.xlu1 %v3375_v22 }
 0x4c3   :  { %v11344_v24 = vpop.eup %9265  ;;  %8836 = vmatprep.subr.bf16.mxu1 %v8835_v13 }
 0x4c4   :  { %v11346_v6 = vpop.eup %9267  ;;  %8185 = vmatprep.mubr.msk.f32.mxu1 %vm1331_vm1, %v11344_v24  ;;  %3379 = vmax.xlane.f32.xlu0 %v3378_v26 }
 0x4c5   :  { %8186 = vmatmul.mubr.msk.f32.gmra.mrb[116].mxu1 %vm1331_vm1, %v11346_v6 }
 0x4c6   :  { %8838 = vmatpush3.bf16.msra.mxu1 %v8835_v13  ;;  %v3251_v40 = vpop.xlane.xlu1 %3250  ;;  %3382 = vmax.xlane.f32.xlu1 %v3381_v48 }
 0x4c7   :  { %8856 = vmatprep.subr.bf16.mxu1 %v11354_v46  ;;  %v3407_v53 = vsub.f32 %v11037_v14, %v3251_v40 }
 0x4c8   :  { %v11361_v27 = vpop.xlane.xlu0 %3295  ;;  %3385 = vmax.xlane.f32.xlu0 %v3384_v36 }
 0x4c9   :  { %v3488_v13 = vmul.f32 1.442695, %v3407_v53  ;;  %v9170_v53 = vunpack.i.h.bf16 %v11147_v33 }
 0x4ca   :  { %v11367_v18 = vpop.xlane.xlu1 %3298  ;;  %3388 = vmax.xlane.f32.xlu1 %v3387_v31 }
 0x4cb   :  { %v11365_v39 = vpop.eup %9269 }
 0x4cc   :  { %v11369_v41 = vpop.eup %9271  ;;  %8188 = vmatprep.mubr.msk.f32.mxu1 %vm1331_vm1, %v11365_v39  ;;  %v3254_v21 = vpop.xlane.xlu0 %3253 }
 0x4cd   :  { %8189 = vmatmul.mubr.msk.f32.gmra.mrb[118].mxu1 %vm1331_vm1, %v11369_v41  ;;  %v3408_v1 = vsub.f32 %v11053_v17, %v3254_v21 }
 0x4ce   :  { %v3248_v0 = vpop.xlane.xlu1 %3247 }
 0x4cf   :  { %v3406_v10 = vsub.f32 %v11041_v28, %v3248_v0  ;;  %v3490_v26 = vmul.f32 1.442695, %v3408_v1  ;;  %v9169_v1 = vunpack.i.l.bf16 %v11147_v33 }
 0x4d0   :  { %v11378_v22 = vpop.xlane.xlu0 %3301 }
 0x4d1   :  { %v3486_v48 = vmul.f32 1.442695, %v3406_v10 }
 0x4d2   :  { %v3257_v36 = vpop.xlane.xlu1 %3256 }
 0x4d3   :  { %9273 = vpow2.f32 %v3486_v48  ;;  %v3409_v31 = vsub.f32 %v11049_v20, %v3257_v36  ;;  %v9174_v48 = vunpack.i.l.bf16 %v11163_v60  ;;  %v3422_v36 = vsub.f32 %v11045_v56, %v11361_v27  ;;  %v12735_v27 = vld [vmem:[#allocation67_spill] sm:$0xff] }
 0x4d4   :  { %9275 = vpow2.f32 %v3488_v13  ;;  %v3260_v14 = vpop.xlane.xlu0 %3259  ;;  %v3423_v56 = vsub.f32 %v11039_v34, %v11367_v18  ;;  %v12738_v18 = vld [vmem:[#allocation66_spill] sm:$0xff] }
 0x4d5   :  { %9277 = vpow2.f32 %v3490_v26  ;;  %v3492_v40 = vmul.f32 1.442695, %v3409_v31  ;;  %v3410_v16 = vsub.f32 %v11065_v15, %v3260_v14  ;;  %v9175_v26 = vunpack.i.h.bf16 %v11163_v60 }
 0x4d6   :  { %v3305_v52 = vpop.xlane.xlu1 %3304 }
 0x4d7   :  { %9279 = vpow2.f32 %v3492_v40  ;;  %v3494_v17 = vmul.f32 1.442695, %v3410_v16  ;;  %v8847_v31 = vpack.c.bf16 %v9175_v26, %v9174_v48  ;;  %v9180_v40 = vunpack.i.h.bf16 %v11167_v8 }
 0x4d8   :  { %v11382_v21 = vpop.xlane.xlu0 %3307  ;;  %v3520_v48 = vmul.f32 1.442695, %v3423_v56 }
 0x4d9   :  { %9281 = vpow2.f32 %v3494_v17  ;;  %v9179_v17 = vunpack.i.l.bf16 %v11167_v8  ;;  %v12737_v8 = vld [vmem:[#allocation83_spill] sm:$0xff] }
 0x4da   :  { %v3263_v28 = vpop.xlane.xlu1 %3262  ;;  %v9204_v34 = vunpack.i.l.bf16 %v12737_v8 }
 0x4db   :  { %v3411_v0 = vsub.f32 %v11061_v11, %v3263_v28  ;;  %9237 = vrot.lane.b32.xlu1 %v10605_v19, %s9498_s29  ;;  %v3518_v28 = vmul.f32 1.442695, %v3422_v36 }
 0x4dc   :  { %v3266_v20 = vpop.xlane.xlu0 %3265 }
 0x4dd   :  { %v11389_v10 = vpop.eup %9273  ;;  %v3496_v15 = vmul.f32 1.442695, %v3411_v0  ;;  %v3412_v13 = vsub.f32 %v11077_v49, %v3266_v20  ;;  %v8843_v49 = vpack.c.bf16 %v9170_v53, %v9169_v1  ;;  %v12736_v53 = vld [vmem:[#allocation77_spill] sm:$0xff] }
 0x4de   :  { %v11392_v16 = vpop.eup %9275  ;;  %9232 = vrot.lane.b32.xlu0 %v10591_v63, %s9498_s29  ;;  %8207 = vmatprep.mubr.msk.f32.mxu0 %vm1331_vm1, %v11389_v10  ;;  %v3311_v11 = vpop.xlane.xlu1 %3310  ;;  %v3424_v1 = vsub.f32 %v12736_v53, %v11378_v22 }
 0x4df   :  { %v11400_v19 = vpop.eup %9277  ;;  %9283 = vpow2.f32 %v3496_v15  ;;  %v3498_v33 = vmul.f32 1.442695, %v3412_v13  ;;  %8208 = vmatmul.mubr.msk.f32.vlgmr.msra.gmra.mrb[152].mxu0 %vm1331_vm1, %v11392_v16  ;;  %v9205_v15 = vunpack.i.h.bf16 %v12737_v8  ;;  %v3425_v13 = vsub.f32 %v12738_v18, %v3305_v52  ;;  %v12743_v8 = vld [vmem:[#allocation70_spill] sm:$0xff] }
 0x4e0   :  { %8842 = vmatpush3.bf16.msra.mxu0 %v11268_v59  ;;  %8210 = vmatprep.mubr.msk.f32.mxu0 %vm1331_vm1, %v11400_v19  ;;  %v3314_v0 = vpop.xlane.xlu0 %3313  ;;  %v3522_v36 = vmul.f32 1.442695, %v3424_v1 }
 0x4e1   :  { %v11409_v63 = vpop.eup %9279  ;;  %9285 = vpow2.f32 %v3498_v33  ;;  %8844 = vmatprep.subr.bf16.mxu0 %v8843_v49  ;;  %v8851_v33 = vpack.c.bf16 %v9180_v40, %v9179_v17  ;;  %v3524_v25 = vmul.f32 1.442695, %v3425_v13  ;;  %v8871_v56 = vpack.c.bf16 %v9205_v15, %v9204_v34  ;;  %v12741_v40 = vld [vmem:[#allocation68_spill] sm:$0xff] }
 0x4e2   :  { %v3269_v60 = vpop.xlane.xlu1 %3268 }
 0x4e3   :  { %v11411_v14 = vpop.eup %9281  ;;  %v3413_v59 = vsub.f32 %v12735_v27, %v3269_v60  ;;  %8211 = vmatmul.mubr.msk.f32.gmra.mrb[154].mxu0 %vm1331_vm1, %v11409_v63  ;;  %v12739_v60 = vld [vmem:[#allocation79_spill] sm:$0xff] }
 0x4e4   :  { %8846 = vmatpush3.bf16.msra.mxu0 %v8843_v49  ;;  %8213 = vmatprep.mubr.msk.f32.mxu0 %vm1331_vm1, %v11411_v14  ;;  %v3426_v27 = vsub.f32 %v12739_v60, %v11382_v21  ;;  %v3428_v21 = vsub.f32 %v12743_v8, %v3314_v0  ;;  %v12745_v0 = vld [vmem:[#allocation90_spill] sm:$0xff] }
 0x4e5   :  { %v3500_v20 = vmul.f32 1.442695, %v3413_v59  ;;  %8848 = vmatprep.subr.bf16.mxu0 %v8847_v31  ;;  %v12740_v59 = vld [vmem:[#allocation88_spill] sm:$0xff]  ;;  %v12749_v8 = vld [vmem:[#allocation94_spill] sm:$0xff] }
 0x4e6   :  { %v3317_v26 = vpop.xlane.xlu1 %3316  ;;  %v3526_v13 = vmul.f32 1.442695, %v3426_v27 }
 0x4e7   :  { %9287 = vpow2.f32 %v3500_v20 }
 0x4e8   :  { %9289 = vpow2.f32 %v3518_v28  ;;  %8850 = vmatpush3.bf16.msra.mxu0 %v8847_v31  ;;  %v3272_v22 = vpop.xlane.xlu0 %3271  ;;  %v3427_v31 = vsub.f32 %v12741_v40, %v3311_v11  ;;  %v12742_v28 = vld [vmem:[#allocation89_spill] sm:$0xff]  ;;  %v3530_v11 = vmul.f32 1.442695, %v3428_v21  ;;  %v9190_v21 = vunpack.i.h.bf16 %v12749_v8 }
 0x4e9   :  { %v11427_v49 = vpop.eup %9283  ;;  %v3414_v53 = vsub.f32 %v12740_v59, %v3272_v22  ;;  %8852 = vmatprep.subr.bf16.mxu0 %v8851_v33  ;;  %9291 = vpow2.f32 %v3520_v48  ;;  %v12744_v48 = vld [vmem:[#allocation78_spill] sm:$0xff] }
 0x4ea   :  { %8214 = vmatmul.mubr.msk.f32.gmra.mrb[156].mxu0 %vm1331_vm1, %v11427_v49  ;;  %v3275_v52 = vpop.xlane.xlu1 %3274  ;;  %9293 = vpow2.f32 %v3522_v36  ;;  %v3528_v34 = vmul.f32 1.442695, %v3427_v31  ;;  %v3429_v60 = vsub.f32 %v12744_v48, %v3317_v26 }
 0x4eb   :  { %v11434_v20 = vpop.eup %9285  ;;  %v3502_v17 = vmul.f32 1.442695, %v3414_v53  ;;  %v3415_v1 = vsub.f32 %v12742_v28, %v3275_v52  ;;  %v12748_v28 = vld [vmem:[#allocation91_spill] sm:$0xff] }
 0x4ec   :  { %8216 = vmatprep.mubr.msk.f32.mxu0 %vm1331_vm1, %v11434_v20  ;;  %8854 = vmatpush3.bf16.msra.mxu0 %v8851_v33  ;;  %v3344_v18 = vpop.xlane.xlu0 %3343  ;;  %v12746_v33 = vld [vmem:[#allocation82_spill] sm:$0xff] }
 0x4ed   :  { %9295 = vpow2.f32 %v3502_v17  ;;  %v3504_v22 = vmul.f32 1.442695, %v3415_v1  ;;  %8872 = vmatprep.subr.bf16.mxu0 %v8871_v56  ;;  %v9210_v27 = vunpack.i.h.bf16 %v12746_v33  ;;  %v9209_v40 = vunpack.i.l.bf16 %v12746_v33  ;;  %v12747_v17 = vld [vmem:[#allocation72_spill] sm:$0xff]  ;;  %v12751_v33 = vld [vmem:[#allocation85_spill] sm:$0xff] }
 0x4ee   :  { %9297 = vpow2.f32 %v3524_v25  ;;  %v3347_v15 = vpop.xlane.xlu1 %3346  ;;  %v3438_v25 = vsub.f32 %v12747_v17, %v3344_v18  ;;  %v9189_v18 = vunpack.i.l.bf16 %v12749_v8  ;;  %v9215_v17 = vunpack.i.h.bf16 %v12751_v33  ;;  %v12753_v8 = vld [vmem:[#allocation71_spill] sm:$0xff] }
 0x4ef   :  { %9299 = vpow2.f32 %v3504_v22  ;;  %v12750_v22 = vld [vmem:[#allocation69_spill] sm:$0xff] }
 0x4f0   :  { %v3278_v59 = vpop.xlane.xlu0 %3277  ;;  %9301 = vpow2.f32 %v3526_v13  ;;  %v3532_v13 = vmul.f32 1.442695, %v3429_v60  ;;  %v3439_v48 = vsub.f32 %v12750_v22, %v3347_v15 }
 0x4f1   :  { %v11442_v36 = vpop.eup %9287  ;;  %v3416_v53 = vsub.f32 %v12745_v0, %v3278_v59  ;;  %9303 = vpow2.f32 %v3528_v34 }
 0x4f2   :  { %v11445_v52 = vpop.eup %9289  ;;  %8217 = vmatmul.mubr.msk.f32.gmra.mrb[158].mxu0 %vm1331_vm1, %v11442_v36  ;;  %v3281_v31 = vpop.xlane.xlu1 %3280  ;;  %9305 = vpow2.f32 %v3530_v11  ;;  %v8875_v11 = vpack.c.bf16 %v9210_v27, %v9209_v40  ;;  %v12754_v27 = vld [vmem:[#allocation81_spill] sm:$0xff] }
 0x4f3   :  { %v3506_v26 = vmul.f32 1.442695, %v3416_v53  ;;  %v3417_v1 = vsub.f32 %v12748_v28, %v3281_v31  ;;  %8263 = vmatprep.mubr.msk.f32.mxu0 %vm1331_vm1, %v11445_v52  ;;  %v11457_v0 = vpop.eup %9291  ;;  %v9214_v31 = vunpack.i.l.bf16 %v12751_v33  ;;  %v3550_v28 = vmul.f32 1.442695, %v3438_v25 }
 0x4f4   :  { %v3350_v59 = vpop.xlane.xlu0 %3349  ;;  %v11461_v53 = vpop.eup %9293  ;;  %v9195_v40 = vunpack.i.h.bf16 %v12754_v27 }
 0x4f5   :  { %9307 = vpow2.f32 %v3506_v26  ;;  %v3508_v34 = vmul.f32 1.442695, %v3417_v1  ;;  %v3440_v35 = vsub.f32 %v12752_v45, %v3350_v59  ;;  %v3552_v1 = vmul.f32 1.442695, %v3439_v48  ;;  %v12755_v59 = vld [vmem:[#allocation92_spill] sm:$0xff] }
 0x4f6   :  { %8264 = vmatmul.mubr.msk.f32.vlgmr.msra.gmra.mrb[160].mxu0 %vm1331_vm1, %v11457_v0  ;;  %v3353_v15 = vpop.xlane.xlu1 %3352  ;;  %v8859_v48 = vpack.c.bf16 %v9190_v21, %v9189_v18  ;;  %v3582_v18 = vsel %vm1331_vm1, %v11224_v12, 0.0 }
 0x4f7   :  { %v11467_v60 = vpop.eup %9295  ;;  %9309 = vpow2.f32 %v3508_v34  ;;  %8874 = vmatpush3.bf16.msra.mxu0 %v8871_v56  ;;  %8266 = vmatprep.mubr.msk.f32.mxu0 %vm1331_vm1, %v11461_v53  ;;  %v3441_v25 = vsub.f32 %v12753_v8, %v3353_v15  ;;  %v9194_v56 = vunpack.i.l.bf16 %v12754_v27  ;;  %v3554_v34 = vmul.f32 1.442695, %v3440_v35  ;;  %v12757_v35 = vld [vmem:[#allocation93_spill] sm:$0xff] }
 0x4f8   :  { %v11471_v26 = vpop.eup %9297  ;;  %9311 = vpow2.f32 %v3532_v13  ;;  %8235 = vmatprep.mubr.msk.f32.mxu1 %vm1331_vm1, %v11467_v60  ;;  %8876 = vmatprep.subr.bf16.mxu0 %v8875_v11  ;;  %v3284_v45 = vpop.xlane.xlu0 %3283  ;;  %v8879_v15 = vpack.c.bf16 %v9215_v17, %v9214_v31  ;;  %v12758_v31 = vld [vmem:[#allocation76_spill] sm:$0xff] }
 0x4f9   :  { %v11476_v22 = vpop.eup %9299  ;;  %v3418_v33 = vsub.f32 %v12755_v59, %v3284_v45  ;;  %9313 = vpow2.f32 %v3550_v28  ;;  %v3556_v45 = vmul.f32 1.442695, %v3441_v25  ;;  %v8863_v12 = vpack.c.bf16 %v9195_v40, %v9194_v56 }
 0x4fa   :  { %8236 = vmatmul.mubr.msk.f32.vlgmr.msra.gmra.mrb[120].mxu1 %vm1331_vm1, %v11476_v22  ;;  %8267 = vmatmul.mubr.msk.f32.gmra.mrb[162].mxu0 %vm1331_vm1, %v11471_v26  ;;  %v3287_v13 = vpop.xlane.xlu1 %3286  ;;  %v11485_v8 = vpop.eup %9301  ;;  %9315 = vpow2.f32 %v3552_v1  ;;  %v12759_v1 = vld [vmem:[#allocation80_spill] sm:$0xff]  ;;  %v3585_v40 = vsel %vm1331_vm1, %v11226_v44, 0.0  ;;  %v12762_v44 = vld [vmem:[#allocation95_spill] sm:$0xff] }
 0x4fb   :  { %v3510_v27 = vmul.f32 1.442695, %v3418_v33  ;;  %8858 = vmatpush3.bf16.msra.mxu1 %v11354_v46  ;;  %8878 = vmatpush3.bf16.msra.mxu0 %v8875_v11  ;;  %v3419_v28 = vsub.f32 %v12757_v35, %v3287_v13  ;;  %v11495_v17 = vpop.eup %9303  ;;  %v9200_v25 = vunpack.i.h.bf16 %v12759_v1  ;;  %v9199_v59 = vunpack.i.l.bf16 %v12759_v1  ;;  %v12760_v35 = vld [vmem:[#allocation73_spill] sm:$0xff] }
 0x4fc   :  { %8269 = vmatprep.mubr.msk.f32.mxu0 %vm1331_vm1, %v11485_v8  ;;  %8860 = vmatprep.subr.bf16.mxu1 %v8859_v48  ;;  %v3356_v21 = vpop.xlane.xlu0 %3355  ;;  %v11498_v11 = vpop.eup %9305 }
 0x4fd   :  { %9317 = vpow2.f32 %v3510_v27  ;;  %v3512_v3 = vmul.f32 1.442695, %v3419_v28  ;;  %8880 = vmatprep.subr.bf16.mxu0 %v8879_v15  ;;  %v3442_v46 = vsub.f32 %v12758_v31, %v3356_v21  ;;  %3583 = vadd.xlane.f32.xlu0 %v3582_v18  ;;  %v8883_v21 = vpack.c.bf16 %v9220_v61, %v9219_v23 }
 0x4fe   :  { %9319 = vpow2.f32 %v3554_v34  ;;  %8270 = vmatmul.mubr.msk.f32.gmra.mrb[164].mxu0 %vm1331_vm1, %v11495_v17  ;;  %v3359_v33 = vpop.xlane.xlu1 %3358  ;;  %v3588_v61 = vsel %vm1331_vm1, %v11244_v42, 0.0 }
 0x4ff   :  { %v11504_v13 = vpop.eup %9307  ;;  %9321 = vpow2.f32 %v3512_v3  ;;  %v3558_v27 = vmul.f32 1.442695, %v3442_v46  ;;  %8862 = vmatpush3.bf16.msra.mxu1 %v8859_v48  ;;  %8882 = vmatpush3.bf16.msra.mxu0 %v8879_v15  ;;  %v3443_v28 = vsub.f32 %v12760_v35, %v3359_v33  ;;  %v12761_v48 = vld [vmem:[#allocation75_spill] sm:$0xff]  ;;  %v8867_v46 = vpack.c.bf16 %v9200_v25, %v9199_v59 }
 0x500   :  { %9323 = vpow2.f32 %v3556_v45  ;;  %8238 = vmatprep.mubr.msk.f32.mxu1 %vm1331_vm1, %v11504_v13  ;;  %8272 = vmatprep.mubr.msk.f32.mxu0 %vm1331_vm1, %v11498_v11  ;;  %v3290_v34 = vpop.xlane.xlu0 %3289  ;;  %v3606_v33 = vsel %vm1331_vm1, %v11307_v58, 0.0 }
 0x501   :  { %v11513_v56 = vpop.eup %9309  ;;  %9325 = vpow2.f32 %v3558_v27  ;;  %v3560_v18 = vmul.f32 1.442695, %v3443_v28  ;;  %8864 = vmatprep.subr.bf16.mxu1 %v8863_v12  ;;  %8884 = vmatprep.subr.bf16.mxu0 %v8883_v21  ;;  %v3420_v15 = vsub.f32 %v12761_v48, %v3290_v34  ;;  %v3591_v27 = vsel %vm1331_vm1, %v11248_v2, 0.0 }
 0x502   :  { %v11518_v23 = vpop.eup %9311  ;;  %3586 = vadd.xlane.f32.xlu1 %v3585_v40  ;;  %3589 = vadd.xlane.f32.xlu0 %v3588_v61  ;;  %v3293_v45 = vpop.xlane.xlu1 %3292  ;;  %v3612_v34 = vsel %vm1331_vm1, %v11330_v7, 0.0  ;;  %v3594_v40 = vsel %vm1331_vm1, %v11252_v9, 0.0  ;;  %v3618_v9 = vsel %vm1331_vm1, %v11344_v24, 0.0  ;;  %v5191_v24 = vld [vmem:[%s12416_s4 + $0x8] sm:$0xff] }
 0x503   :  { %9327 = vpow2.f32 %v3560_v18  ;;  %v3514_v3 = vmul.f32 1.442695, %v3420_v15  ;;  %8239 = vmatmul.mubr.msk.f32.gmra.mrb[122].mxu1 %vm1331_vm1, %v11513_v56  ;;  %8273 = vmatmul.mubr.msk.f32.gmra.mrb[166].mxu0 %vm1331_vm1, %v11518_v23  ;;  %v3421_v31 = vsub.f32 %v12762_v44, %v3293_v45  ;;  %v11525_v1 = vpop.eup %9313  ;;  %v3597_v15 = vsel %vm1331_vm1, %v11262_v50, 0.0  ;;  %v5190_v50 = vld [vmem:[%s12416_s4] sm:$0xff] }
 0x504   :  { %8866 = vmatpush3.bf16.msra.mxu1 %v8863_v12  ;;  %8886 = vmatpush3.bf16.msra.mxu0 %v8883_v21  ;;  %v11533_v35 = vpop.eup %9315  ;;  %v3600_v44 = vsel %vm1331_vm1, %v11272_v5, 0.0  ;;  %v8903_v5 = vpack.c.bf16 %v5191_v24, %v5190_v50 }
 0x505   :  { %9329 = vpow2.f32 %v3514_v3  ;;  %v3516_v42 = vmul.f32 1.442695, %v3421_v31  ;;  %8868 = vmatprep.subr.bf16.mxu1 %v8867_v46  ;;  %8319 = vmatprep.mubr.msk.f32.mxu0 %vm1331_vm1, %v11525_v1  ;;  %v3624_v3 = vsel %vm1331_vm1, %v11365_v39, 0.0  ;;  %v3630_v31 = vsel %vm1331_vm1, %v11389_v10, 0.0 }
 0x506   :  { %3607 = vadd.xlane.f32.xlu1 %v3606_v33  ;;  %3592 = vadd.xlane.f32.xlu0 %v3591_v27  ;;  %v9223_v25 = vpop.permute.xlu1 %9222  ;;  %v3603_v39 = vsel %vm1331_vm1, %v11277_v38, 0.0  ;;  %v3636_v33 = vsel %vm1331_vm1, %v11400_v19, 0.0  ;;  %v3609_v10 = vsel %vm1331_vm1, %v11309_v37, 0.0  ;;  %v3642_v27 = vsel %vm1331_vm1, %v11411_v14, 0.0 }
 0x507   :  { %v11535_v59 = vpop.eup %9317  ;;  %9331 = vpow2.f32 %v3516_v42  ;;  %8320 = vmatmul.mubr.msk.f32.vlgmr.msra.gmra.mrb[168].mxu0 %vm1331_vm1, %v11533_v35  ;;  %v9225_v12 = vunpack.i.h.bf16 %v9223_v25  ;;  %v9224_v28 = vunpack.i.l.bf16 %v9223_v25  ;;  %8904 = vmatprep.subr.bf16.mxu0 %v8903_v5  ;;  %v5193_v42 = vld [vmem:[%s12416_s4 + $0x18] sm:$0xff]  ;;  %v3615_v25 = vsel %vm1331_vm1, %v11332_v43, 0.0 }
 0x508   :  { %v11539_v21 = vpop.eup %9319  ;;  %8870 = vmatpush3.bf16.msra.mxu1 %v8867_v46  ;;  %8241 = vmatprep.mubr.msk.f32.mxu1 %vm1331_vm1, %v11535_v59  ;;  %v5192_v46 = vld [vmem:[%s12416_s4 + $0x10] sm:$0xff]  ;;  %v3621_v19 = vsel %vm1331_vm1, %v11346_v6, 0.0  ;;  %v3654_v37 = vsel %vm1331_vm1, %v11467_v60, 0.0  ;;  %v3660_v43 = vsel %vm1331_vm1, %v11504_v13, 0.0  ;;  %v3633_v14 = vsel %vm1331_vm1, %v11392_v16, 0.0  ;;  %v11621_v60 = vpop.permute.xlu0 %9227 }
 0x509   :  { %v11543_v2 = vpop.eup %9321  ;;  %v11545_v58 = vpack.c.bf16 %v9225_v12, %v9224_v28  ;;  %8322 = vmatprep.mubr.msk.f32.mxu0 %vm1331_vm1, %v11539_v21  ;;  %8906 = vmatpush3.bf16.msra.mxu0 %v8903_v5  ;;  %v8907_v38 = vpack.c.bf16 %v5193_v42, %v5192_v46  ;;  %v3648_v12 = vsel %vm1331_vm1, %v11434_v20, 0.0  ;;  %v3627_v28 = vsel %vm1331_vm1, %v11369_v41, 0.0 }
 0x50a   :  { %v11553_v18 = vpop.eup %9323  ;;  %3613 = vadd.xlane.f32.xlu1 %v3612_v34  ;;  %3595 = vadd.xlane.f32.xlu0 %v3594_v40  ;;  %v3666_v6 = vsel %vm1331_vm1, %v11535_v59, 0.0  ;;  %v3639_v20 = vsel %vm1331_vm1, %v11409_v63, 0.0  ;;  %v3645_v13 = vsel %vm1331_vm1, %v11427_v49, 0.0  ;;  %v3678_v16 = vsel %vm1331_vm1, %v11445_v52, 0.0 }
 0x50b   :  { %v11555_v48 = vpop.eup %9325  ;;  %8242 = vmatmul.mubr.msk.f32.gmra.mrb[124].mxu1 %vm1331_vm1, %v11543_v2  ;;  %8323 = vmatmul.mubr.msk.f32.gmra.mrb[170].mxu0 %vm1331_vm1, %v11553_v18  ;;  %v3651_v59 = vsel %vm1331_vm1, %v11442_v36, 0.0  ;;  %v3684_v49 = vsel %vm1331_vm1, %v11461_v53, 0.0  ;;  %v3663_v53 = vsel %vm1331_vm1, %v11513_v56, 0.0 }
 0x50c   :  { %8325 = vmatprep.mubr.msk.f32.mxu0 %vm1331_vm1, %v11555_v48  ;;  %8888 = vmatprep.subr.bf16.mxu1 %v11545_v58 }
 0x50d   :  { %v11564_v7 = vpop.eup %9327  ;;  %8908 = vmatprep.subr.bf16.mxu0 %v8907_v38 }
 0x50e   :  { %3619 = vadd.xlane.f32.xlu1 %v3618_v9  ;;  %3598 = vadd.xlane.f32.xlu0 %v3597_v15 }
 0x50f   :  { %v9330_v61 = vpop.eup %9329  ;;  %8326 = vmatmul.mubr.msk.f32.gmra.mrb[172].mxu0 %vm1331_vm1, %v11564_v7 }
 0x510   :  { %8244 = vmatprep.mubr.msk.f32.mxu1 %vm1331_vm1, %v9330_v61  ;;  %8910 = vmatpush3.bf16.msra.mxu0 %v8907_v38  ;;  %v3672_v41 = vsel %vm1331_vm1, %v9330_v61, 0.0  ;;  %v3657_v61 = vsel %vm1331_vm1, %v11476_v22, 0.0 }
 0x511   :  { %v11573_v45 = vpop.eup %9331 }
 0x512   :  { %3625 = vadd.xlane.f32.xlu1 %v3624_v3  ;;  %3601 = vadd.xlane.f32.xlu0 %v3600_v44 }
 0x513   :  { %8245 = vmatmul.mubr.msk.f32.gmra.mrb[126].mxu1 %vm1331_vm1, %v11573_v45 }
 0x516   :  { %3631 = vadd.xlane.f32.xlu1 %v3630_v31  ;;  %3604 = vadd.xlane.f32.xlu0 %v3603_v39 }
 0x51a   :  { %3637 = vadd.xlane.f32.xlu1 %v3636_v33  ;;  %3610 = vadd.xlane.f32.xlu0 %v3609_v10 }
 0x51e   :  { %3643 = vadd.xlane.f32.xlu1 %v3642_v27  ;;  %3616 = vadd.xlane.f32.xlu0 %v3615_v25  ;;  %v9230_v25 = vunpack.i.h.bf16 %v11621_v60 }
 0x522   :  { %3649 = vadd.xlane.f32.xlu1 %v3648_v12  ;;  %3622 = vadd.xlane.f32.xlu0 %v3621_v19  ;;  %v9229_v12 = vunpack.i.l.bf16 %v11621_v60 }
 0x526   :  { %3655 = vadd.xlane.f32.xlu1 %v3654_v37  ;;  %3628 = vadd.xlane.f32.xlu0 %v3627_v28  ;;  %v3681_v28 = vsel %vm1331_vm1, %v11457_v0, 0.0  ;;  %v3687_v0 = vsel %vm1331_vm1, %v11471_v26, 0.0 }
 0x52a   :  { %3661 = vadd.xlane.f32.xlu1 %v3660_v43  ;;  %3634 = vadd.xlane.f32.xlu0 %v3633_v14 }
 0x52e   :  { %3667 = vadd.xlane.f32.xlu1 %v3666_v6  ;;  %3640 = vadd.xlane.f32.xlu0 %v3639_v20  ;;  %v12763_v20 = vld [vmem:[#allocation86_spill] sm:$0xff] }
 0x532   :  { %3673 = vadd.xlane.f32.xlu1 %v3672_v41  ;;  %3646 = vadd.xlane.f32.xlu0 %v3645_v13  ;;  %v8891_v41 = vpack.c.bf16 %v9230_v25, %v9229_v12 }
 0x535   :  { %v3362_v34 = vpop.xlane.xlu0 %3361 }
 0x536   :  { %3679 = vadd.xlane.f32.xlu1 %v3678_v16  ;;  %3652 = vadd.xlane.f32.xlu0 %v3651_v59  ;;  %v3444_v63 = vsub.f32 %v11157_v47, %v3362_v34 }
 0x537   :  { %v3365_v40 = vpop.xlane.xlu1 %3364 }
 0x538   :  { %v3562_v9 = vmul.f32 1.442695, %v3444_v63  ;;  %v3445_v15 = vsub.f32 %v11153_v51, %v3365_v40  ;;  %v3690_v51 = vsel %vm1331_vm1, %v11485_v8, 0.0  ;;  %v3669_v8 = vsel %vm1331_vm1, %v11543_v2, 0.0 }
 0x539   :  { %v3320_v3 = vpop.xlane.xlu0 %3319 }
 0x53a   :  { %9333 = vpow2.f32 %v3562_v9  ;;  %3685 = vadd.xlane.f32.xlu1 %v3684_v49  ;;  %v3564_v52 = vmul.f32 1.442695, %v3445_v15  ;;  %3658 = vadd.xlane.f32.xlu0 %v3657_v61  ;;  %v3430_v36 = vsub.f32 %v11189_v4, %v3320_v3  ;;  %v12764_v61 = vld [vmem:[#allocation87_spill] sm:$0xff] }
 0x53b   :  { %v3323_v44 = vpop.xlane.xlu1 %3322 }
 0x53c   :  { %9335 = vpow2.f32 %v3564_v52  ;;  %v3534_v47 = vmul.f32 1.442695, %v3430_v36  ;;  %v3431_v50 = vsub.f32 %v11187_v62, %v3323_v44  ;;  %v3696_v62 = vsel %vm1331_vm1, %v11498_v11, 0.0  ;;  %v12765_v44 = vld [vmem:[#allocation96_spill] sm:$0xff] }
 0x53d   :  { %v3326_v24 = vpop.xlane.xlu0 %3325  ;;  %v3675_v11 = vsel %vm1331_vm1, %v11573_v45, 0.0 }
 0x53e   :  { %9337 = vpow2.f32 %v3534_v47  ;;  %3691 = vadd.xlane.f32.xlu1 %v3690_v51  ;;  %v3536_v22 = vmul.f32 1.442695, %v3431_v50  ;;  %3664 = vadd.xlane.f32.xlu0 %v3663_v53  ;;  %v3432_v31 = vsub.f32 %v11197_v29, %v3326_v24  ;;  %v3699_v50 = vsel %vm1331_vm1, %v11518_v23, 0.0 }
 0x53f   :  { %v3329_v39 = vpop.xlane.xlu1 %3328 }
 0x540   :  { %9339 = vpow2.f32 %v3536_v22  ;;  %v3538_v4 = vmul.f32 1.442695, %v3432_v31  ;;  %v3433_v5 = vsub.f32 %v11195_v30, %v3329_v39  ;;  %v12766_v22 = vld [vmem:[#allocation97_spill] sm:$0xff] }
 0x541   :  { %v3332_v46 = vpop.xlane.xlu0 %3331 }
 0x542   :  { %9341 = vpow2.f32 %v3538_v4  ;;  %3697 = vadd.xlane.f32.xlu1 %v3696_v62  ;;  %v3540_v56 = vmul.f32 1.442695, %v3433_v5  ;;  %3670 = vadd.xlane.f32.xlu0 %v3669_v8  ;;  %v3434_v42 = vsub.f32 %v11203_v55, %v3332_v46  ;;  %v12767_v62 = vld [vmem:[#allocation99_spill] sm:$0xff] }
 0x543   :  { %v3335_v33 = vpop.xlane.xlu1 %3334 }
 0x544   :  { %v11649_v29 = vpop.eup %9333  ;;  %9343 = vpow2.f32 %v3540_v56  ;;  %v3542_v10 = vmul.f32 1.442695, %v3434_v42  ;;  %v3435_v30 = vsub.f32 %v11199_v54, %v3335_v33  ;;  %v3726_v56 = vsel %vm1331_vm1, %v11525_v1, 0.0 }
 0x545   :  { %8328 = vmatprep.mubr.msk.f32.mxu0 %vm1331_vm1, %v11649_v29  ;;  %v3338_v2 = vpop.xlane.xlu0 %3337 }
 0x546   :  { %v11656_v38 = vpop.eup %9335  ;;  %9345 = vpow2.f32 %v3542_v10  ;;  %v3544_v27 = vmul.f32 1.442695, %v3435_v30  ;;  %3676 = vadd.xlane.f32.xlu0 %v3675_v11  ;;  %v3436_v55 = vsub.f32 %v11209_v57, %v3338_v2  ;;  %v3732_v11 = vsel %vm1331_vm1, %v11539_v21, 0.0  ;;  %v12768_v2 = vld [vmem:[#allocation100_spill] sm:$0xff] }
 0x547   :  { %v3341_v19 = vpop.xlane.xlu1 %3340  ;;  %8329 = vmatmul.mubr.msk.f32.gmra.mrb[174].mxu0 %vm1331_vm1, %v11656_v38 }
 0x548   :  { %v9338_v54 = vpop.eup %9337  ;;  %9347 = vpow2.f32 %v3544_v27  ;;  %v3546_v45 = vmul.f32 1.442695, %v3436_v55  ;;  %v3437_v37 = vsub.f32 %v11207_v32, %v3341_v19 }
 0x549   :  { %8291 = vmatprep.mubr.msk.f32.mxu1 %vm1331_vm1, %v9338_v54  ;;  %v3368_v43 = vpop.xlane.xlu0 %3367  ;;  %v3702_v57 = vsel %vm1331_vm1, %v9338_v54, 0.0  ;;  %v12769_v54 = vld [vmem:[#allocation102_spill] sm:$0xff] }
 0x54a   :  { %v9340_v14 = vpop.eup %9339  ;;  %9349 = vpow2.f32 %v3546_v45  ;;  %v3548_v6 = vmul.f32 1.442695, %v3437_v37  ;;  %3682 = vadd.xlane.f32.xlu0 %v3681_v28  ;;  %v3446_v60 = vsub.f32 %v12763_v20, %v3368_v43  ;;  %3703 = vadd.xlane.f32.xlu1 %v3702_v57  ;;  %v12770_v43 = vld [vmem:[#allocation103_spill] sm:$0xff] }
 0x54b   :  { %v3371_v13 = vpop.xlane.xlu1 %3370  ;;  %8292 = vmatmul.mubr.msk.f32.vlgmr.msra.gmra.mrb[128].mxu1 %vm1331_vm1, %v9340_v14  ;;  %v3705_v23 = vsel %vm1331_vm1, %v9340_v14, 0.0 }
 0x54c   :  { %v9342_v32 = vpop.eup %9341  ;;  %9351 = vpow2.f32 %v3548_v6  ;;  %v3566_v16 = vmul.f32 1.442695, %v3446_v60  ;;  %8890 = vmatpush3.bf16.msra.mxu1 %v11545_v58  ;;  %v3693_v58 = vsel %vm1331_vm1, %v11495_v17, 0.0  ;;  %v3447_v3 = vsub.f32 %v12764_v61, %v3371_v13 }
 0x54d   :  { %8294 = vmatprep.mubr.msk.f32.mxu1 %vm1331_vm1, %v9342_v32  ;;  %8892 = vmatprep.subr.bf16.mxu1 %v8891_v41  ;;  %v3374_v59 = vpop.xlane.xlu0 %3373  ;;  %v3708_v34 = vsel %vm1331_vm1, %v9342_v32, 0.0  ;;  %v3738_v6 = vsel %vm1331_vm1, %v11555_v48, 0.0  ;;  %v3744_v13 = vsel %vm1331_vm1, %v11649_v29, 0.0  ;;  %v3729_v48 = vsel %vm1331_vm1, %v11533_v35, 0.0 }
 0x54e   :  { %v9344_v63 = vpop.eup %9343  ;;  %9353 = vpow2.f32 %v3566_v16  ;;  %3688 = vadd.xlane.f32.xlu0 %v3687_v0  ;;  %3709 = vadd.xlane.f32.xlu1 %v3708_v34  ;;  %v3448_v47 = vsub.f32 %v12765_v44, %v3374_v59  ;;  %v3568_v24 = vmul.f32 1.442695, %v3447_v3  ;;  %v3747_v61 = vsel %vm1331_vm1, %v11656_v38, 0.0 }
 0x54f   :  { %v3377_v40 = vpop.xlane.xlu1 %3376  ;;  %8295 = vmatmul.mubr.msk.f32.gmra.mrb[130].mxu1 %vm1331_vm1, %v9344_v63  ;;  %v3711_v1 = vsel %vm1331_vm1, %v9344_v63, 0.0  ;;  %v3735_v63 = vsel %vm1331_vm1, %v11553_v18, 0.0 }
 0x550   :  { %v9346_v9 = vpop.eup %9345  ;;  %8894 = vmatpush3.bf16.msra.mxu1 %v8891_v41  ;;  %v3449_v31 = vsub.f32 %v12766_v22, %v3377_v40  ;;  %v3570_v5 = vmul.f32 1.442695, %v3448_v47  ;;  %9355 = vpow2.f32 %v3568_v24 }
 0x551   :  { %8297 = vmatprep.mubr.msk.f32.mxu1 %vm1331_vm1, %v9346_v9  ;;  %v3380_v26 = vpop.xlane.xlu0 %3379  ;;  %v3714_v15 = vsel %vm1331_vm1, %v9346_v9, 0.0 }
 0x552   :  { %v9348_v49 = vpop.eup %9347  ;;  %3694 = vadd.xlane.f32.xlu0 %v3693_v58  ;;  %3715 = vadd.xlane.f32.xlu1 %v3714_v15  ;;  %v3450_v8 = vsub.f32 %v12767_v62, %v3380_v26  ;;  %v3572_v10 = vmul.f32 1.442695, %v3449_v31  ;;  %9357 = vpow2.f32 %v3570_v5  ;;  %v3741_v58 = vsel %vm1331_vm1, %v11564_v7, 0.0 }
 0x553   :  { %v3383_v52 = vpop.xlane.xlu1 %3382  ;;  %8298 = vmatmul.mubr.msk.f32.gmra.mrb[132].mxu1 %vm1331_vm1, %v9348_v49  ;;  %v3717_v14 = vsel %vm1331_vm1, %v9348_v49, 0.0 }
 0x554   :  { %v9350_v36 = vpop.eup %9349  ;;  %v3451_v27 = vsub.f32 %v12768_v2, %v3383_v52  ;;  %v3574_v19 = vmul.f32 1.442695, %v3450_v8  ;;  %9359 = vpow2.f32 %v3572_v10 }
 0x555   :  { %8300 = vmatprep.mubr.msk.f32.mxu1 %vm1331_vm1, %v9350_v36  ;;  %v3386_v17 = vpop.xlane.xlu0 %3385  ;;  %v3720_v51 = vsel %vm1331_vm1, %v9350_v36, 0.0 }
 0x556   :  { %v9352_v53 = vpop.eup %9351  ;;  %3700 = vadd.xlane.f32.xlu0 %v3699_v50  ;;  %3721 = vadd.xlane.f32.xlu1 %v3720_v51  ;;  %v3452_v45 = vsub.f32 %v12769_v54, %v3386_v17  ;;  %v3576_v28 = vmul.f32 1.442695, %v3451_v27  ;;  %9361 = vpow2.f32 %v3574_v19  ;;  %v12772_v19 = vld [vmem:[#allocation3_spill] sm:$0xff] }
 0x557   :  { %v3389_v39 = vpop.xlane.xlu1 %3388  ;;  %8301 = vmatmul.mubr.msk.f32.gmra.mrb[134].mxu1 %vm1331_vm1, %v9352_v53  ;;  %v3723_v41 = vsel %vm1331_vm1, %v9352_v53, 0.0 }
 0x558   :  { %v9354_v4 = vpop.eup %9353  ;;  %v3453_v57 = vsub.f32 %v12770_v43, %v3389_v39  ;;  %v3578_v21 = vmul.f32 1.442695, %v3452_v45  ;;  %9363 = vpow2.f32 %v3576_v28  ;;  %v12773_v45 = vld [vmem:[#allocation5_spill] sm:$0xff] }
 0x559   :  { %8347 = vmatprep.mubr.msk.f32.mxu1 %vm1331_vm1, %v9354_v4  ;;  %v9233_v46 = vpop.permute.xlu0 %9232  ;;  %v3750_v16 = vsel %vm1331_vm1, %v9354_v4, 0.0 }
 0x55a   :  { %3706 = vadd.xlane.f32.xlu0 %v3705_v23  ;;  %v9235_v42 = vunpack.i.h.bf16 %v9233_v46  ;;  %v9234_v33 = vunpack.i.l.bf16 %v9233_v46  ;;  %3727 = vadd.xlane.f32.xlu1 %v3726_v56  ;;  %v3580_v20 = vmul.f32 1.442695, %v3453_v57  ;;  %v9356_v60 = vpop.eup %9355  ;;  %9365 = vpow2.f32 %v3578_v21 }
 0x55b   :  { %v9238_v30 = vpop.permute.xlu1 %9237  ;;  %v3753_v7 = vsel %vm1331_vm1, %v9356_v60, 0.0 }
 0x55c   :  { %v8895_v55 = vpack.c.bf16 %v9235_v42, %v9234_v33  ;;  %v9240_v25 = vunpack.i.h.bf16 %v9238_v30  ;;  %v9239_v12 = vunpack.i.l.bf16 %v9238_v30  ;;  %v9358_v32 = vpop.eup %9357  ;;  %9367 = vpow2.f32 %v3580_v20  ;;  %v12771_v33 = vld [vmem:[#allocation2_spill] sm:$0xff] }
 0x55d   :  { %v3756_v40 = vsel %vm1331_vm1, %v9358_v32, 0.0 }
 0x55e   :  { %v8899_v37 = vpack.c.bf16 %v9240_v25, %v9239_v12  ;;  %3712 = vadd.xlane.f32.xlu0 %v3711_v1  ;;  %3733 = vadd.xlane.f32.xlu1 %v3732_v11  ;;  %v9360_v0 = vpop.eup %9359 }
 0x55f   :  { %8896 = vmatprep.subr.bf16.mxu1 %v8895_v55  ;;  %v3759_v50 = vsel %vm1331_vm1, %v9360_v0, 0.0 }
 0x560   :  { %8898 = vmatpush3.bf16.msra.mxu1 %v8895_v55  ;;  %v9362_v59 = vpop.eup %9361 }
 0x561   :  { %8900 = vmatprep.subr.bf16.mxu1 %v8899_v37  ;;  %v3762_v26 = vsel %vm1331_vm1, %v9362_v59, 0.0 }
 0x562   :  { %3718 = vadd.xlane.f32.xlu0 %v3717_v14  ;;  %3739 = vadd.xlane.f32.xlu1 %v3738_v6  ;;  %v9364_v9 = vpop.eup %9363  ;;  %v12774_v6 = vld [vmem:[#allocation4_spill] sm:$0xff] }
 0x563   :  { %v3765_v17 = vsel %vm1331_vm1, %v9364_v9, 0.0 }
 0x564   :  { %8902 = vmatpush3.bf16.msra.mxu1 %v8899_v37  ;;  %v9366_v35 = vpop.eup %9365 }
 0x565   :  { %v3768_v3 = vsel %vm1331_vm1, %v9366_v35, 0.0 }
 0x566   :  { %3724 = vadd.xlane.f32.xlu0 %v3723_v41  ;;  %3745 = vadd.xlane.f32.xlu1 %v3744_v13  ;;  %v9368_v15 = vpop.eup %9367 }
 0x567   :  { %8348 = vmatmul.mubr.msk.f32.vlgmr.msra.gmra.mrb[136].mxu1 %vm1331_vm1, %v9356_v60  ;;  %v3771_v38 = vsel %vm1331_vm1, %v9368_v15, 0.0 }
 0x568   :  { %8350 = vmatprep.mubr.msk.f32.mxu1 %vm1331_vm1, %v9358_v32 }
 0x56a   :  { %3730 = vadd.xlane.f32.xlu0 %v3729_v48  ;;  %3751 = vadd.xlane.f32.xlu1 %v3750_v16  ;;  %v12775_v48 = vld [vmem:[#allocation7_spill] sm:$0xff] }
 0x56b   :  { %8351 = vmatmul.mubr.msk.f32.gmra.mrb[138].mxu1 %vm1331_vm1, %v9360_v0  ;;  %v8153_v29 = vpop.f32.mrb[144].mxu0 }
 0x56c   :  { %8353 = vmatprep.mubr.msk.f32.mxu1 %vm1331_vm1, %v9362_v59  ;;  %v3888_v34 = vpop.f32.mrb[145].mxu0 }
 0x56e   :  { %3736 = vadd.xlane.f32.xlu0 %v3735_v63  ;;  %3757 = vadd.xlane.f32.xlu1 %v3756_v40  ;;  %v12776_v63 = vld [vmem:[#allocation6_spill] sm:$0xff] }
 0x56f   :  { %8354 = vmatmul.mubr.msk.f32.gmra.mrb[140].mxu1 %vm1331_vm1, %v9364_v9 }
 0x570   :  { %8356 = vmatprep.mubr.msk.f32.mxu1 %vm1331_vm1, %v9366_v35 }
 0x572   :  { %3742 = vadd.xlane.f32.xlu0 %v3741_v58  ;;  %3763 = vadd.xlane.f32.xlu1 %v3762_v26 }
 0x573   :  { %8357 = vmatmul.mubr.msk.f32.gmra.mrb[142].mxu1 %vm1331_vm1, %v9368_v15  ;;  %v8156_v18 = vpop.f32.mrb[146].mxu0 }
 0x574   :  { %v3898_v49 = vpop.f32.mrb[147].mxu0 }
 0x576   :  { %3748 = vadd.xlane.f32.xlu0 %v3747_v61  ;;  %3769 = vadd.xlane.f32.xlu1 %v3768_v3 }
 0x577   :  { %v11725_v52 = vpop.f32.mrb[148].mxu0 }
 0x578   :  { %v3908_v36 = vpop.f32.mrb[149].mxu0 }
 0x57a   :  { %3754 = vadd.xlane.f32.xlu0 %v3753_v7 }
 0x57b   :  { %v11728_v44 = vpop.f32.mrb[150].mxu0 }
 0x57c   :  { %v11730_v47 = vpop.f32.mrb[151].mxu0 }
 0x57e   :  { %3760 = vadd.xlane.f32.xlu0 %v3759_v50 }
 0x582   :  { %3766 = vadd.xlane.f32.xlu0 %v3765_v17  ;;  %v12778_v17 = vld [vmem:[#allocation8_spill] sm:$0xff] }
 0x586   :  { %3772 = vadd.xlane.f32.xlu0 %v3771_v38 }
 0x58a   :  { %v3584_v51 = vpop.xlane.xlu0 %3583 }
 0x58b   :  { %9369 = vrcp.f32 %v3584_v51 }
 0x58c   :  { %v11735_v53 = vpop.f32.mrb[112].mxu1 }
 0x58d   :  { %v11737_v24 = vpop.f32.mrb[113].mxu1 }
 0x58f   :  { %v3587_v22 = vpop.xlane.xlu1 %3586  ;;  %v3590_v31 = vpop.xlane.xlu0 %3589 }
 0x590   :  { %9371 = vrcp.f32 %v3587_v22 }
 0x591   :  { %9373 = vrcp.f32 %v3590_v31  ;;  %v12779_v31 = vld [vmem:[#allocation11_spill] sm:$0xff] }
 0x593   :  { %v3608_v39 = vpop.xlane.xlu1 %3607  ;;  %v3593_v4 = vpop.xlane.xlu0 %3592 }
 0x594   :  { %v11739_v5 = vpop.f32.mrb[114].mxu1  ;;  %9375 = vrcp.f32 %v3593_v4 }
 0x595   :  { %v9370_v62 = vpop.eup %9369  ;;  %v11741_v8 = vpop.f32.mrb[115].mxu1 }
 0x596   :  { %v4999_v23 = vmul.f32 %v9370_v62, %v3888_v34 }
 0x597   :  { %v3614_v46 = vpop.xlane.xlu1 %3613  ;;  %v3596_v56 = vpop.xlane.xlu0 %3595 }
 0x598   :  { %v11743_v42 = vpop.f32.mrb[116].mxu1  ;;  %v5126_v10 = vadd.f32 %v4999_v23, %v12771_v33  ;;  %9377 = vrcp.f32 %v3596_v56 }
 0x599   :  { %v11746_v30 = vpop.f32.mrb[117].mxu1 }
 0x59a   :  { %v9372_v11 = vpop.eup %9371  ;;  %8367 = vmatprep.mubr.msk.f32.mxu0 %vm1933_vm2, %v5126_v10 }
 0x59b   :  { %v9374_v2 = vpop.eup %9373  ;;  %v5001_v27 = vmul.f32 %v9372_v11, %v8153_v29  ;;  %v3620_v55 = vpop.xlane.xlu1 %3619 }
 0x59c   :  { %v3599_v25 = vpop.xlane.xlu0 %3598  ;;  %v5003_v12 = vmul.f32 %v9374_v2, %v3898_v49  ;;  %v12781_v2 = vld [vmem:[#allocation13_spill] sm:$0xff] }
 0x59d   :  { %v5127_v54 = vadd.f32 %v5001_v27, %v12772_v19  ;;  %9379 = vrcp.f32 %v3599_v25 }
 0x59e   :  { %v5128_v1 = vadd.f32 %v5003_v12, %v12773_v45  ;;  %v9376_v37 = vpop.eup %9375  ;;  %v12782_v12 = vld [vmem:[#allocation12_spill] sm:$0xff] }
 0x59f   :  { %v3626_v28 = vpop.xlane.xlu1 %3625  ;;  %8368 = vmatmul.mubr.msk.f32.vlgmr.msra.gmra.mrb[176].mxu0 %vm1933_vm2, %v5127_v54  ;;  %v5005_v21 = vmul.f32 %v9376_v37, %v8156_v18  ;;  %v12777_v18 = vld [vmem:[#allocation9_spill] sm:$0xff]  ;;  %v12783_v37 = vld [vmem:[#allocation15_spill] sm:$0xff] }
 0x5a0   :  { %v3602_v43 = vpop.xlane.xlu0 %3601  ;;  %8370 = vmatprep.mubr.msk.f32.mxu0 %vm1933_vm2, %v5128_v1  ;;  %v11753_v57 = vpop.f32.mrb[118].mxu1 }
 0x5a1   :  { %9381 = vrcp.f32 %v3602_v43  ;;  %v11755_v14 = vpop.f32.mrb[119].mxu1  ;;  %v5129_v20 = vadd.f32 %v5005_v21, %v12774_v6  ;;  %v12784_v6 = vld [vmem:[#allocation14_spill] sm:$0xff] }
 0x5a2   :  { %9383 = vrcp.f32 %v3608_v39  ;;  %v9378_v60 = vpop.eup %9377 }
 0x5a3   :  { %v3632_v41 = vpop.xlane.xlu1 %3631  ;;  %8371 = vmatmul.mubr.msk.f32.gmra.mrb[178].mxu0 %vm1933_vm2, %v5129_v20  ;;  %v5007_v32 = vmul.f32 %v9378_v60, %v3908_v36 }
 0x5a4   :  { %v3605_v13 = vpop.xlane.xlu0 %3604 }
 0x5a5   :  { %9385 = vrcp.f32 %v3605_v13  ;;  %v5130_v16 = vadd.f32 %v5007_v32, %v12775_v48  ;;  %v12785_v13 = vld [vmem:[#allocation17_spill] sm:$0xff] }
 0x5a6   :  { %9387 = vrcp.f32 %v3614_v46 }
 0x5a7   :  { %v9380_v0 = vpop.eup %9379  ;;  %v3638_v59 = vpop.xlane.xlu1 %3637  ;;  %8373 = vmatprep.mubr.msk.f32.mxu0 %vm1933_vm2, %v5130_v16 }
 0x5a8   :  { %v3611_v29 = vpop.xlane.xlu0 %3610  ;;  %v5009_v34 = vmul.f32 %v9380_v0, %v11725_v52  ;;  %v12786_v0 = vld [vmem:[#allocation16_spill] sm:$0xff] }
 0x5a9   :  { %9389 = vrcp.f32 %v3611_v29 }
 0x5aa   :  { %9391 = vrcp.f32 %v3620_v55  ;;  %v5131_v40 = vadd.f32 %v5009_v34, %v12776_v63  ;;  %v12787_v34 = vld [vmem:[#allocation19_spill] sm:$0xff] }
 0x5ab   :  { %v9382_v9 = vpop.eup %9381  ;;  %v3644_v35 = vpop.xlane.xlu1 %3643 }
 0x5ac   :  { %v3617_v58 = vpop.xlane.xlu0 %3616  ;;  %v9384_v26 = vpop.eup %9383  ;;  %8374 = vmatmul.mubr.msk.f32.gmra.mrb[180].mxu0 %vm1933_vm2, %v5131_v40  ;;  %v5011_v15 = vmul.f32 %v9382_v9, %v11730_v47 }
 0x5ad   :  { %9393 = vrcp.f32 %v3617_v58  ;;  %v5015_v52 = vmul.f32 %v9384_v26, %v11737_v24 }
 0x5ae   :  { %9395 = vrcp.f32 %v3626_v28  ;;  %v5132_v49 = vadd.f32 %v5011_v15, %v12777_v18  ;;  %v12788_v15 = vld [vmem:[#allocation18_spill] sm:$0xff] }
 0x5af   :  { %v9386_v61 = vpop.eup %9385  ;;  %v3650_v50 = vpop.xlane.xlu1 %3649  ;;  %v5134_v39 = vadd.f32 %v5015_v52, %v12779_v31 }
 0x5b0   :  { %v3623_v3 = vpop.xlane.xlu0 %3622  ;;  %v9388_v36 = vpop.eup %9387  ;;  %8376 = vmatprep.mubr.msk.f32.mxu0 %vm1933_vm2, %v5132_v49  ;;  %v5013_v7 = vmul.f32 %v9386_v61, %v11728_v44  ;;  %v12780_v44 = vld [vmem:[#allocation10_spill] sm:$0xff] }
 0x5b1   :  { %9397 = vrcp.f32 %v3623_v3  ;;  %v5019_v4 = vmul.f32 %v9388_v36, %v11741_v8  ;;  %v12789_v3 = vld [vmem:[#allocation21_spill] sm:$0xff] }
 0x5b2   :  { %v5133_v38 = vadd.f32 %v5013_v7, %v12778_v17  ;;  %v8209_v51 = vpop.f32.mrb[152].mxu0  ;;  %9399 = vrcp.f32 %v3632_v41 }
 0x5b3   :  { %v9390_v22 = vpop.eup %9389  ;;  %v4194_v24 = vpop.f32.mrb[153].mxu0  ;;  %v5136_v27 = vadd.f32 %v5019_v4, %v12781_v2  ;;  %v12791_v4 = vld [vmem:[#allocation23_spill] sm:$0xff] }
 0x5b4   :  { %v3629_v47 = vpop.xlane.xlu0 %3628  ;;  %v9392_v62 = vpop.eup %9391  ;;  %8377 = vmatmul.mubr.msk.f32.gmra.mrb[182].mxu0 %vm1933_vm2, %v5133_v38  ;;  %v5017_v23 = vmul.f32 %v9390_v22, %v11735_v53  ;;  %v12790_v22 = vld [vmem:[#allocation20_spill] sm:$0xff] }
 0x5b5   :  { %9401 = vrcp.f32 %v3629_v47  ;;  %8379 = vmatprep.mubr.msk.f32.mxu0 %vm1933_vm2, %v5134_v39  ;;  %v3656_v10 = vpop.xlane.xlu1 %3655  ;;  %v5023_v8 = vmul.f32 %v9392_v62, %v11746_v30 }
 0x5b6   :  { %v5135_v46 = vadd.f32 %v5017_v23, %v12780_v44  ;;  %v8212_v56 = vpop.f32.mrb[154].mxu0  ;;  %9403 = vrcp.f32 %v3638_v59 }
 0x5b7   :  { %v9394_v33 = vpop.eup %9393  ;;  %v4204_v25 = vpop.f32.mrb[155].mxu0  ;;  %v5138_v28 = vadd.f32 %v5023_v8, %v12783_v37 }
 0x5b8   :  { %v3635_v11 = vpop.xlane.xlu0 %3634  ;;  %v9396_v55 = vpop.eup %9395  ;;  %8380 = vmatmul.mubr.msk.f32.gmra.mrb[184].mxu0 %vm1933_vm2, %v5135_v46  ;;  %v5021_v53 = vmul.f32 %v9394_v33, %v11739_v5 }
 0x5b9   :  { %9405 = vrcp.f32 %v3635_v11  ;;  %8382 = vmatprep.mubr.msk.f32.mxu0 %vm1933_vm2, %v5136_v27  ;;  %v5027_v45 = vmul.f32 %v9396_v55, %v11755_v14  ;;  %v3662_v43 = vpop.xlane.xlu1 %3661 }
 0x5ba   :  { %v5137_v19 = vadd.f32 %v5021_v53, %v12782_v12  ;;  %9407 = vrcp.f32 %v3644_v35 }
 0x5bb   :  { %v9398_v54 = vpop.eup %9397  ;;  %v5140_v14 = vadd.f32 %v5027_v45, %v12785_v13  ;;  %v12794_v45 = vld [vmem:[#allocation27_spill] sm:$0xff] }
 0x5bc   :  { %v3641_v1 = vpop.xlane.xlu0 %3640  ;;  %8383 = vmatmul.mubr.msk.f32.gmra.mrb[186].mxu0 %vm1933_vm2, %v5137_v19  ;;  %v5025_v30 = vmul.f32 %v9398_v54, %v11743_v42  ;;  %v9400_v21 = vpop.eup %9399 }
 0x5bd   :  { %9409 = vrcp.f32 %v3641_v1  ;;  %8385 = vmatprep.mubr.msk.f32.mxu0 %vm1933_vm2, %v5138_v28  ;;  %v8215_v5 = vpop.f32.mrb[156].mxu0  ;;  %v5031_v32 = vmul.f32 %v9400_v21, %v4194_v24  ;;  %v3668_v9 = vpop.xlane.xlu1 %3667  ;;  %v12795_v28 = vld [vmem:[#allocation24_spill] sm:$0xff]  ;;  %v5840_v21 = vld [vmem:[%s12417_s5 + $0x8] sm:$0xff] }
 0x5be   :  { %v5139_v20 = vadd.f32 %v5025_v30, %v12784_v6  ;;  %v4214_v60 = vpop.f32.mrb[157].mxu0  ;;  %9411 = vrcp.f32 %v3650_v50 }
 0x5bf   :  { %v9402_v41 = vpop.eup %9401  ;;  %v5142_v63 = vadd.f32 %v5031_v32, %v12787_v34  ;;  %v12796_v32 = vld [vmem:[#allocation26_spill] sm:$0xff] }
 0x5c0   :  { %v3647_v48 = vpop.xlane.xlu0 %3646  ;;  %8386 = vmatmul.mubr.msk.f32.gmra.mrb[188].mxu0 %vm1933_vm2, %v5139_v20  ;;  %v5029_v16 = vmul.f32 %v9402_v41, %v11753_v57  ;;  %v9404_v42 = vpop.eup %9403 }
 0x5c1   :  { %9413 = vrcp.f32 %v3647_v48  ;;  %8388 = vmatprep.mubr.msk.f32.mxu0 %vm1933_vm2, %v5140_v14  ;;  %v5035_v40 = vmul.f32 %v9404_v42, %v4204_v25  ;;  %v11799_v17 = vpop.xlane.xlu1 %3673  ;;  %v12793_v25 = vld [vmem:[#allocation25_spill] sm:$0xff] }
 0x5c2   :  { %v5141_v59 = vadd.f32 %v5029_v16, %v12786_v0  ;;  %9415 = vrcp.f32 %v3656_v10  ;;  %v12792_v10 = vld [vmem:[#allocation22_spill] sm:$0xff] }
 0x5c3   :  { %v9406_v29 = vpop.eup %9405  ;;  %v5144_v52 = vadd.f32 %v5035_v40, %v12789_v3 }
 0x5c4   :  { %v3653_v35 = vpop.xlane.xlu0 %3652  ;;  %8389 = vmatmul.mubr.msk.f32.gmra.mrb[190].mxu0 %vm1933_vm2, %v5141_v59  ;;  %v5033_v58 = vmul.f32 %v9406_v29, %v8209_v51  ;;  %v9408_v26 = vpop.eup %9407 }
 0x5c5   :  { %9417 = vrcp.f32 %v3653_v35  ;;  %8391 = vmatprep.mubr.msk.f32.mxu0 %vm1933_vm2, %v5142_v63  ;;  %v8218_v57 = vpop.f32.mrb[158].mxu0  ;;  %v5039_v36 = vmul.f32 %v9408_v26, %v4214_v60  ;;  %v3680_v55 = vpop.xlane.xlu1 %3679 }
 0x5c6   :  { %v5143_v18 = vadd.f32 %v5033_v58, %v12788_v15  ;;  %v4224_v49 = vpop.f32.mrb[159].mxu0 }
 0x5c7   :  { %v9410_v61 = vpop.eup %9409  ;;  %v5146_v62 = vadd.f32 %v5039_v36, %v12791_v4 }
 0x5c8   :  { %v3659_v7 = vpop.xlane.xlu0 %3658  ;;  %8392 = vmatmul.mubr.msk.f32.gmra.mrb[192].mxu0 %vm1933_vm2, %v5143_v18  ;;  %v5037_v50 = vmul.f32 %v9410_v61, %v8212_v56  ;;  %v9412_v51 = vpop.eup %9411 }
 0x5c9   :  { %9419 = vrcp.f32 %v3659_v7  ;;  %8394 = vmatprep.mubr.msk.f32.mxu0 %vm1933_vm2, %v5144_v52  ;;  %v11802_v38 = vpop.f32.mrb[160].mxu0  ;;  %v5043_v24 = vmul.f32 %v9412_v51, %v4224_v49  ;;  %v3686_v13 = vpop.xlane.xlu1 %3685 }
 0x5ca   :  { %v5145_v47 = vadd.f32 %v5037_v50, %v12790_v22  ;;  %v11805_v31 = vpop.f32.mrb[161].mxu0  ;;  %9421 = vrcp.f32 %v3662_v43 }
 0x5cb   :  { %v9414_v39 = vpop.eup %9413  ;;  %v5148_v53 = vadd.f32 %v5043_v24, %v12793_v25 }
 0x5cc   :  { %v3665_v23 = vpop.xlane.xlu0 %3664  ;;  %8395 = vmatmul.mubr.msk.f32.gmra.mrb[194].mxu0 %vm1933_vm2, %v5145_v47  ;;  %v5041_v44 = vmul.f32 %v9414_v39, %v8215_v5  ;;  %v9416_v33 = vpop.eup %9415  ;;  %v5839_v5 = vld [vmem:[%s12417_s5] sm:$0xff]  ;;  %v12799_v39 = vld [vmem:[#allocation31_spill] sm:$0xff] }
 0x5cd   :  { %9423 = vrcp.f32 %v3665_v23  ;;  %8397 = vmatprep.mubr.msk.f32.mxu0 %vm1933_vm2, %v5146_v62  ;;  %v8237_v46 = vpop.f32.mrb[120].mxu1  ;;  %v11810_v56 = vpop.f32.mrb[162].mxu0  ;;  %v8911_v60 = vpack.c.bf16 %v5840_v21, %v5839_v5  ;;  %v12800_v62 = vld [vmem:[#allocation30_spill] sm:$0xff]  ;;  %v12803_v21 = vld [vmem:[#allocation35_spill] sm:$0xff] }
 0x5ce   :  { %v5147_v11 = vadd.f32 %v5041_v44, %v12792_v10  ;;  %v4347_v2 = vpop.f32.mrb[121].mxu1  ;;  %v11813_v27 = vpop.f32.mrb[163].mxu0 }
 0x5cf   :  { %v9418_v8 = vpop.eup %9417  ;;  %v5047_v19 = vmul.f32 %v9416_v33, %v4347_v2  ;;  %8912 = vmatprep.subr.bf16.mxu1 %v8911_v60  ;;  %v3692_v49 = vpop.xlane.xlu1 %3691 }
 0x5d0   :  { %v3671_v12 = vpop.xlane.xlu0 %3670  ;;  %v5045_v54 = vmul.f32 %v9418_v8, %v8218_v57  ;;  %8398 = vmatmul.mubr.msk.f32.gmra.mrb[196].mxu0 %vm1933_vm2, %v5147_v11  ;;  %8914 = vmatpush3.bf16.msra.mxu1 %v8911_v60  ;;  %v12798_v57 = vld [vmem:[#allocation28_spill] sm:$0xff] }
 0x5d1   :  { %v5150_v1 = vadd.f32 %v5047_v19, %v12794_v45  ;;  %8400 = vmatprep.mubr.msk.f32.mxu0 %vm1933_vm2, %v5148_v53  ;;  %v11819_v37 = vpop.f32.mrb[164].mxu0  ;;  %9425 = vrcp.f32 %v3671_v12 }
 0x5d2   :  { %v5149_v30 = vadd.f32 %v5045_v54, %v12795_v28  ;;  %v11822_v43 = vpop.f32.mrb[165].mxu0  ;;  %9427 = vrcp.f32 %v3668_v9  ;;  %v12797_v9 = vld [vmem:[#allocation29_spill] sm:$0xff] }
 0x5d3   :  { %v9420_v6 = vpop.eup %9419  ;;  %9429 = vrcp.f32 %v3680_v55  ;;  %v3698_v44 = vpop.xlane.xlu1 %3697  ;;  %v12801_v54 = vld [vmem:[#allocation33_spill] sm:$0xff] }
 0x5d4   :  { %v3677_v20 = vpop.xlane.xlu0 %3676  ;;  %v5049_v41 = vmul.f32 %v9420_v6, %v8237_v46  ;;  %8401 = vmatmul.mubr.msk.f32.gmra.mrb[198].mxu0 %vm1933_vm2, %v5149_v30  ;;  %v9422_v14 = vpop.eup %9421 }
 0x5d5   :  { %8403 = vmatprep.mubr.msk.f32.mxu0 %vm1933_vm2, %v5150_v1  ;;  %9431 = vrcp.f32 %v3677_v20  ;;  %v12802_v1 = vld [vmem:[#allocation32_spill] sm:$0xff] }
 0x5d6   :  { %v5151_v48 = vadd.f32 %v5049_v41, %v12796_v32  ;;  %v8240_v16 = vpop.f32.mrb[122].mxu1  ;;  %v11833_v42 = vpop.f32.mrb[166].mxu0  ;;  %9433 = vrcp.f32 %v11799_v17  ;;  %v12805_v32 = vld [vmem:[#allocation37_spill] sm:$0xff] }
 0x5d7   :  { %v9424_v0 = vpop.eup %9423  ;;  %v4357_v29 = vpop.f32.mrb[123].mxu1 }
 0x5d8   :  { %v3683_v59 = vpop.xlane.xlu0 %3682  ;;  %v5053_v34 = vmul.f32 %v9424_v0, %v8240_v16  ;;  %8404 = vmatmul.mubr.msk.f32.gmra.mrb[200].mxu0 %vm1933_vm2, %v5151_v48  ;;  %v5051_v63 = vmul.f32 %v9422_v14, %v4357_v29  ;;  %v11836_v40 = vpop.f32.mrb[167].mxu0  ;;  %v5842_v0 = vld [vmem:[%s12417_s5 + $0x18] sm:$0xff] }
 0x5d9   :  { %9435 = vrcp.f32 %v3683_v59  ;;  %v12806_v59 = vld [vmem:[#allocation36_spill] sm:$0xff] }
 0x5da   :  { %v5152_v35 = vadd.f32 %v5051_v63, %v12797_v9  ;;  %v11839_v58 = vpop.f32.mrb[168].mxu0  ;;  %v5153_v26 = vadd.f32 %v5053_v34, %v12798_v57  ;;  %9437 = vrcp.f32 %v3686_v13  ;;  %v12808_v57 = vld [vmem:[#allocation38_spill] sm:$0xff] }
 0x5db   :  { %v11842_v18 = vpop.f32.mrb[169].mxu0  ;;  %v9426_v61 = vpop.eup %9425 }
 0x5dc   :  { %v3689_v15 = vpop.xlane.xlu0 %3688  ;;  %8406 = vmatprep.mubr.msk.f32.mxu0 %vm1933_vm2, %v5152_v35  ;;  %v9428_v36 = vpop.eup %9427 }
 0x5dd   :  { %8407 = vmatmul.mubr.msk.f32.gmra.mrb[202].mxu0 %vm1933_vm2, %v5153_v26  ;;  %9439 = vrcp.f32 %v3689_v15  ;;  %v9430_v46 = vpop.eup %9429 }
 0x5de   :  { %v8243_v3 = vpop.f32.mrb[124].mxu1  ;;  %v11847_v52 = vpop.f32.mrb[170].mxu0  ;;  %9441 = vrcp.f32 %v3692_v49  ;;  %v5063_v53 = vmul.f32 %v9430_v46, %v11805_v31  ;;  %v12804_v31 = vld [vmem:[#allocation34_spill] sm:$0xff]  ;;  %v12809_v49 = vld [vmem:[#allocation41_spill] sm:$0xff] }
 0x5df   :  { %v5057_v7 = vmul.f32 %v9426_v61, %v8243_v3  ;;  %v4367_v50 = vpop.f32.mrb[125].mxu1  ;;  %v11849_v22 = vpop.f32.mrb[171].mxu0 }
 0x5e0   :  { %v5055_v51 = vmul.f32 %v9428_v36, %v4367_v50  ;;  %v3695_v47 = vpop.xlane.xlu0 %3694  ;;  %v9432_v33 = vpop.eup %9431  ;;  %v5158_v6 = vadd.f32 %v5063_v53, %v12803_v21  ;;  %v12810_v36 = vld [vmem:[#allocation40_spill] sm:$0xff] }
 0x5e1   :  { %v5155_v24 = vadd.f32 %v5057_v7, %v12800_v62  ;;  %9443 = vrcp.f32 %v3695_v47  ;;  %v9434_v11 = vpop.eup %9433  ;;  %v3704_v3 = vpop.xlane.xlu1 %3703 }
 0x5e2   :  { %v5154_v4 = vadd.f32 %v5055_v51, %v12799_v39  ;;  %v11852_v17 = vpop.f32.mrb[172].mxu0  ;;  %9445 = vrcp.f32 %v3698_v44 }
 0x5e3   :  { %v11855_v23 = vpop.f32.mrb[173].mxu0  ;;  %v9436_v25 = vpop.eup %9435 }
 0x5e4   :  { %8409 = vmatprep.mubr.msk.f32.mxu0 %vm1933_vm2, %v5154_v4  ;;  %v3701_v2 = vpop.xlane.xlu0 %3700  ;;  %v9438_v19 = vpop.eup %9437  ;;  %v5065_v30 = vmul.f32 %v9436_v25, %v11802_v38 }
 0x5e5   :  { %8410 = vmatmul.mubr.msk.f32.gmra.mrb[204].mxu0 %vm1933_vm2, %v5155_v24  ;;  %9447 = vrcp.f32 %v3701_v2  ;;  %v5067_v20 = vmul.f32 %v9438_v19, %v11813_v27  ;;  %v5841_v27 = vld [vmem:[%s12417_s5 + $0x10] sm:$0xff]  ;;  %v3710_v7 = vpop.xlane.xlu1 %3709 }
 0x5e6   :  { %v8246_v10 = vpop.f32.mrb[126].mxu1  ;;  %v5159_v41 = vadd.f32 %v5065_v30, %v12804_v31  ;;  %v8915_v34 = vpack.c.bf16 %v5842_v0, %v5841_v27 }
 0x5e7   :  { %v5061_v8 = vmul.f32 %v9432_v33, %v8246_v10  ;;  %v4377_v55 = vpop.f32.mrb[127].mxu1  ;;  %v9440_v5 = vpop.eup %9439  ;;  %v5160_v48 = vadd.f32 %v5067_v20, %v12805_v32 }
 0x5e8   :  { %v5059_v12 = vmul.f32 %v9434_v11, %v4377_v55  ;;  %v9442_v60 = vpop.eup %9441  ;;  %v5069_v13 = vmul.f32 %v9440_v5, %v11810_v56  ;;  %8916 = vmatprep.subr.bf16.mxu1 %v8915_v34  ;;  %v12812_v5 = vld [vmem:[#allocation42_spill] sm:$0xff] }
 0x5e9   :  { %v5157_v28 = vadd.f32 %v5061_v8, %v12802_v1  ;;  %v5071_v38 = vmul.f32 %v9442_v60, %v11822_v43  ;;  %v12807_v43 = vld [vmem:[#allocation39_spill] sm:$0xff]  ;;  %8918 = vmatpush3.bf16.msra.mxu1 %v8915_v34  ;;  %v3716_v51 = vpop.xlane.xlu1 %3715 }
 0x5ea   :  { %v5156_v45 = vadd.f32 %v5059_v12, %v12801_v54  ;;  %v5161_v56 = vadd.f32 %v5069_v13, %v12806_v59  ;;  %v12813_v13 = vld [vmem:[#allocation45_spill] sm:$0xff] }
 0x5eb   :  { %v9444_v14 = vpop.eup %9443  ;;  %v5162_v9 = vadd.f32 %v5071_v38, %v12807_v43  ;;  %v12814_v38 = vld [vmem:[#allocation44_spill] sm:$0xff] }
 0x5ec   :  { %8412 = vmatprep.mubr.msk.f32.mxu0 %vm1933_vm2, %v5156_v45  ;;  %v9446_v16 = vpop.eup %9445  ;;  %v5073_v29 = vmul.f32 %v9444_v14, %v11819_v37  ;;  %v3707_v37 = vpop.xlane.xlu0 %3706  ;;  %v12811_v45 = vld [vmem:[#allocation43_spill] sm:$0xff] }
 0x5ed   :  { %8413 = vmatmul.mubr.msk.f32.gmra.mrb[206].mxu0 %vm1933_vm2, %v5157_v28  ;;  %v5075_v35 = vmul.f32 %v9446_v16, %v11836_v40  ;;  %v3722_v39 = vpop.xlane.xlu1 %3721  ;;  %9449 = vrcp.f32 %v3707_v37 }
 0x5ee   :  { %8415 = vmatprep.mubr.msk.f32.mxu0 %vm1933_vm2, %v5158_v6  ;;  %v5163_v26 = vadd.f32 %v5073_v29, %v12808_v57  ;;  %9451 = vrcp.f32 %v3704_v3 }
 0x5ef   :  { %v9448_v63 = vpop.eup %9447  ;;  %v5164_v61 = vadd.f32 %v5075_v35, %v12809_v49 }
 0x5f0   :  { %v5077_v15 = vmul.f32 %v9448_v63, %v11833_v42  ;;  %v3713_v50 = vpop.xlane.xlu0 %3712  ;;  %v12815_v63 = vld [vmem:[#allocation47_spill] sm:$0xff] }
 0x5f1   :  { %8416 = vmatmul.mubr.msk.f32.gmra.mrb[208].mxu0 %vm1933_vm2, %v5159_v41  ;;  %v3728_v62 = vpop.xlane.xlu1 %3727  ;;  %9453 = vrcp.f32 %v3713_v50  ;;  %v12817_v50 = vld [vmem:[#allocation49_spill] sm:$0xff] }
 0x5f2   :  { %8418 = vmatprep.mubr.msk.f32.mxu0 %vm1933_vm2, %v5160_v48  ;;  %v5165_v40 = vadd.f32 %v5077_v15, %v12810_v36  ;;  %9455 = vrcp.f32 %v3710_v7 }
 0x5f4   :  { %v3719_v47 = vpop.xlane.xlu0 %3718 }
 0x5f5   :  { %8419 = vmatmul.mubr.msk.f32.gmra.mrb[210].mxu0 %vm1933_vm2, %v5161_v56  ;;  %v3734_v24 = vpop.xlane.xlu1 %3733  ;;  %9457 = vrcp.f32 %v3719_v47  ;;  %v12818_v47 = vld [vmem:[#allocation48_spill] sm:$0xff] }
 0x5f6   :  { %8421 = vmatprep.mubr.msk.f32.mxu0 %vm1933_vm2, %v5162_v9  ;;  %9459 = vrcp.f32 %v3716_v51 }
 0x5f7   :  { %v9450_v11 = vpop.eup %9449  ;;  %9461 = vrcp.f32 %v3728_v62 }
 0x5f8   :  { %v3725_v4 = vpop.xlane.xlu0 %3724  ;;  %v9452_v8 = vpop.eup %9451 }
 0x5f9   :  { %8422 = vmatmul.mubr.msk.f32.gmra.mrb[212].mxu0 %vm1933_vm2, %v5163_v26  ;;  %v3740_v10 = vpop.xlane.xlu1 %3739  ;;  %9463 = vrcp.f32 %v3725_v4  ;;  %v12816_v26 = vld [vmem:[#allocation46_spill] sm:$0xff] }
 0x5fa   :  { %8424 = vmatprep.mubr.msk.f32.mxu0 %vm1933_vm2, %v5164_v61  ;;  %9465 = vrcp.f32 %v3722_v39 }
 0x5fb   :  { %v9454_v19 = vpop.eup %9453 }
 0x5fc   :  { %v3731_v42 = vpop.xlane.xlu0 %3730  ;;  %v9456_v30 = vpop.eup %9455 }
 0x5fd   :  { %8425 = vmatmul.mubr.msk.f32.gmra.mrb[214].mxu0 %vm1933_vm2, %v5165_v40  ;;  %v3746_v54 = vpop.xlane.xlu1 %3745  ;;  %9467 = vrcp.f32 %v3731_v42  ;;  %v12819_v42 = vld [vmem:[#allocation51_spill] sm:$0xff] }
 0x5fe   :  { %9469 = vrcp.f32 %v3734_v24 }
 0x5ff   :  { %v9458_v41 = vpop.eup %9457 }
 0x600   :  { %v3737_v44 = vpop.xlane.xlu0 %3736  ;;  %v9460_v48 = vpop.eup %9459 }
 0x601   :  { %9471 = vrcp.f32 %v3737_v44  ;;  %v3752_v59 = vpop.xlane.xlu1 %3751  ;;  %v9462_v29 = vpop.eup %9461 }
 0x602   :  { %9473 = vrcp.f32 %v3740_v10  ;;  %v5095_v36 = vmul.f32 %v9462_v29, %v11842_v18 }
 0x603   :  { %v9464_v34 = vpop.eup %9463 }
 0x604   :  { %v3743_v55 = vpop.xlane.xlu0 %3742  ;;  %v9466_v35 = vpop.eup %9465  ;;  %v5174_v24 = vadd.f32 %v5095_v36, %v12819_v42  ;;  %v12832_v42 = vld [vmem:[#allocation62_spill] sm:$0xff] }
 0x605   :  { %9475 = vrcp.f32 %v3743_v55  ;;  %v3758_v7 = vpop.xlane.xlu1 %3757 }
 0x606   :  { %9477 = vrcp.f32 %v3746_v54  ;;  %v12822_v54 = vld [vmem:[#allocation52_spill] sm:$0xff] }
 0x607   :  { %v9468_v3 = vpop.eup %9467 }
 0x608   :  { %v3749_v31 = vpop.xlane.xlu0 %3748  ;;  %v9470_v40 = vpop.eup %9469  ;;  %v5097_v4 = vmul.f32 %v9468_v3, %v11839_v58 }
 0x609   :  { %9479 = vrcp.f32 %v3749_v31  ;;  %v5099_v44 = vmul.f32 %v9470_v40, %v11849_v22  ;;  %v3764_v55 = vpop.xlane.xlu1 %3763  ;;  %v12824_v31 = vld [vmem:[#allocation54_spill] sm:$0xff]  ;;  %v12830_v40 = vld [vmem:[#allocation60_spill] sm:$0xff] }
 0x60a   :  { %9481 = vrcp.f32 %v3752_v59  ;;  %v12827_v59 = vld [vmem:[#allocation59_spill] sm:$0xff] }
 0x60b   :  { %v9472_v62 = vpop.eup %9471 }
 0x60c   :  { %v3755_v57 = vpop.xlane.xlu0 %3754  ;;  %v9474_v18 = vpop.eup %9473 }
 0x60d   :  { %9483 = vrcp.f32 %v3755_v57 }
 0x60e   :  { %9485 = vrcp.f32 %v3758_v7 }
 0x60f   :  { %v9476_v58 = vpop.eup %9475 }
 0x610   :  { %v3761_v10 = vpop.xlane.xlu0 %3760  ;;  %v9478_v22 = vpop.eup %9477 }
 0x611   :  { %9487 = vrcp.f32 %v3761_v10 }
 0x612   :  { %9489 = vrcp.f32 %v3764_v55 }
 0x61a   :  { %v11893_v46 = vpop.f32.mrb[174].mxu0 }
 0x61b   :  { %v11895_v33 = vpop.f32.mrb[175].mxu0 }
 0x61e   :  { %v8293_v2 = vpop.f32.mrb[128].mxu1 }
 0x61f   :  { %v5081_v25 = vmul.f32 %v9450_v11, %v8293_v2  ;;  %v4653_v53 = vpop.f32.mrb[129].mxu1  ;;  %v12820_v11 = vld [vmem:[#allocation50_spill] sm:$0xff] }
 0x620   :  { %v5079_v12 = vmul.f32 %v9452_v8, %v4653_v53  ;;  %v5175_v2 = vadd.f32 %v5097_v4, %v12820_v11  ;;  %v5101_v8 = vmul.f32 %v9472_v62, %v11847_v52  ;;  %v5107_v52 = vmul.f32 %v9478_v22, %v11895_v33  ;;  %v12834_v11 = vld [vmem:[#allocation64_spill] sm:$0xff] }
 0x621   :  { %v5167_v21 = vadd.f32 %v5081_v25, %v12812_v5  ;;  %v12821_v25 = vld [vmem:[#allocation53_spill] sm:$0xff]  ;;  %v3770_v5 = vpop.xlane.xlu1 %3769 }
 0x622   :  { %v5166_v1 = vadd.f32 %v5079_v12, %v12811_v45  ;;  %v8296_v28 = vpop.f32.mrb[130].mxu1  ;;  %v5176_v53 = vadd.f32 %v5099_v44, %v12821_v25  ;;  %v5103_v12 = vmul.f32 %v9474_v18, %v11855_v23  ;;  %v5177_v45 = vadd.f32 %v5101_v8, %v12822_v54  ;;  %v9480_v23 = vpop.eup %9479  ;;  %v12833_v18 = vld [vmem:[#allocation65_spill] sm:$0xff]  ;;  %v11956_v8 = vld [vmem:[%s12414_s6 + $0x2] ss:$0 sm:$0xff] }
 0x623   :  { %v5085_v6 = vmul.f32 %v9454_v19, %v8296_v28  ;;  %v4663_v20 = vpop.f32.mrb[131].mxu1  ;;  %v3767_v19 = vpop.xlane.xlu0 %3766  ;;  %v12823_v28 = vld [vmem:[#allocation55_spill] sm:$0xff] }
 0x624   :  { %v5083_v60 = vmul.f32 %v9456_v30, %v4663_v20  ;;  %8427 = vmatprep.mubr.msk.f32.mxu0 %vm1933_vm2, %v5166_v1  ;;  %v5105_v1 = vmul.f32 %v9476_v58, %v11852_v17  ;;  %v5178_v30 = vadd.f32 %v5103_v12, %v12823_v28  ;;  %v5109_v20 = vmul.f32 %v9480_v23, %v11893_v46  ;;  %v12825_v17 = vld [vmem:[#allocation57_spill] sm:$0xff] }
 0x625   :  { %8428 = vmatmul.mubr.msk.f32.gmra.mrb[216].mxu0 %vm1933_vm2, %v5167_v21  ;;  %v5169_v16 = vadd.f32 %v5085_v6, %v12814_v38  ;;  %v9482_v6 = vpop.eup %9481  ;;  %9491 = vrcp.f32 %v3767_v19 }
 0x626   :  { %v5168_v14 = vadd.f32 %v5083_v60, %v12813_v13  ;;  %v8299_v32 = vpop.f32.mrb[132].mxu1  ;;  %v5180_v13 = vadd.f32 %v5107_v52, %v12825_v17  ;;  %9493 = vrcp.f32 %v3770_v5 }
 0x627   :  { %v5089_v27 = vmul.f32 %v9458_v41, %v8299_v32  ;;  %v4673_v0 = vpop.f32.mrb[133].mxu1  ;;  %v5179_v41 = vadd.f32 %v5105_v1, %v12824_v31  ;;  %v9484_v32 = vpop.eup %9483 }
 0x628   :  { %v5087_v56 = vmul.f32 %v9460_v48, %v4673_v0  ;;  %8430 = vmatprep.mubr.msk.f32.mxu0 %vm1933_vm2, %v5168_v14  ;;  %v3773_v14 = vpop.xlane.xlu0 %3772  ;;  %v9486_v38 = vpop.eup %9485 }
 0x629   :  { %8431 = vmatmul.mubr.msk.f32.gmra.mrb[218].mxu0 %vm1933_vm2, %v5169_v16  ;;  %v5171_v15 = vadd.f32 %v5089_v27, %v12816_v26  ;;  %v12826_v16 = vld [vmem:[#allocation56_spill] sm:$0xff]  ;;  %9495 = vrcp.f32 %v3773_v14 }
 0x62a   :  { %v5170_v43 = vadd.f32 %v5087_v56, %v12815_v63  ;;  %v8302_v9 = vpop.f32.mrb[134].mxu1  ;;  %v5181_v27 = vadd.f32 %v5109_v20, %v12826_v16 }
 0x62b   :  { %v5093_v49 = vmul.f32 %v9464_v34, %v8302_v9  ;;  %v4683_v61 = vpop.f32.mrb[135].mxu1  ;;  %v9488_v34 = vpop.eup %9487  ;;  %v12828_v9 = vld [vmem:[#allocation58_spill] sm:$0xff] }
 0x62c   :  { %v5091_v37 = vmul.f32 %v9466_v35, %v4683_v61  ;;  %8433 = vmatprep.mubr.msk.f32.mxu0 %vm1933_vm2, %v5170_v43  ;;  %v9490_v43 = vpop.eup %9489 }
 0x62d   :  { %8434 = vmatmul.mubr.msk.f32.gmra.mrb[220].mxu0 %vm1933_vm2, %v5171_v15  ;;  %v5173_v39 = vadd.f32 %v5093_v49, %v12818_v47  ;;  %v12829_v15 = vld [vmem:[#allocation61_spill] sm:$0xff]  ;;  %v12831_v47 = vld [vmem:[#allocation63_spill] sm:$0xff] }
 0x62e   :  { %v5172_v51 = vadd.f32 %v5091_v37, %v12817_v50 }
 0x62f   :  { %v9492_v3 = vpop.eup %9491 }
 0x630   :  { %8436 = vmatprep.mubr.msk.f32.mxu0 %vm1933_vm2, %v5172_v51  ;;  %v9494_v36 = vpop.eup %9493 }
 0x631   :  { %8437 = vmatmul.mubr.msk.f32.gmra.mrb[222].mxu0 %vm1933_vm2, %v5173_v39 }
 0x632   :  { %8439 = vmatprep.mubr.msk.f32.mxu0 %vm1933_vm2, %v5174_v24 }
 0x633   :  { %v9496_v62 = vpop.eup %9495 }
 0x635   :  { %8440 = vmatmul.mubr.msk.f32.gmra.mrb[224].mxu0 %vm1933_vm2, %v5175_v2 }
 0x636   :  { %8442 = vmatprep.mubr.msk.f32.mxu0 %vm1933_vm2, %v5176_v53 }
 0x639   :  { %8443 = vmatmul.mubr.msk.f32.gmra.mrb[226].mxu0 %vm1933_vm2, %v5177_v45 }
 0x63a   :  { %v8349_v21 = vpop.f32.mrb[136].mxu1  ;;  %8445 = vmatprep.mubr.msk.f32.mxu0 %vm1933_vm2, %v5178_v30 }
 0x63b   :  { %v4959_v60 = vpop.f32.mrb[137].mxu1  ;;  %v5113_v0 = vmul.f32 %v9484_v32, %v8349_v21 }
 0x63c   :  { %v5111_v33 = vmul.f32 %v9482_v6, %v4959_v60 }
 0x63d   :  { %8446 = vmatmul.mubr.msk.f32.gmra.mrb[228].mxu0 %vm1933_vm2, %v5179_v41  ;;  %v5183_v35 = vadd.f32 %v5113_v0, %v12828_v9 }
 0x63e   :  { %v8352_v48 = vpop.f32.mrb[138].mxu1  ;;  %8448 = vmatprep.mubr.msk.f32.mxu0 %vm1933_vm2, %v5180_v13  ;;  %v5182_v56 = vadd.f32 %v5111_v33, %v12827_v59 }
 0x63f   :  { %v4969_v46 = vpop.f32.mrb[139].mxu1  ;;  %v5117_v57 = vmul.f32 %v9488_v34, %v8352_v48 }
 0x640   :  { %v5115_v29 = vmul.f32 %v9486_v38, %v4969_v46 }
 0x641   :  { %8449 = vmatmul.mubr.msk.f32.gmra.mrb[230].mxu0 %vm1933_vm2, %v5181_v27  ;;  %v5185_v7 = vadd.f32 %v5117_v57, %v12830_v40 }
 0x642   :  { %v8355_v63 = vpop.f32.mrb[140].mxu1  ;;  %8451 = vmatprep.mubr.msk.f32.mxu0 %vm1933_vm2, %v5182_v56  ;;  %v5184_v49 = vadd.f32 %v5115_v29, %v12829_v15 }
 0x643   :  { %v4979_v26 = vpop.f32.mrb[141].mxu1  ;;  %v5121_v50 = vmul.f32 %v9492_v3, %v8355_v63 }
 0x644   :  { %v5119_v61 = vmul.f32 %v9490_v43, %v4979_v26 }
 0x645   :  { %8452 = vmatmul.mubr.msk.f32.gmra.mrb[232].mxu0 %vm1933_vm2, %v5183_v35  ;;  %v5187_v24 = vadd.f32 %v5121_v50, %v12832_v42 }
 0x646   :  { %v8358_v37 = vpop.f32.mrb[142].mxu1  ;;  %8454 = vmatprep.mubr.msk.f32.mxu0 %vm1933_vm2, %v5184_v49  ;;  %v5186_v39 = vadd.f32 %v5119_v61, %v12831_v47 }
 0x647   :  { %v4989_v51 = vpop.f32.mrb[143].mxu1  ;;  %v5125_v44 = vmul.f32 %v9496_v62, %v8358_v37 }
 0x648   :  { %v5123_v4 = vmul.f32 %v9494_v36, %v4989_v51 }
 0x649   :  { %8455 = vmatmul.mubr.msk.f32.gmra.mrb[234].mxu0 %vm1933_vm2, %v5185_v7  ;;  %v5189_v2 = vadd.f32 %v5125_v44, %v12834_v11 }
 0x64a   :  { %8457 = vmatprep.mubr.msk.f32.mxu0 %vm1933_vm2, %v5186_v39  ;;  %v5188_v10 = vadd.f32 %v5123_v4, %v12833_v18 }
 0x64d   :  { %8458 = vmatmul.mubr.msk.f32.gmra.mrb[236].mxu0 %vm1933_vm2, %v5187_v24 }
 0x64e   :  { %8460 = vmatprep.mubr.msk.f32.mxu0 %vm1933_vm2, %v5188_v10 }
 0x651   :  { %8461 = vmatmul.mubr.msk.f32.gmra.mrb[238].mxu0 %vm1933_vm2, %v5189_v2 }
 0x672   :  { %v8369_v58 = vpop.f32.mrb[176].mxu0 }
 0x673   :  { %v5462_v55 = vadd.f32 %v8369_v58, %v11956_v8  ;;  %v5456_v25 = vpop.f32.mrb[177].mxu0 }
 0x674   :  { %v5457_v53 = vadd.f32 %v11956_v8, %v5456_v25 }
 0x675   :  { %v5776_v22 = vmax.f32 %v5462_v55, 0.0 }
 0x676   :  { %v5775_v12 = vmax.f32 %v5457_v53, 0.0  ;;  %v8372_v19 = vpop.f32.mrb[178].mxu0 }
 0x677   :  { %v5472_v54 = vadd.f32 %v8372_v19, %v11956_v8  ;;  %v5466_v45 = vpop.f32.mrb[179].mxu0 }
 0x678   :  { %8471 = vmatprep.mubr.msk.f32.mxu1 %vm1933_vm2, %v5775_v12  ;;  %v5467_v1 = vadd.f32 %v11956_v8, %v5466_v45 }
 0x679   :  { %8472 = vmatmul.mubr.msk.f32.vlgmr.msra.gmra.mrb[144].mxu1 %vm1933_vm2, %v5776_v22  ;;  %v5778_v28 = vmax.f32 %v5472_v54, 0.0 }
 0x67a   :  { %v5777_v52 = vmax.f32 %v5467_v1, 0.0 }
 0x67c   :  { %8474 = vmatprep.mubr.msk.f32.mxu1 %vm1933_vm2, %v5777_v52 }
 0x67d   :  { %8475 = vmatmul.mubr.msk.f32.gmra.mrb[146].mxu1 %vm1933_vm2, %v5778_v28 }
 0x67f   :  { %v8375_v30 = vpop.f32.mrb[180].mxu0 }
 0x680   :  { %v5482_v23 = vadd.f32 %v8375_v30, %v11956_v8  ;;  %v5476_v5 = vpop.f32.mrb[181].mxu0 }
 0x681   :  { %v5477_v21 = vadd.f32 %v11956_v8, %v5476_v5 }
 0x682   :  { %v5780_v20 = vmax.f32 %v5482_v23, 0.0 }
 0x683   :  { %v5779_v6 = vmax.f32 %v5477_v21, 0.0 }
 0x685   :  { %8477 = vmatprep.mubr.msk.f32.mxu1 %vm1933_vm2, %v5779_v6 }
 0x686   :  { %8478 = vmatmul.mubr.msk.f32.gmra.mrb[148].mxu1 %vm1933_vm2, %v5780_v20 }
 0x687   :  { %v8378_v60 = vpop.f32.mrb[182].mxu0 }
 0x688   :  { %v5492_v31 = vadd.f32 %v8378_v60, %v11956_v8  ;;  %v5486_v41 = vpop.f32.mrb[183].mxu0 }
 0x689   :  { %v5487_v17 = vadd.f32 %v11956_v8, %v5486_v41 }
 0x68a   :  { %v5782_v14 = vmax.f32 %v5492_v31, 0.0 }
 0x68b   :  { %v5781_v13 = vmax.f32 %v5487_v17, 0.0  ;;  %v8381_v33 = vpop.f32.mrb[184].mxu0 }
 0x68c   :  { %v5502_v32 = vadd.f32 %v8381_v33, %v11956_v8  ;;  %v5496_v48 = vpop.f32.mrb[185].mxu0 }
 0x68d   :  { %v5497_v38 = vadd.f32 %v11956_v8, %v5496_v48  ;;  %8480 = vmatprep.mubr.msk.f32.mxu1 %vm1933_vm2, %v5781_v13 }
 0x68e   :  { %8481 = vmatmul.mubr.msk.f32.gmra.mrb[150].mxu1 %vm1933_vm2, %v5782_v14  ;;  %v5784_v0 = vmax.f32 %v5502_v32, 0.0 }
 0x68f   :  { %v5783_v16 = vmax.f32 %v5497_v38, 0.0  ;;  %v8384_v27 = vpop.f32.mrb[186].mxu0 }
 0x690   :  { %v5512_v46 = vadd.f32 %v8384_v27, %v11956_v8  ;;  %v5506_v59 = vpop.f32.mrb[187].mxu0 }
 0x691   :  { %v5507_v56 = vadd.f32 %v11956_v8, %v5506_v59  ;;  %8483 = vmatprep.mubr.msk.f32.mxu1 %vm1933_vm2, %v5783_v16 }
 0x692   :  { %8484 = vmatmul.mubr.msk.f32.gmra.mrb[152].mxu1 %vm1933_vm2, %v5784_v0  ;;  %v5786_v63 = vmax.f32 %v5512_v46, 0.0 }
 0x693   :  { %v5785_v29 = vmax.f32 %v5507_v56, 0.0  ;;  %v8387_v34 = vpop.f32.mrb[188].mxu0 }
 0x694   :  { %v5522_v43 = vadd.f32 %v8387_v34, %v11956_v8  ;;  %v5516_v9 = vpop.f32.mrb[189].mxu0 }
 0x695   :  { %v5517_v35 = vadd.f32 %v11956_v8, %v5516_v9  ;;  %8486 = vmatprep.mubr.msk.f32.mxu1 %vm1933_vm2, %v5785_v29 }
 0x696   :  { %8487 = vmatmul.mubr.msk.f32.gmra.mrb[154].mxu1 %vm1933_vm2, %v5786_v63  ;;  %v5788_v15 = vmax.f32 %v5522_v43, 0.0 }
 0x697   :  { %v5787_v57 = vmax.f32 %v5517_v35, 0.0  ;;  %v8390_v26 = vpop.f32.mrb[190].mxu0 }
 0x698   :  { %v5532_v49 = vadd.f32 %v8390_v26, %v11956_v8  ;;  %v5526_v61 = vpop.f32.mrb[191].mxu0 }
 0x699   :  { %v5527_v3 = vadd.f32 %v11956_v8, %v5526_v61  ;;  %8489 = vmatprep.mubr.msk.f32.mxu1 %vm1933_vm2, %v5787_v57 }
 0x69a   :  { %8490 = vmatmul.mubr.msk.f32.gmra.mrb[156].mxu1 %vm1933_vm2, %v5788_v15  ;;  %v5790_v40 = vmax.f32 %v5532_v49, 0.0 }
 0x69b   :  { %v5789_v37 = vmax.f32 %v5527_v3, 0.0  ;;  %v8393_v36 = vpop.f32.mrb[192].mxu0 }
 0x69c   :  { %v5542_v7 = vadd.f32 %v8393_v36, %v11956_v8  ;;  %v5536_v50 = vpop.f32.mrb[193].mxu0 }
 0x69d   :  { %v5537_v51 = vadd.f32 %v11956_v8, %v5536_v50  ;;  %8492 = vmatprep.mubr.msk.f32.mxu1 %vm1933_vm2, %v5789_v37 }
 0x69e   :  { %8493 = vmatmul.mubr.msk.f32.gmra.mrb[158].mxu1 %vm1933_vm2, %v5790_v40  ;;  %v5792_v4 = vmax.f32 %v5542_v7, 0.0 }
 0x69f   :  { %v5791_v47 = vmax.f32 %v5537_v51, 0.0  ;;  %v8396_v39 = vpop.f32.mrb[194].mxu0 }
 0x6a0   :  { %v5552_v62 = vadd.f32 %v8396_v39, %v11956_v8  ;;  %v5546_v42 = vpop.f32.mrb[195].mxu0 }
 0x6a1   :  { %v5547_v24 = vadd.f32 %v11956_v8, %v5546_v42  ;;  %8495 = vmatprep.mubr.msk.f32.mxu1 %vm1933_vm2, %v5791_v47 }
 0x6a2   :  { %8496 = vmatmul.mubr.msk.f32.gmra.mrb[160].mxu1 %vm1933_vm2, %v5792_v4  ;;  %v5794_v10 = vmax.f32 %v5552_v62, 0.0 }
 0x6a3   :  { %v5793_v44 = vmax.f32 %v5547_v24, 0.0  ;;  %v8399_v18 = vpop.f32.mrb[196].mxu0 }
 0x6a4   :  { %v5562_v11 = vadd.f32 %v8399_v18, %v11956_v8  ;;  %v5556_v2 = vpop.f32.mrb[197].mxu0 }
 0x6a5   :  { %v5557_v58 = vadd.f32 %v11956_v8, %v5556_v2  ;;  %8498 = vmatprep.mubr.msk.f32.mxu1 %vm1933_vm2, %v5793_v44 }
 0x6a6   :  { %8499 = vmatmul.mubr.msk.f32.gmra.mrb[162].mxu1 %vm1933_vm2, %v5794_v10  ;;  %v5796_v53 = vmax.f32 %v5562_v11, 0.0 }
 0x6a7   :  { %v5795_v55 = vmax.f32 %v5557_v58, 0.0  ;;  %v8402_v25 = vpop.f32.mrb[198].mxu0 }
 0x6a8   :  { %v5572_v12 = vadd.f32 %v8402_v25, %v11956_v8  ;;  %v5566_v22 = vpop.f32.mrb[199].mxu0 }
 0x6a9   :  { %v5567_v19 = vadd.f32 %v11956_v8, %v5566_v22  ;;  %8501 = vmatprep.mubr.msk.f32.mxu1 %vm1933_vm2, %v5795_v55 }
 0x6aa   :  { %8502 = vmatmul.mubr.msk.f32.gmra.mrb[164].mxu1 %vm1933_vm2, %v5796_v53  ;;  %v5798_v1 = vmax.f32 %v5572_v12, 0.0 }
 0x6ab   :  { %v5797_v54 = vmax.f32 %v5567_v19, 0.0  ;;  %v8405_v45 = vpop.f32.mrb[200].mxu0 }
 0x6ac   :  { %v5582_v52 = vadd.f32 %v8405_v45, %v11956_v8  ;;  %v5576_v28 = vpop.f32.mrb[201].mxu0 }
 0x6ad   :  { %v5577_v30 = vadd.f32 %v11956_v8, %v5576_v28  ;;  %8504 = vmatprep.mubr.msk.f32.mxu1 %vm1933_vm2, %v5797_v54 }
 0x6ae   :  { %8505 = vmatmul.mubr.msk.f32.gmra.mrb[166].mxu1 %vm1933_vm2, %v5798_v1  ;;  %v5800_v5 = vmax.f32 %v5582_v52, 0.0 }
 0x6af   :  { %v5799_v23 = vmax.f32 %v5577_v30, 0.0 }
 0x6b0   :  { %v8408_v21 = vpop.f32.mrb[202].mxu0 }
 0x6b1   :  { %8507 = vmatprep.mubr.msk.f32.mxu1 %vm1933_vm2, %v5799_v23  ;;  %v5592_v6 = vadd.f32 %v8408_v21, %v11956_v8  ;;  %v5586_v20 = vpop.f32.mrb[203].mxu0 }
 0x6b2   :  { %8508 = vmatmul.mubr.msk.f32.gmra.mrb[168].mxu1 %vm1933_vm2, %v5800_v5  ;;  %v5587_v60 = vadd.f32 %v11956_v8, %v5586_v20 }
 0x6b3   :  { %v5802_v41 = vmax.f32 %v5592_v6, 0.0 }
 0x6b4   :  { %v5801_v31 = vmax.f32 %v5587_v60, 0.0 }
 0x6b6   :  { %8510 = vmatprep.mubr.msk.f32.mxu1 %vm1933_vm2, %v5801_v31 }
 0x6b7   :  { %8511 = vmatmul.mubr.msk.f32.gmra.mrb[170].mxu1 %vm1933_vm2, %v5802_v41 }
 0x6b8   :  { %v8411_v17 = vpop.f32.mrb[204].mxu0 }
 0x6b9   :  { %v5602_v13 = vadd.f32 %v8411_v17, %v11956_v8  ;;  %v5596_v33 = vpop.f32.mrb[205].mxu0 }
 0x6ba   :  { %v5597_v14 = vadd.f32 %v11956_v8, %v5596_v33 }
 0x6bb   :  { %v5804_v48 = vmax.f32 %v5602_v13, 0.0 }
 0x6bc   :  { %v5803_v32 = vmax.f32 %v5597_v14, 0.0 }
 0x6be   :  { %8513 = vmatprep.mubr.msk.f32.mxu1 %vm1933_vm2, %v5803_v32 }
 0x6bf   :  { %8514 = vmatmul.mubr.msk.f32.gmra.mrb[172].mxu1 %vm1933_vm2, %v5804_v48 }
 0x6c0   :  { %v8414_v38 = vpop.f32.mrb[206].mxu0 }
 0x6c1   :  { %v5612_v16 = vadd.f32 %v8414_v38, %v11956_v8  ;;  %v5606_v27 = vpop.f32.mrb[207].mxu0 }
 0x6c2   :  { %v5607_v0 = vadd.f32 %v11956_v8, %v5606_v27 }
 0x6c3   :  { %v5806_v56 = vmax.f32 %v5612_v16, 0.0 }
 0x6c4   :  { %v5805_v46 = vmax.f32 %v5607_v0, 0.0  ;;  %v8417_v59 = vpop.f32.mrb[208].mxu0 }
 0x6c5   :  { %v5622_v29 = vadd.f32 %v8417_v59, %v11956_v8  ;;  %v5616_v34 = vpop.f32.mrb[209].mxu0 }
 0x6c6   :  { %v5617_v63 = vadd.f32 %v11956_v8, %v5616_v34  ;;  %8516 = vmatprep.mubr.msk.f32.mxu1 %vm1933_vm2, %v5805_v46 }
 0x6c7   :  { %8517 = vmatmul.mubr.msk.f32.gmra.mrb[174].mxu1 %vm1933_vm2, %v5806_v56  ;;  %v5808_v35 = vmax.f32 %v5622_v29, 0.0 }
 0x6c8   :  { %v5807_v43 = vmax.f32 %v5617_v63, 0.0  ;;  %v8420_v9 = vpop.f32.mrb[210].mxu0 }
 0x6c9   :  { %v5632_v57 = vadd.f32 %v8420_v9, %v11956_v8  ;;  %v5626_v26 = vpop.f32.mrb[211].mxu0 }
 0x6ca   :  { %v5627_v15 = vadd.f32 %v11956_v8, %v5626_v26  ;;  %8519 = vmatprep.mubr.msk.f32.mxu1 %vm1933_vm2, %v5807_v43 }
 0x6cb   :  { %8520 = vmatmul.mubr.msk.f32.gmra.mrb[176].mxu1 %vm1933_vm2, %v5808_v35  ;;  %v5810_v3 = vmax.f32 %v5632_v57, 0.0 }
 0x6cc   :  { %v5809_v49 = vmax.f32 %v5627_v15, 0.0  ;;  %v8423_v61 = vpop.f32.mrb[212].mxu0 }
 0x6cd   :  { %v5642_v37 = vadd.f32 %v8423_v61, %v11956_v8  ;;  %v5636_v36 = vpop.f32.mrb[213].mxu0 }
 0x6ce   :  { %v5637_v40 = vadd.f32 %v11956_v8, %v5636_v36  ;;  %8522 = vmatprep.mubr.msk.f32.mxu1 %vm1933_vm2, %v5809_v49 }
 0x6cf   :  { %8523 = vmatmul.mubr.msk.f32.gmra.mrb[178].mxu1 %vm1933_vm2, %v5810_v3  ;;  %v5812_v51 = vmax.f32 %v5642_v37, 0.0 }
 0x6d0   :  { %v5811_v7 = vmax.f32 %v5637_v40, 0.0  ;;  %v8426_v50 = vpop.f32.mrb[214].mxu0 }
 0x6d1   :  { %v5652_v47 = vadd.f32 %v8426_v50, %v11956_v8  ;;  %v5646_v39 = vpop.f32.mrb[215].mxu0 }
 0x6d2   :  { %v5647_v4 = vadd.f32 %v11956_v8, %v5646_v39  ;;  %8525 = vmatprep.mubr.msk.f32.mxu1 %vm1933_vm2, %v5811_v7 }
 0x6d3   :  { %8526 = vmatmul.mubr.msk.f32.gmra.mrb[180].mxu1 %vm1933_vm2, %v5812_v51  ;;  %v5814_v42 = vmax.f32 %v5652_v47, 0.0 }
 0x6d4   :  { %v5813_v62 = vmax.f32 %v5647_v4, 0.0 }
 0x6d6   :  { %8528 = vmatprep.mubr.msk.f32.mxu1 %vm1933_vm2, %v5813_v62 }
 0x6d7   :  { %8529 = vmatmul.mubr.msk.f32.gmra.mrb[182].mxu1 %vm1933_vm2, %v5814_v42 }
 0x6f8   :  { %v8429_v24 = vpop.f32.mrb[216].mxu0 }
 0x6f9   :  { %v5662_v44 = vadd.f32 %v8429_v24, %v11956_v8  ;;  %v5656_v18 = vpop.f32.mrb[217].mxu0 }
 0x6fa   :  { %v5657_v10 = vadd.f32 %v11956_v8, %v5656_v18 }
 0x6fb   :  { %v5816_v58 = vmax.f32 %v5662_v44, 0.0 }
 0x6fc   :  { %v5815_v11 = vmax.f32 %v5657_v10, 0.0  ;;  %v8432_v2 = vpop.f32.mrb[218].mxu0 }
 0x6fd   :  { %v5672_v55 = vadd.f32 %v8432_v2, %v11956_v8  ;;  %v5666_v25 = vpop.f32.mrb[219].mxu0 }
 0x6fe   :  { %v5667_v53 = vadd.f32 %v11956_v8, %v5666_v25  ;;  %8531 = vmatprep.mubr.msk.f32.mxu1 %vm1933_vm2, %v5815_v11 }
 0x6ff   :  { %8532 = vmatmul.mubr.msk.f32.gmra.mrb[184].mxu1 %vm1933_vm2, %v5816_v58  ;;  %v5818_v19 = vmax.f32 %v5672_v55, 0.0 }
 0x700   :  { %v5817_v12 = vmax.f32 %v5667_v53, 0.0  ;;  %v8435_v22 = vpop.f32.mrb[220].mxu0  ;;  %v12089_v53 = vld [vmem:[%s12414_s6 + $0x3] ss:$0 sm:$0xff] }
 0x701   :  { %v5682_v54 = vadd.f32 %v8435_v22, %v11956_v8  ;;  %v5676_v45 = vpop.f32.mrb[221].mxu0 }
 0x702   :  { %v5677_v1 = vadd.f32 %v11956_v8, %v5676_v45  ;;  %8534 = vmatprep.mubr.msk.f32.mxu1 %vm1933_vm2, %v5817_v12 }
 0x703   :  { %8535 = vmatmul.mubr.msk.f32.gmra.mrb[186].mxu1 %vm1933_vm2, %v5818_v19  ;;  %v5820_v30 = vmax.f32 %v5682_v54, 0.0 }
 0x704   :  { %v5819_v52 = vmax.f32 %v5677_v1, 0.0  ;;  %v8438_v28 = vpop.f32.mrb[222].mxu0 }
 0x705   :  { %v5692_v23 = vadd.f32 %v8438_v28, %v11956_v8  ;;  %v5686_v5 = vpop.f32.mrb[223].mxu0 }
 0x706   :  { %v5687_v21 = vadd.f32 %v11956_v8, %v5686_v5  ;;  %8537 = vmatprep.mubr.msk.f32.mxu1 %vm1933_vm2, %v5819_v52 }
 0x707   :  { %8538 = vmatmul.mubr.msk.f32.gmra.mrb[188].mxu1 %vm1933_vm2, %v5820_v30  ;;  %v5822_v60 = vmax.f32 %v5692_v23, 0.0 }
 0x708   :  { %v5821_v6 = vmax.f32 %v5687_v21, 0.0  ;;  %v8441_v20 = vpop.f32.mrb[224].mxu0 }
 0x709   :  { %v5702_v31 = vadd.f32 %v8441_v20, %v11956_v8  ;;  %v5696_v41 = vpop.f32.mrb[225].mxu0 }
 0x70a   :  { %v5697_v17 = vadd.f32 %v11956_v8, %v5696_v41  ;;  %8540 = vmatprep.mubr.msk.f32.mxu1 %vm1933_vm2, %v5821_v6 }
 0x70b   :  { %8541 = vmatmul.mubr.msk.f32.gmra.mrb[190].mxu1 %vm1933_vm2, %v5822_v60  ;;  %v5824_v14 = vmax.f32 %v5702_v31, 0.0 }
 0x70c   :  { %v5823_v13 = vmax.f32 %v5697_v17, 0.0  ;;  %v8444_v33 = vpop.f32.mrb[226].mxu0 }
 0x70d   :  { %v5712_v32 = vadd.f32 %v8444_v33, %v11956_v8  ;;  %v5706_v48 = vpop.f32.mrb[227].mxu0 }
 0x70e   :  { %v5707_v38 = vadd.f32 %v11956_v8, %v5706_v48  ;;  %8543 = vmatprep.mubr.msk.f32.mxu1 %vm1933_vm2, %v5823_v13 }
 0x70f   :  { %8544 = vmatmul.mubr.msk.f32.gmra.mrb[192].mxu1 %vm1933_vm2, %v5824_v14  ;;  %v5826_v0 = vmax.f32 %v5712_v32, 0.0 }
 0x710   :  { %v5825_v16 = vmax.f32 %v5707_v38, 0.0  ;;  %v8447_v27 = vpop.f32.mrb[228].mxu0 }
 0x711   :  { %v5722_v46 = vadd.f32 %v8447_v27, %v11956_v8  ;;  %v5716_v59 = vpop.f32.mrb[229].mxu0 }
 0x712   :  { %v5717_v56 = vadd.f32 %v11956_v8, %v5716_v59  ;;  %8546 = vmatprep.mubr.msk.f32.mxu1 %vm1933_vm2, %v5825_v16 }
 0x713   :  { %8547 = vmatmul.mubr.msk.f32.gmra.mrb[194].mxu1 %vm1933_vm2, %v5826_v0  ;;  %v5828_v63 = vmax.f32 %v5722_v46, 0.0 }
 0x714   :  { %v5827_v29 = vmax.f32 %v5717_v56, 0.0  ;;  %v8450_v34 = vpop.f32.mrb[230].mxu0 }
 0x715   :  { %v5732_v43 = vadd.f32 %v8450_v34, %v11956_v8  ;;  %v5726_v9 = vpop.f32.mrb[231].mxu0 }
 0x716   :  { %v5727_v35 = vadd.f32 %v11956_v8, %v5726_v9  ;;  %8549 = vmatprep.mubr.msk.f32.mxu1 %vm1933_vm2, %v5827_v29 }
 0x717   :  { %8550 = vmatmul.mubr.msk.f32.gmra.mrb[196].mxu1 %vm1933_vm2, %v5828_v63  ;;  %v5830_v15 = vmax.f32 %v5732_v43, 0.0 }
 0x718   :  { %v5829_v57 = vmax.f32 %v5727_v35, 0.0  ;;  %v8453_v26 = vpop.f32.mrb[232].mxu0 }
 0x719   :  { %v5742_v49 = vadd.f32 %v8453_v26, %v11956_v8  ;;  %v5736_v61 = vpop.f32.mrb[233].mxu0 }
 0x71a   :  { %v5737_v3 = vadd.f32 %v11956_v8, %v5736_v61  ;;  %8552 = vmatprep.mubr.msk.f32.mxu1 %vm1933_vm2, %v5829_v57 }
 0x71b   :  { %8553 = vmatmul.mubr.msk.f32.gmra.mrb[198].mxu1 %vm1933_vm2, %v5830_v15  ;;  %v5832_v40 = vmax.f32 %v5742_v49, 0.0 }
 0x71c   :  { %v5831_v37 = vmax.f32 %v5737_v3, 0.0  ;;  %v8456_v36 = vpop.f32.mrb[234].mxu0 }
 0x71d   :  { %v5752_v7 = vadd.f32 %v8456_v36, %v11956_v8  ;;  %v5746_v50 = vpop.f32.mrb[235].mxu0 }
 0x71e   :  { %v5747_v51 = vadd.f32 %v11956_v8, %v5746_v50  ;;  %8555 = vmatprep.mubr.msk.f32.mxu1 %vm1933_vm2, %v5831_v37 }
 0x71f   :  { %8556 = vmatmul.mubr.msk.f32.gmra.mrb[200].mxu1 %vm1933_vm2, %v5832_v40  ;;  %v5834_v4 = vmax.f32 %v5752_v7, 0.0 }
 0x720   :  { %v5833_v47 = vmax.f32 %v5747_v51, 0.0  ;;  %v8459_v39 = vpop.f32.mrb[236].mxu0 }
 0x721   :  { %v5762_v62 = vadd.f32 %v8459_v39, %v11956_v8  ;;  %v5756_v42 = vpop.f32.mrb[237].mxu0 }
 0x722   :  { %v5757_v24 = vadd.f32 %v11956_v8, %v5756_v42  ;;  %8558 = vmatprep.mubr.msk.f32.mxu1 %vm1933_vm2, %v5833_v47 }
 0x723   :  { %8559 = vmatmul.mubr.msk.f32.gmra.mrb[202].mxu1 %vm1933_vm2, %v5834_v4  ;;  %v5836_v10 = vmax.f32 %v5762_v62, 0.0 }
 0x724   :  { %v5835_v44 = vmax.f32 %v5757_v24, 0.0  ;;  %v8462_v18 = vpop.f32.mrb[238].mxu0 }
 0x725   :  { %v5772_v11 = vadd.f32 %v8462_v18, %v11956_v8  ;;  %v5766_v2 = vpop.f32.mrb[239].mxu0 }
 0x726   :  { %v5767_v58 = vadd.f32 %v11956_v8, %v5766_v2  ;;  %8561 = vmatprep.mubr.msk.f32.mxu1 %vm1933_vm2, %v5835_v44 }
 0x727   :  { %8562 = vmatmul.mubr.msk.f32.gmra.mrb[204].mxu1 %vm1933_vm2, %v5836_v10  ;;  %v5838_v25 = vmax.f32 %v5772_v11, 0.0 }
 0x728   :  { %v5837_v55 = vmax.f32 %v5767_v58, 0.0 }
 0x72a   :  { %8564 = vmatprep.mubr.msk.f32.mxu1 %vm1933_vm2, %v5837_v55 }
 0x72b   :  { %8565 = vmatmul.mubr.msk.f32.gmra.mrb[206].mxu1 %vm1933_vm2, %v5838_v25 }
 0x74c   :  { %v8473_v12 = vpop.f32.mrb[144].mxu1 }
 0x74d   :  { %v6111_v22 = vadd.f32 %v8473_v12, %v12089_v53  ;;  %v6105_v8 = vpop.f32.mrb[145].mxu1 }
 0x74e   :  { %v6106_v19 = vadd.f32 %v12089_v53, %v6105_v8 }
 0x74f   :  { %6426 = vst.msk [vmem:[%s12418_s7 + $0x8] sm:$0xff] %vm6424_vm4, %v6111_v22 }
 0x750   :  { %6425 = vst.msk [vmem:[%s12418_s7] sm:$0xff] %vm6424_vm4, %v6106_v19  ;;  %v8476_v54 = vpop.f32.mrb[146].mxu1 }
 0x751   :  { %v6121_v45 = vadd.f32 %v8476_v54, %v12089_v53  ;;  %v6115_v1 = vpop.f32.mrb[147].mxu1 }
 0x752   :  { %v6116_v52 = vadd.f32 %v12089_v53, %v6115_v1 }
 0x753   :  { %6428 = vst.msk [vmem:[%s12418_s7 + $0x18] sm:$0xff] %vm6424_vm4, %v6121_v45 }
 0x754   :  { %6427 = vst.msk [vmem:[%s12418_s7 + $0x10] sm:$0xff] %vm6424_vm4, %v6116_v52 }
 0x759   :  { %v8479_v28 = vpop.f32.mrb[148].mxu1 }
 0x75a   :  { %v6131_v30 = vadd.f32 %v8479_v28, %v12089_v53  ;;  %v6125_v23 = vpop.f32.mrb[149].mxu1 }
 0x75b   :  { %v6126_v5 = vadd.f32 %v12089_v53, %v6125_v23 }
 0x75c   :  { %6430 = vst.msk [vmem:[%s12418_s7 + $0x28] sm:$0xff] %vm6424_vm4, %v6131_v30 }
 0x75d   :  { %6429 = vst.msk [vmem:[%s12418_s7 + $0x20] sm:$0xff] %vm6424_vm4, %v6126_v5 }
 0x761   :  { %v8482_v21 = vpop.f32.mrb[150].mxu1 }
 0x762   :  { %v6141_v6 = vadd.f32 %v8482_v21, %v12089_v53  ;;  %v6135_v20 = vpop.f32.mrb[151].mxu1 }
 0x763   :  { %v6136_v60 = vadd.f32 %v12089_v53, %v6135_v20 }
 0x764   :  { %6432 = vst.msk [vmem:[%s12418_s7 + $0x38] sm:$0xff] %vm6424_vm4, %v6141_v6 }
 0x765   :  { %6431 = vst.msk [vmem:[%s12418_s7 + $0x30] sm:$0xff] %vm6424_vm4, %v6136_v60  ;;  %v8485_v31 = vpop.f32.mrb[152].mxu1 }
 0x766   :  { %v6151_v41 = vadd.f32 %v8485_v31, %v12089_v53  ;;  %v6145_v17 = vpop.f32.mrb[153].mxu1 }
 0x767   :  { %v6146_v13 = vadd.f32 %v12089_v53, %v6145_v17 }
 0x768   :  { %6434 = vst.msk [vmem:[%s12418_s7 + $0x48] sm:$0xff] %vm6424_vm4, %v6151_v41 }
 0x769   :  { %6433 = vst.msk [vmem:[%s12418_s7 + $0x40] sm:$0xff] %vm6424_vm4, %v6146_v13  ;;  %v8488_v33 = vpop.f32.mrb[154].mxu1 }
 0x76a   :  { %v6161_v14 = vadd.f32 %v8488_v33, %v12089_v53  ;;  %v6155_v32 = vpop.f32.mrb[155].mxu1 }
 0x76b   :  { %v6156_v48 = vadd.f32 %v12089_v53, %v6155_v32 }
 0x76c   :  { %6436 = vst.msk [vmem:[%s12418_s7 + $0x58] sm:$0xff] %vm6424_vm4, %v6161_v14 }
 0x76d   :  { %6435 = vst.msk [vmem:[%s12418_s7 + $0x50] sm:$0xff] %vm6424_vm4, %v6156_v48  ;;  %v8491_v38 = vpop.f32.mrb[156].mxu1 }
 0x76e   :  { %v6171_v16 = vadd.f32 %v8491_v38, %v12089_v53  ;;  %v6165_v27 = vpop.f32.mrb[157].mxu1 }
 0x76f   :  { %v6166_v0 = vadd.f32 %v12089_v53, %v6165_v27 }
 0x770   :  { %6438 = vst.msk [vmem:[%s12418_s7 + $0x68] sm:$0xff] %vm6424_vm4, %v6171_v16 }
 0x771   :  { %6437 = vst.msk [vmem:[%s12418_s7 + $0x60] sm:$0xff] %vm6424_vm4, %v6166_v0  ;;  %v8494_v46 = vpop.f32.mrb[158].mxu1 }
 0x772   :  { %v6181_v59 = vadd.f32 %v8494_v46, %v12089_v53  ;;  %v6175_v56 = vpop.f32.mrb[159].mxu1 }
 0x773   :  { %v6176_v29 = vadd.f32 %v12089_v53, %v6175_v56 }
 0x774   :  { %6440 = vst.msk [vmem:[%s12418_s7 + $0x78] sm:$0xff] %vm6424_vm4, %v6181_v59 }
 0x775   :  { %6439 = vst.msk [vmem:[%s12418_s7 + $0x70] sm:$0xff] %vm6424_vm4, %v6176_v29  ;;  %v8497_v34 = vpop.f32.mrb[160].mxu1 }
 0x776   :  { %v6191_v63 = vadd.f32 %v8497_v34, %v12089_v53  ;;  %v6185_v43 = vpop.f32.mrb[161].mxu1 }
 0x777   :  { %v6186_v9 = vadd.f32 %v12089_v53, %v6185_v43 }
 0x778   :  { %6442 = vst.msk [vmem:[%s12418_s7 + $0x88] sm:$0xff] %vm6424_vm4, %v6191_v63 }
 0x779   :  { %6441 = vst.msk [vmem:[%s12418_s7 + $0x80] sm:$0xff] %vm6424_vm4, %v6186_v9  ;;  %v8500_v35 = vpop.f32.mrb[162].mxu1 }
 0x77a   :  { %v6201_v57 = vadd.f32 %v8500_v35, %v12089_v53  ;;  %v6195_v26 = vpop.f32.mrb[163].mxu1 }
 0x77b   :  { %v6196_v15 = vadd.f32 %v12089_v53, %v6195_v26 }
 0x77c   :  { %6444 = vst.msk [vmem:[%s12418_s7 + $0x98] sm:$0xff] %vm6424_vm4, %v6201_v57 }
 0x77d   :  { %6443 = vst.msk [vmem:[%s12418_s7 + $0x90] sm:$0xff] %vm6424_vm4, %v6196_v15  ;;  %v8503_v49 = vpop.f32.mrb[164].mxu1 }
 0x77e   :  { %v6211_v61 = vadd.f32 %v8503_v49, %v12089_v53  ;;  %v6205_v3 = vpop.f32.mrb[165].mxu1 }
 0x77f   :  { %v6206_v37 = vadd.f32 %v12089_v53, %v6205_v3 }
 0x780   :  { %6446 = vst.msk [vmem:[%s12418_s7 + $0xa8] sm:$0xff] %vm6424_vm4, %v6211_v61 }
 0x781   :  { %6445 = vst.msk [vmem:[%s12418_s7 + $0xa0] sm:$0xff] %vm6424_vm4, %v6206_v37  ;;  %v8506_v36 = vpop.f32.mrb[166].mxu1 }
 0x782   :  { %v6221_v40 = vadd.f32 %v8506_v36, %v12089_v53  ;;  %v6215_v7 = vpop.f32.mrb[167].mxu1 }
 0x783   :  { %v6216_v50 = vadd.f32 %v12089_v53, %v6215_v7 }
 0x784   :  { %6448 = vst.msk [vmem:[%s12418_s7 + $0xb8] sm:$0xff] %vm6424_vm4, %v6221_v40 }
 0x785   :  { %6447 = vst.msk [vmem:[%s12418_s7 + $0xb0] sm:$0xff] %vm6424_vm4, %v6216_v50  ;;  %v8509_v51 = vpop.f32.mrb[168].mxu1 }
 0x786   :  { %v6231_v47 = vadd.f32 %v8509_v51, %v12089_v53  ;;  %v6225_v39 = vpop.f32.mrb[169].mxu1 }
 0x787   :  { %v6226_v4 = vadd.f32 %v12089_v53, %v6225_v39 }
 0x788   :  { %6450 = vst.msk [vmem:[%s12418_s7 + $0xc8] sm:$0xff] %vm6424_vm4, %v6231_v47 }
 0x789   :  { %6449 = vst.msk [vmem:[%s12418_s7 + $0xc0] sm:$0xff] %vm6424_vm4, %v6226_v4 }
 0x78a   :  { %v8512_v62 = vpop.f32.mrb[170].mxu1 }
 0x78b   :  { %v6241_v42 = vadd.f32 %v8512_v62, %v12089_v53  ;;  %v6235_v24 = vpop.f32.mrb[171].mxu1 }
 0x78c   :  { %v6236_v44 = vadd.f32 %v12089_v53, %v6235_v24 }
 0x78d   :  { %6452 = vst.msk [vmem:[%s12418_s7 + $0xd8] sm:$0xff] %vm6424_vm4, %v6241_v42 }
 0x78e   :  { %6451 = vst.msk [vmem:[%s12418_s7 + $0xd0] sm:$0xff] %vm6424_vm4, %v6236_v44 }
 0x792   :  { %v8515_v18 = vpop.f32.mrb[172].mxu1 }
 0x793   :  { %v6251_v10 = vadd.f32 %v8515_v18, %v12089_v53  ;;  %v6245_v11 = vpop.f32.mrb[173].mxu1 }
 0x794   :  { %v6246_v2 = vadd.f32 %v12089_v53, %v6245_v11 }
 0x795   :  { %6454 = vst.msk [vmem:[%s12418_s7 + $0xe8] sm:$0xff] %vm6424_vm4, %v6251_v10 }
 0x796   :  { %6453 = vst.msk [vmem:[%s12418_s7 + $0xe0] sm:$0xff] %vm6424_vm4, %v6246_v2 }
 0x79a   :  { %v8518_v58 = vpop.f32.mrb[174].mxu1 }
 0x79b   :  { %v6261_v55 = vadd.f32 %v8518_v58, %v12089_v53  ;;  %v6255_v25 = vpop.f32.mrb[175].mxu1 }
 0x79c   :  { %v6256_v12 = vadd.f32 %v12089_v53, %v6255_v25 }
 0x79d   :  { %6456 = vst.msk [vmem:[%s12418_s7 + $0xf8] sm:$0xff] %vm6424_vm4, %v6261_v55 }
 0x79e   :  { %6455 = vst.msk [vmem:[%s12418_s7 + $0xf0] sm:$0xff] %vm6424_vm4, %v6256_v12  ;;  %v8521_v22 = vpop.f32.mrb[176].mxu1 }
 0x79f   :  { %v6271_v8 = vadd.f32 %v8521_v22, %v12089_v53  ;;  %v6265_v19 = vpop.f32.mrb[177].mxu1 }
 0x7a0   :  { %v6266_v54 = vadd.f32 %v12089_v53, %v6265_v19 }
 0x7a1   :  { %6458 = vst.msk [vmem:[%s12418_s7 + $0x108] sm:$0xff] %vm6424_vm4, %v6271_v8 }
 0x7a2   :  { %6457 = vst.msk [vmem:[%s12418_s7 + $0x100] sm:$0xff] %vm6424_vm4, %v6266_v54  ;;  %v8524_v45 = vpop.f32.mrb[178].mxu1 }
 0x7a3   :  { %v6281_v1 = vadd.f32 %v8524_v45, %v12089_v53  ;;  %v6275_v52 = vpop.f32.mrb[179].mxu1 }
 0x7a4   :  { %v6276_v28 = vadd.f32 %v12089_v53, %v6275_v52 }
 0x7a5   :  { %6460 = vst.msk [vmem:[%s12418_s7 + $0x118] sm:$0xff] %vm6424_vm4, %v6281_v1 }
 0x7a6   :  { %6459 = vst.msk [vmem:[%s12418_s7 + $0x110] sm:$0xff] %vm6424_vm4, %v6276_v28  ;;  %v8527_v30 = vpop.f32.mrb[180].mxu1 }
 0x7a7   :  { %v6291_v23 = vadd.f32 %v8527_v30, %v12089_v53  ;;  %v6285_v5 = vpop.f32.mrb[181].mxu1 }
 0x7a8   :  { %v6286_v21 = vadd.f32 %v12089_v53, %v6285_v5 }
 0x7a9   :  { %6462 = vst.msk [vmem:[%s12418_s7 + $0x128] sm:$0xff] %vm6424_vm4, %v6291_v23 }
 0x7aa   :  { %6461 = vst.msk [vmem:[%s12418_s7 + $0x120] sm:$0xff] %vm6424_vm4, %v6286_v21  ;;  %v8530_v6 = vpop.f32.mrb[182].mxu1 }
 0x7ab   :  { %v6301_v20 = vadd.f32 %v8530_v6, %v12089_v53  ;;  %v6295_v60 = vpop.f32.mrb[183].mxu1 }
 0x7ac   :  { %v6296_v31 = vadd.f32 %v12089_v53, %v6295_v60 }
 0x7ad   :  { %6464 = vst.msk [vmem:[%s12418_s7 + $0x138] sm:$0xff] %vm6424_vm4, %v6301_v20 }
 0x7ae   :  { %6463 = vst.msk [vmem:[%s12418_s7 + $0x130] sm:$0xff] %vm6424_vm4, %v6296_v31 }
 0x7d2   :  { %v8533_v41 = vpop.f32.mrb[184].mxu1 }
 0x7d3   :  { %v6311_v17 = vadd.f32 %v8533_v41, %v12089_v53  ;;  %v6305_v13 = vpop.f32.mrb[185].mxu1 }
 0x7d4   :  { %v6306_v33 = vadd.f32 %v12089_v53, %v6305_v13 }
 0x7d5   :  { %6466 = vst.msk [vmem:[%s12418_s7 + $0x148] sm:$0xff] %vm6424_vm4, %v6311_v17 }
 0x7d6   :  { %6465 = vst.msk [vmem:[%s12418_s7 + $0x140] sm:$0xff] %vm6424_vm4, %v6306_v33  ;;  %v8536_v14 = vpop.f32.mrb[186].mxu1 }
 0x7d7   :  { %v6321_v32 = vadd.f32 %v8536_v14, %v12089_v53  ;;  %v6315_v48 = vpop.f32.mrb[187].mxu1 }
 0x7d8   :  { %v6316_v38 = vadd.f32 %v12089_v53, %v6315_v48 }
 0x7d9   :  { %6468 = vst.msk [vmem:[%s12418_s7 + $0x158] sm:$0xff] %vm6424_vm4, %v6321_v32 }
 0x7da   :  { %6467 = vst.msk [vmem:[%s12418_s7 + $0x150] sm:$0xff] %vm6424_vm4, %v6316_v38  ;;  %v8539_v16 = vpop.f32.mrb[188].mxu1 }
 0x7db   :  { %v6331_v27 = vadd.f32 %v8539_v16, %v12089_v53  ;;  %v6325_v0 = vpop.f32.mrb[189].mxu1 }
 0x7dc   :  { %v6326_v46 = vadd.f32 %v12089_v53, %v6325_v0 }
 0x7dd   :  { %6470 = vst.msk [vmem:[%s12418_s7 + $0x168] sm:$0xff] %vm6424_vm4, %v6331_v27 }
 0x7de   :  { %6469 = vst.msk [vmem:[%s12418_s7 + $0x160] sm:$0xff] %vm6424_vm4, %v6326_v46  ;;  %v8542_v59 = vpop.f32.mrb[190].mxu1 }
 0x7df   :  { %v6341_v56 = vadd.f32 %v8542_v59, %v12089_v53  ;;  %v6335_v29 = vpop.f32.mrb[191].mxu1 }
 0x7e0   :  { %v6336_v34 = vadd.f32 %v12089_v53, %v6335_v29 }
 0x7e1   :  { %6472 = vst.msk [vmem:[%s12418_s7 + $0x178] sm:$0xff] %vm6424_vm4, %v6341_v56 }
 0x7e2   :  { %6471 = vst.msk [vmem:[%s12418_s7 + $0x170] sm:$0xff] %vm6424_vm4, %v6336_v34  ;;  %v8545_v63 = vpop.f32.mrb[192].mxu1 }
 0x7e3   :  { %v6351_v43 = vadd.f32 %v8545_v63, %v12089_v53  ;;  %v6345_v9 = vpop.f32.mrb[193].mxu1 }
 0x7e4   :  { %v6346_v35 = vadd.f32 %v12089_v53, %v6345_v9 }
 0x7e5   :  { %6474 = vst.msk [vmem:[%s12418_s7 + $0x188] sm:$0xff] %vm6424_vm4, %v6351_v43 }
 0x7e6   :  { %6473 = vst.msk [vmem:[%s12418_s7 + $0x180] sm:$0xff] %vm6424_vm4, %v6346_v35  ;;  %v8548_v57 = vpop.f32.mrb[194].mxu1 }
 0x7e7   :  { %v6361_v26 = vadd.f32 %v8548_v57, %v12089_v53  ;;  %v6355_v15 = vpop.f32.mrb[195].mxu1 }
 0x7e8   :  { %v6356_v49 = vadd.f32 %v12089_v53, %v6355_v15 }
 0x7e9   :  { %6476 = vst.msk [vmem:[%s12418_s7 + $0x198] sm:$0xff] %vm6424_vm4, %v6361_v26 }
 0x7ea   :  { %6475 = vst.msk [vmem:[%s12418_s7 + $0x190] sm:$0xff] %vm6424_vm4, %v6356_v49  ;;  %v8551_v61 = vpop.f32.mrb[196].mxu1 }
 0x7eb   :  { %v6371_v3 = vadd.f32 %v8551_v61, %v12089_v53  ;;  %v6365_v37 = vpop.f32.mrb[197].mxu1 }
 0x7ec   :  { %v6366_v36 = vadd.f32 %v12089_v53, %v6365_v37 }
 0x7ed   :  { %6478 = vst.msk [vmem:[%s12418_s7 + $0x1a8] sm:$0xff] %vm6424_vm4, %v6371_v3 }
 0x7ee   :  { %6477 = vst.msk [vmem:[%s12418_s7 + $0x1a0] sm:$0xff] %vm6424_vm4, %v6366_v36  ;;  %v8554_v40 = vpop.f32.mrb[198].mxu1 }
 0x7ef   :  { %v6381_v7 = vadd.f32 %v8554_v40, %v12089_v53  ;;  %v6375_v50 = vpop.f32.mrb[199].mxu1 }
 0x7f0   :  { %v6376_v51 = vadd.f32 %v12089_v53, %v6375_v50 }
 0x7f1   :  { %6480 = vst.msk [vmem:[%s12418_s7 + $0x1b8] sm:$0xff] %vm6424_vm4, %v6381_v7 }
 0x7f2   :  { %6479 = vst.msk [vmem:[%s12418_s7 + $0x1b0] sm:$0xff] %vm6424_vm4, %v6376_v51  ;;  %v8557_v47 = vpop.f32.mrb[200].mxu1 }
 0x7f3   :  { %v6391_v39 = vadd.f32 %v8557_v47, %v12089_v53  ;;  %v6385_v4 = vpop.f32.mrb[201].mxu1 }
 0x7f4   :  { %v6386_v62 = vadd.f32 %v12089_v53, %v6385_v4 }
 0x7f5   :  { %6482 = vst.msk [vmem:[%s12418_s7 + $0x1c8] sm:$0xff] %vm6424_vm4, %v6391_v39 }
 0x7f6   :  { %6481 = vst.msk [vmem:[%s12418_s7 + $0x1c0] sm:$0xff] %vm6424_vm4, %v6386_v62  ;;  %v8560_v42 = vpop.f32.mrb[202].mxu1 }
 0x7f7   :  { %v6401_v24 = vadd.f32 %v8560_v42, %v12089_v53  ;;  %v6395_v44 = vpop.f32.mrb[203].mxu1 }
 0x7f8   :  { %v6396_v18 = vadd.f32 %v12089_v53, %v6395_v44 }
 0x7f9   :  { %6484 = vst.msk [vmem:[%s12418_s7 + $0x1d8] sm:$0xff] %vm6424_vm4, %v6401_v24 }
 0x7fa   :  { %6483 = vst.msk [vmem:[%s12418_s7 + $0x1d0] sm:$0xff] %vm6424_vm4, %v6396_v18  ;;  %v8563_v10 = vpop.f32.mrb[204].mxu1 }
 0x7fb   :  { %v6411_v11 = vadd.f32 %v8563_v10, %v12089_v53  ;;  %v6405_v2 = vpop.f32.mrb[205].mxu1 }
 0x7fc   :  { %v6406_v58 = vadd.f32 %v12089_v53, %v6405_v2 }
 0x7fd   :  { %6486 = vst.msk [vmem:[%s12418_s7 + $0x1e8] sm:$0xff] %vm6424_vm4, %v6411_v11 }
 0x7fe   :  { %6485 = vst.msk [vmem:[%s12418_s7 + $0x1e0] sm:$0xff] %vm6424_vm4, %v6406_v58  ;;  %v8566_v55 = vpop.f32.mrb[206].mxu1 }
 0x7ff   :  { %v6421_v25 = vadd.f32 %v8566_v55, %v12089_v53  ;;  %v6415_v12 = vpop.f32.mrb[207].mxu1 }
 0x800   :  { %v6416_v22 = vadd.f32 %v12089_v53, %v6415_v12 }
 0x801   :  { %6488 = vst.msk [vmem:[%s12418_s7 + $0x1f8] sm:$0xff] %vm6424_vm4, %v6421_v25 }
 0x802   :  { %6487 = vst.msk [vmem:[%s12418_s7 + $0x1f0] sm:$0xff] %vm6424_vm4, %v6416_v22 }

</bundles_post_ra>
